<compile_context>
chip_gen: v7x
topology: tpu7x:2x2x1
jax: 0.10.0
libtpu: 0.0.40
codegen_flags: <defaults>
</compile_context>

<pallas_src>
import functools

import jax
import jax.numpy as jnp
from jax import lax
from jax.experimental import pallas as pl
from jax.experimental.pallas import tpu as pltpu

EPS = 1e-5
EXPANSION = 4

_VMEM_LIMIT = 32 * 1024 * 1024


# ----------------------------- Pallas kernels ------------------------------ #

def _mm_bias_act_kernel(x_ref, w_ref, b_ref, o_ref, *, relu):
    """(tm, K) @ (K, N) bf16 matmul (f32 acc) + folded-BN bias, optional ReLU."""
    acc = jnp.dot(x_ref[...].astype(jnp.bfloat16), w_ref[...],
                  preferred_element_type=jnp.float32)
    y = acc + b_ref[...]
    if relu:
        y = jnp.maximum(y, 0.0)
    o_ref[...] = y.astype(o_ref.dtype)


def _mm_add_relu_kernel(x_ref, w_ref, b_ref, sc_ref, o_ref):
    """conv3 path (not last): out = relu(x @ w + b + shortcut)."""
    acc = jnp.dot(x_ref[...].astype(jnp.bfloat16), w_ref[...],
                  preferred_element_type=jnp.float32)
    pre = acc + b_ref[...] + sc_ref[...].astype(jnp.float32)
    o_ref[...] = jnp.maximum(pre, 0.0).astype(o_ref.dtype)


def _mm_add_relu_preact_kernel(x_ref, w_ref, b_ref, sc_ref, o_ref, pre_ref):
    """conv3 path (last block): additionally emit the pre-activation (f32)."""
    acc = jnp.dot(x_ref[...].astype(jnp.bfloat16), w_ref[...],
                  preferred_element_type=jnp.float32)
    pre = acc + b_ref[...] + sc_ref[...].astype(jnp.float32)
    pre_ref[...] = pre.astype(pre_ref.dtype)
    o_ref[...] = jnp.maximum(pre, 0.0).astype(o_ref.dtype)


def _conv3x3_kernel(*refs, stride, Ho, Wo, proj):
    """Per-image 3x3 conv (pad=1 pre-applied) + bias + ReLU.

    stride==1: xp_ref is (Hp, Wp, C) and each of the 9 taps is a contiguous
               shifted slice matmul'ed against its (C, Cout) weight slice.
    stride>1 : xp_ref is phase-split (Hp/s, s, Wp/s, s, C) (a free row-major
               reshape done in the wrapper), so taps are again plain
               contiguous slices -- no strided loads needed.
    When proj=True the strided 1x1 projection shortcut (on the original x) is
    fused in and written as a second output.
    """
    if proj:
        xp_ref, w2_ref, b2_ref, x_ref, ws_ref, bs_ref, o_ref, sc_ref = refs
    else:
        xp_ref, w2_ref, b2_ref, o_ref = refs

    C = xp_ref.shape[-1]
    Cout = w2_ref.shape[-1]

    acc = jnp.zeros((Ho * Wo, Cout), jnp.float32)
    for dh in range(3):
        for dw in range(3):
            if stride == 1:
                slab = xp_ref[dh:dh + Ho, dw:dw + Wo, :]
            else:
                slab = xp_ref[dh // stride:dh // stride + Ho, dh % stride,
                              dw // stride:dw // stride + Wo, dw % stride, :]
            acc = acc + jnp.dot(slab.reshape(Ho * Wo, C),
                                w2_ref[dh * 3 + dw],
                                preferred_element_type=jnp.float32)
    y = jnp.maximum(acc + b2_ref[...], 0.0)
    o_ref[...] = y.reshape(Ho, Wo, Cout).astype(o_ref.dtype)

    if proj:
        Cin = x_ref.shape[-1]
        if stride == 1:
            xs = x_ref[...]
        else:
            xs = x_ref[0:Ho, 0, 0:Wo, 0, :]
        sc = jnp.dot(xs.reshape(Ho * Wo, Cin).astype(jnp.bfloat16), ws_ref[...],
                     preferred_element_type=jnp.float32) + bs_ref[...]
        sc_ref[...] = sc.reshape(Ho, Wo, -1).astype(sc_ref.dtype)


# ------------------------------ Call wrappers ------------------------------- #

def _pick_tm(M):
    # Largest power-of-two row tile <= 512 that still yields >= 2 grid steps
    # (keeps both v7x TensorCores busy); amortizes per-grid-step overhead.
    for tm in (512, 256, 128, 64, 32, 16, 8):
        if -(-M // tm) >= 2:
            return tm
    return 8


def _pad_rows(a, mp):
    m = a.shape[0]
    if m == mp:
        return a
    return jnp.pad(a, ((0, mp - m), (0, 0)))


def _cparams():
    return pltpu.CompilerParams(dimension_semantics=("parallel",),
                                vmem_limit_bytes=_VMEM_LIMIT)


def matmul_bias_act(x, w_bf16, bias, *, relu, out_dtype):
    """conv 1x1 (folded BN) as a row-tiled fused matmul."""
    M, K = x.shape
    N = w_bf16.shape[-1]
    tm = _pick_tm(M)
    Mp = -(-M // tm) * tm
    xp = _pad_rows(x, Mp)
    b2 = bias.reshape(1, N).astype(jnp.float32)
    kernel = functools.partial(_mm_bias_act_kernel, relu=relu)
    out = pl.pallas_call(
        kernel,
        out_shape=jax.ShapeDtypeStruct((Mp, N), out_dtype),
        grid=(Mp // tm,),
        in_specs=[
            pl.BlockSpec((tm, K), lambda i: (i, 0)),
            pl.BlockSpec((K, N), lambda i: (0, 0)),
            pl.BlockSpec((1, N), lambda i: (0, 0)),
        ],
        out_specs=pl.BlockSpec((tm, N), lambda i: (i, 0)),
        compiler_params=_cparams(),
        cost_estimate=pl.CostEstimate(
            flops=2 * Mp * K * N,
            transcendentals=0,
            bytes_accessed=int(xp.size) * xp.dtype.itemsize + int(w_bf16.size) * 2
            + Mp * N * jnp.dtype(out_dtype).itemsize),
    )(xp, w_bf16, b2)
    return out[:M] if Mp != M else out


def matmul_add_relu(x, w_bf16, bias, shortcut, *, want_preact, out_dtype):
    """conv3 (1x1, folded BN) + shortcut add + ReLU; preact only when needed."""
    M, K = x.shape
    N = w_bf16.shape[-1]
    tm = _pick_tm(M)
    Mp = -(-M // tm) * tm
    xp = _pad_rows(x, Mp)
    scp = _pad_rows(shortcut, Mp)
    b2 = bias.reshape(1, N).astype(jnp.float32)
    in_specs = [
        pl.BlockSpec((tm, K), lambda i: (i, 0)),
        pl.BlockSpec((K, N), lambda i: (0, 0)),
        pl.BlockSpec((1, N), lambda i: (0, 0)),
        pl.BlockSpec((tm, N), lambda i: (i, 0)),
    ]
    ce = pl.CostEstimate(
        flops=2 * Mp * K * N,
        transcendentals=0,
        bytes_accessed=int(xp.size) * xp.dtype.itemsize + int(w_bf16.size) * 2
        + int(scp.size) * scp.dtype.itemsize
        + (2 if want_preact else 1) * Mp * N * 4)
    if want_preact:
        out, pre = pl.pallas_call(
            _mm_add_relu_preact_kernel,
            out_shape=(jax.ShapeDtypeStruct((Mp, N), out_dtype),
                       jax.ShapeDtypeStruct((Mp, N), jnp.float32)),
            grid=(Mp // tm,),
            in_specs=in_specs,
            out_specs=(pl.BlockSpec((tm, N), lambda i: (i, 0)),
                       pl.BlockSpec((tm, N), lambda i: (i, 0))),
            compiler_params=_cparams(),
            cost_estimate=ce,
        )(xp, w_bf16, b2, scp)
        return (out[:M], pre[:M]) if Mp != M else (out, pre)
    out = pl.pallas_call(
        _mm_add_relu_kernel,
        out_shape=jax.ShapeDtypeStruct((Mp, N), out_dtype),
        grid=(Mp // tm,),
        in_specs=in_specs,
        out_specs=pl.BlockSpec((tm, N), lambda i: (i, 0)),
        compiler_params=_cparams(),
        cost_estimate=ce,
    )(xp, w_bf16, b2, scp)
    return out[:M] if Mp != M else out


def conv2_call(out1, w2f, b2v, x=None, wsf=None, bsv=None, *, stride, Ho, Wo):
    """3x3 conv (stride, pad=1) + folded-BN bias + ReLU; optional fused
    projection shortcut (strided 1x1 conv on x).  Grid over batch images."""
    N, H, W, C = out1.shape
    Cout = w2f.shape[-1]
    proj = x is not None

    # SAME padding (pad=1); for stride>1 pad spatial dims up to a multiple of
    # the stride so the phase-split reshape below is exact.  out1 is bf16, so
    # this single pad is cheap (no 9x im2col blow-up).
    Hp, Wp = H + 2, W + 2
    ph, pw = (-Hp) % stride, (-Wp) % stride
    out1p = jnp.pad(out1, ((0, 0), (1, 1 + ph), (1, 1 + pw), (0, 0)))
    Hp += ph
    Wp += pw

    if stride == 1:
        xp_in = out1p
        xp_spec = pl.BlockSpec((None, Hp, Wp, C), lambda n: (n, 0, 0, 0))
    else:
        xp_in = out1p.reshape(N, Hp // stride, stride, Wp // stride, stride, C)
        xp_spec = pl.BlockSpec(
            (None, Hp // stride, stride, Wp // stride, stride, C),
            lambda n: (n, 0, 0, 0, 0, 0))

    in_arrays = [xp_in, w2f, b2v.reshape(1, Cout).astype(jnp.float32)]
    in_specs = [xp_spec,
                pl.BlockSpec((9, C, Cout), lambda n: (0, 0, 0)),
                pl.BlockSpec((1, Cout), lambda n: (0, 0))]
    out_shapes = [jax.ShapeDtypeStruct((N, Ho, Wo, Cout), jnp.bfloat16)]
    out_specs = [pl.BlockSpec((None, Ho, Wo, Cout), lambda n: (n, 0, 0, 0))]
    bytes_est = int(xp_in.size) * 2 + int(w2f.size) * 2 + N * Ho * Wo * Cout * 2
    flops_est = 2 * N * Ho * Wo * 9 * C * Cout

    if proj:
        Cin = x.shape[-1]
        Cs = wsf.shape[-1]
        if stride == 1:
            x_in = x
            x_spec = pl.BlockSpec((None, x.shape[1], x.shape[2], Cin),
                                  lambda n: (n, 0, 0, 0))
        else:
            Hx, Wx = x.shape[1], x.shape[2]
            pxh, pxw = (-Hx) % stride, (-Wx) % stride
            xq = x if (pxh == 0 and pxw == 0) else jnp.pad(
                x, ((0, 0), (0, pxh), (0, pxw), (0, 0)))
            x_in = xq.reshape(N, (Hx + pxh) // stride, stride,
                              (Wx + pxw) // stride, stride, Cin)
            x_spec = pl.BlockSpec((None,) + x_in.shape[1:],
                                  lambda n: (n, 0, 0, 0, 0, 0))
        in_arrays += [x_in, wsf, bsv.reshape(1, Cs).astype(jnp.float32)]
        in_specs += [x_spec,
                     pl.BlockSpec((Cin, Cs), lambda n: (0, 0)),
                     pl.BlockSpec((1, Cs), lambda n: (0, 0))]
        out_shapes.append(jax.ShapeDtypeStruct((N, Ho, Wo, Cs), jnp.float32))
        out_specs.append(pl.BlockSpec((None, Ho, Wo, Cs), lambda n: (n, 0, 0, 0)))
        bytes_est += int(x_in.size) * x_in.dtype.itemsize + int(wsf.size) * 2 \
            + N * Ho * Wo * Cs * 4
        flops_est += 2 * N * Ho * Wo * Cin * Cs

    kernel = functools.partial(_conv3x3_kernel, stride=stride, Ho=Ho, Wo=Wo,
                               proj=proj)
    outs = pl.pallas_call(
        kernel,
        out_shape=tuple(out_shapes),
        grid=(N,),
        in_specs=in_specs,
        out_specs=tuple(out_specs),
        compiler_params=_cparams(),
        cost_estimate=pl.CostEstimate(flops=flops_est, transcendentals=0,
                                      bytes_accessed=bytes_est),
    )(*in_arrays)
    if proj:
        return outs[0], outs[1]
    return outs[0]


# --------------------------------- Glue ------------------------------------ #

def _fold_bn(p):
    scale = p["gamma"] * lax.rsqrt(p["var"] + EPS)
    bias = p["beta"] - p["mean"] * scale
    return scale, bias


def init_bottleneck_params(key, in_planes, planes, stride):
    planes_out = EXPANSION * planes
    keys = jax.random.split(key, 8)

    def bn_params(k, c):
        k1, k2, k3, k4 = jax.random.split(k, 4)
        return dict(
            gamma=jax.random.uniform(k1, (c,), jnp.float32, minval=0.5, maxval=1.5),
            beta=0.1 * jax.random.normal(k2, (c,), jnp.float32),
            mean=0.1 * jax.random.normal(k3, (c,), jnp.float32),
            var=jax.random.uniform(k4, (c,), jnp.float32, minval=0.5, maxval=1.5),
        )

    p = dict(
        w1=0.2 * jax.random.normal(keys[0], (1, 1, in_planes, planes), jnp.float32),
        bn1=bn_params(keys[1], planes),
        w2=0.2 * jax.random.normal(keys[2], (3, 3, planes, planes), jnp.float32),
        bn2=bn_params(keys[3], planes),
        w3=0.2 * jax.random.normal(keys[4], (1, 1, planes, planes_out), jnp.float32),
        bn3=bn_params(keys[5], planes_out),
    )
    if stride != 1 or in_planes != planes_out:
        p["ws"] = 0.2 * jax.random.normal(
            keys[6], (1, 1, in_planes, planes_out), jnp.float32)
        p["bns"] = bn_params(keys[7], planes_out)
    return p


def bottleneck_forward(x_nchw, params, stride, is_last=False):
    # NCHW (PyTorch convention) in/out; NHWC internally.
    x = jnp.transpose(x_nchw, (0, 2, 3, 1))
    N, H, W, Cin = x.shape
    planes = params["w1"].shape[-1]
    planes_out = params["w3"].shape[-1]

    s1, b1 = _fold_bn(params["bn1"])
    s2, b2 = _fold_bn(params["bn2"])
    s3, b3 = _fold_bn(params["bn3"])

    # Fold BN scale into bf16 weights once -> kernel epilogue is just "+ bias",
    # and the MXU runs at its native bf16 rate with f32 accumulation.
    w1f = (params["w1"].reshape(Cin, planes) * s1[None, :]).astype(jnp.bfloat16)
    w2f = (params["w2"].reshape(9, planes, planes)
           * s2[None, None, :]).astype(jnp.bfloat16)
    w3f = (params["w3"].reshape(planes, planes_out)
           * s3[None, :]).astype(jnp.bfloat16)

    Ho = (H + 2 - 3) // stride + 1
    Wo = (W + 2 - 3) // stride + 1

    # conv1 (1x1) + bn1 + relu -> bf16 activation (halves its HBM traffic).
    out1 = matmul_bias_act(x.reshape(N * H * W, Cin), w1f, b1,
                           relu=True, out_dtype=jnp.bfloat16)
    out1 = out1.reshape(N, H, W, planes)

    # conv2 (3x3 / stride / pad=1) + bn2 + relu; projection shortcut fused in.
    if "ws" in params:
        ss, bs = _fold_bn(params["bns"])
        wsf = (params["ws"].reshape(Cin, planes_out)
               * ss[None, :]).astype(jnp.bfloat16)
        out2, sc = conv2_call(out1, w2f, b2, x, wsf, bs,
                              stride=stride, Ho=Ho, Wo=Wo)
        sc_flat = sc.reshape(N * Ho * Wo, planes_out)
    else:
        out2 = conv2_call(out1, w2f, b2, stride=stride, Ho=Ho, Wo=Wo)
        sc_flat = x.reshape(N * H * W, planes_out)  # identity: stride==1, Cin==4*planes
    out2_flat = out2.reshape(N * Ho * Wo, planes)

    # conv3 (1x1) + bn3 + shortcut add + relu; preact (f32) only when requested.
    if is_last:
        out, pre = matmul_add_relu(out2_flat, w3f, b3, sc_flat,
                                   want_preact=True, out_dtype=x.dtype)
        out = jnp.transpose(out.reshape(N, Ho, Wo, planes_out), (0, 3, 1, 2))
        pre = jnp.transpose(pre.reshape(N, Ho, Wo, planes_out), (0, 3, 1, 2))
        return out, pre
    out = matmul_add_relu(out2_flat, w3f, b3, sc_flat,
                          want_preact=False, out_dtype=x.dtype)
    return jnp.transpose(out.reshape(N, Ho, Wo, planes_out), (0, 3, 1, 2))


# ------------------------------ Pure-JAX ref -------------------------------- #

def ref_bottleneck(x_nchw, params, stride, is_last=False):
    x = jnp.transpose(x_nchw, (0, 2, 3, 1))
    dn = ("NHWC", "HWIO", "NHWC")

    def bn(y, p):
        scale = p["gamma"] / jnp.sqrt(p["var"] + EPS)
        return y * scale + (p["beta"] - p["mean"] * scale)

    out = jax.nn.relu(bn(lax.conv_general_dilated(
        x, params["w1"], (1, 1), "VALID", dimension_numbers=dn), params["bn1"]))
    out = jax.nn.relu(bn(lax.conv_general_dilated(
        out, params["w2"], (stride, stride), ((1, 1), (1, 1)),
        dimension_numbers=dn), params["bn2"]))
    out = bn(lax.conv_general_dilated(
        out, params["w3"], (1, 1), "VALID", dimension_numbers=dn), params["bn3"])
    if "ws" in params:
        sc = bn(lax.conv_general_dilated(
            x, params["ws"], (stride, stride), "VALID",
            dimension_numbers=dn), params["bns"])
    else:
        sc = x
    pre = out + sc
    outr = jnp.transpose(jax.nn.relu(pre), (0, 3, 1, 2))
    pre = jnp.transpose(pre, (0, 3, 1, 2))
    return (outr, pre) if is_last else outr


# ---------------------------------- Main ------------------------------------ #

if __name__ == "__main__":
    key = jax.random.PRNGKey(0)
    kx, kp1, kp2 = jax.random.split(key, 3)

    batch, in_planes, planes, spatial = 2, 16, 4, 16
    x = jax.random.normal(kx, (batch, in_planes, spatial, spatial), jnp.float32)

    fwd = jax.jit(bottleneck_forward, static_argnums=(2, 3))

    def rel_err(a, b):
        a = a.astype(jnp.float32)
        b = b.astype(jnp.float32)
        return float(jnp.linalg.norm(a - b) / (jnp.linalg.norm(b) + 1e-12))

    # Config A: projection shortcut (stride=2), is_last=True -> (out, preact)
    params_a = init_bottleneck_params(kp1, in_planes, planes, stride=2)
    out_a, pre_a = fwd(x, params_a, 2, True)
    jax.block_until_ready((out_a, pre_a))
    ref_out_a, ref_pre_a = ref_bottleneck(x, params_a, stride=2, is_last=True)
    assert rel_err(out_a, ref_out_a) < 5e-2, "config A out mismatch"
    assert rel_err(pre_a, ref_pre_a) < 5e-2, "config A preact mismatch"

    # Config B: identity shortcut (stride=1, in_planes == 4*planes), is_last=False
    params_b = init_bottleneck_params(kp2, in_planes, planes, stride=1)
    out_b = fwd(x, params_b, 1, False)
    jax.block_until_ready(out_b)
    ref_out_b = ref_bottleneck(x, params_b, stride=1, is_last=False)
    assert rel_err(out_b, ref_out_b) < 5e-2, "config B out mismatch"

    print("KERNEL_OK")
</pallas_src>

<mosaic_0001>
module attributes {stable_mosaic.version = 11 : i64} {
  func.func @_mm_bias_act_kernel(%arg0: i32, %arg1: memref<256x16xf32, #tpu.memory_space<vmem>>, %arg2: memref<16x4xbf16, #tpu.memory_space<vmem>>, %arg3: memref<1x4xf32, #tpu.memory_space<vmem>>, %arg4: memref<256x4xbf16, #tpu.memory_space<vmem>>) attributes {dimension_semantics = [#tpu.dimension_semantics<parallel>], iteration_bounds = array<i64: 2>, scalar_prefetch = 0 : i64, scratch_operands = 0 : i64, tpu.core_type = #tpu.core_type<tc>, window_params = [{transform_indices = @transform_0, window_bounds = array<i64: 256, 16>}, {pipeline_mode = #tpu.pipeline_mode<synchronous>, transform_indices = @transform_1, window_bounds = array<i64: 16, 4>}, {pipeline_mode = #tpu.pipeline_mode<synchronous>, transform_indices = @transform_2, window_bounds = array<i64: 1, 4>}, {transform_indices = @transform_3, window_bounds = array<i64: 256, 4>}]} {
    %c0 = arith.constant 0 : index
    %c0_0 = arith.constant 0 : index
    %0 = vector.load %arg1[%c0, %c0_0] : memref<256x16xf32, #tpu.memory_space<vmem>>, vector<256x16xf32>
    %1 = arith.truncf %0 : vector<256x16xf32> to vector<256x16xbf16>
    %c0_1 = arith.constant 0 : index
    %c0_2 = arith.constant 0 : index
    %2 = vector.load %arg2[%c0_1, %c0_2] : memref<16x4xbf16, #tpu.memory_space<vmem>>, vector<16x4xbf16>
    %cst = arith.constant dense<0.000000e+00> : vector<256x4xf32>
    %3 = tpu.matmul %1, %2, %cst {dimension_numbers = #tpu.dot_dimension_numbers<[1], [0], [0], [1], [0, 0, 1, 1], [], []>} : vector<256x16xbf16>, vector<16x4xbf16>, vector<256x4xf32> -> vector<256x4xf32>
    %c0_3 = arith.constant 0 : index
    %c0_4 = arith.constant 0 : index
    %4 = vector.load %arg3[%c0_3, %c0_4] : memref<1x4xf32, #tpu.memory_space<vmem>>, vector<1x4xf32>
    %5 = vector.broadcast %4 : vector<1x4xf32> to vector<256x4xf32>
    %6 = arith.addf %3, %5 : vector<256x4xf32>
    %cst_5 = arith.constant 0.000000e+00 : f32
    %7 = vector.broadcast %cst_5 : f32 to vector<256x4xf32>
    %8 = arith.maximumf %6, %7 : vector<256x4xf32>
    %9 = arith.truncf %8 : vector<256x4xf32> to vector<256x4xbf16>
    %c0_6 = arith.constant 0 : index
    %c0_7 = arith.constant 0 : index
    %10 = vector.load %arg4[%c0_6, %c0_7] : memref<256x4xbf16, #tpu.memory_space<vmem>>, vector<256x4xbf16>
    tpu.vector_store %arg4[%c0_6, %c0_7], %9 {strides = array<i32>} : memref<256x4xbf16, #tpu.memory_space<vmem>>, vector<256x4xbf16>,
    return
  }
  func.func @transform_0(%arg0: i32) -> (i32, i32) {
    %c0_i32 = arith.constant 0 : i32
    %c0_i32_0 = arith.constant 0 : i32
    return %arg0, %c0_i32 : i32, i32
  }
  func.func @transform_1(%arg0: i32) -> (i32, i32) {
    %c0_i32 = arith.constant 0 : i32
    %c0_i32_0 = arith.constant 0 : i32
    %c0_i32_1 = arith.constant 0 : i32
    return %c0_i32, %c0_i32_0 : i32, i32
  }
  func.func @transform_2(%arg0: i32) -> (i32, i32) {
    %c0_i32 = arith.constant 0 : i32
    %c0_i32_0 = arith.constant 0 : i32
    %c0_i32_1 = arith.constant 0 : i32
    return %c0_i32, %c0_i32_0 : i32, i32
  }
  func.func @transform_3(%arg0: i32) -> (i32, i32) {
    %c0_i32 = arith.constant 0 : i32
    %c0_i32_0 = arith.constant 0 : i32
    return %arg0, %c0_i32 : i32, i32
  }
}

module attributes {stable_mosaic.version = 11 : i64} {
  func.func @_conv3x3_kernel(%arg0: i32, %arg1: memref<1x9x2x9x2x4xbf16, #tpu.memory_space<vmem>>, %arg2: memref<9x4x4xbf16, #tpu.memory_space<vmem>>, %arg3: memref<1x4xf32, #tpu.memory_space<vmem>>, %arg4: memref<1x8x2x8x2x16xf32, #tpu.memory_space<vmem>>, %arg5: memref<16x16xbf16, #tpu.memory_space<vmem>>, %arg6: memref<1x16xf32, #tpu.memory_space<vmem>>, %arg7: memref<1x8x8x4xbf16, #tpu.memory_space<vmem>>, %arg8: memref<1x8x8x16xf32, #tpu.memory_space<vmem>>) attributes {dimension_semantics = [#tpu.dimension_semantics<parallel>], iteration_bounds = array<i64: 2>, scalar_prefetch = 0 : i64, scratch_operands = 0 : i64, tpu.core_type = #tpu.core_type<tc>, window_params = [{transform_indices = @transform_0, window_bounds = array<i64: 1, 9, 2, 9, 2, 4>}, {pipeline_mode = #tpu.pipeline_mode<synchronous>, transform_indices = @transform_1, window_bounds = array<i64: 9, 4, 4>}, {pipeline_mode = #tpu.pipeline_mode<synchronous>, transform_indices = @transform_2, window_bounds = array<i64: 1, 4>}, {transform_indices = @transform_3, window_bounds = array<i64: 1, 8, 2, 8, 2, 16>}, {pipeline_mode = #tpu.pipeline_mode<synchronous>, transform_indices = @transform_4, window_bounds = array<i64: 16, 16>}, {pipeline_mode = #tpu.pipeline_mode<synchronous>, transform_indices = @transform_5, window_bounds = array<i64: 1, 16>}, {transform_indices = @transform_6, window_bounds = array<i64: 1, 8, 8, 4>}, {transform_indices = @transform_7, window_bounds = array<i64: 1, 8, 8, 16>}]} {
    %cst = arith.constant 0.000000e+00 : f32
    %0 = vector.broadcast %cst : f32 to vector<64x4xf32>
    %c0 = arith.constant 0 : index
    %c0_0 = arith.constant 0 : index
    %c0_1 = arith.constant 0 : index
    %c0_2 = arith.constant 0 : index
    %c0_3 = arith.constant 0 : index
    %c0_4 = arith.constant 0 : index
    %1 = vector.load %arg1[%c0, %c0_0, %c0_1, %c0_2, %c0_3, %c0_4] : memref<1x9x2x9x2x4xbf16, #tpu.memory_space<vmem>>, vector<1x8x1x8x1x4xbf16>
    %2 = vector.shape_cast %1 : vector<1x8x1x8x1x4xbf16> to vector<8x8x4xbf16>
    %3 = vector.shape_cast %2 : vector<8x8x4xbf16> to vector<64x4xbf16>
    %c0_5 = arith.constant 0 : index
    %c0_6 = arith.constant 0 : index
    %c0_7 = arith.constant 0 : index
    %4 = vector.load %arg2[%c0_5, %c0_6, %c0_7] : memref<9x4x4xbf16, #tpu.memory_space<vmem>>, vector<1x4x4xbf16>
    %5 = vector.shape_cast %4 : vector<1x4x4xbf16> to vector<4x4xbf16>
    %cst_8 = arith.constant dense<0.000000e+00> : vector<64x4xf32>
    %6 = tpu.matmul %3, %5, %cst_8 {dimension_numbers = #tpu.dot_dimension_numbers<[1], [0], [0], [1], [0, 0, 1, 1], [], []>} : vector<64x4xbf16>, vector<4x4xbf16>, vector<64x4xf32> -> vector<64x4xf32>
    %7 = arith.addf %0, %6 : vector<64x4xf32>
    %c0_9 = arith.constant 0 : index
    %c0_10 = arith.constant 0 : index
    %c0_11 = arith.constant 0 : index
    %c0_12 = arith.constant 0 : index
    %c1 = arith.constant 1 : index
    %c0_13 = arith.constant 0 : index
    %8 = vector.load %arg1[%c0_9, %c0_10, %c0_11, %c0_12, %c1, %c0_13] : memref<1x9x2x9x2x4xbf16, #tpu.memory_space<vmem>>, vector<1x8x1x8x1x4xbf16>
    %9 = vector.shape_cast %8 : vector<1x8x1x8x1x4xbf16> to vector<8x8x4xbf16>
    %10 = vector.shape_cast %9 : vector<8x8x4xbf16> to vector<64x4xbf16>
    %c1_14 = arith.constant 1 : index
    %c0_15 = arith.constant 0 : index
    %c0_16 = arith.constant 0 : index
    %11 = vector.load %arg2[%c1_14, %c0_15, %c0_16] : memref<9x4x4xbf16, #tpu.memory_space<vmem>>, vector<1x4x4xbf16>
    %12 = vector.shape_cast %11 : vector<1x4x4xbf16> to vector<4x4xbf16>
    %cst_17 = arith.constant dense<0.000000e+00> : vector<64x4xf32>
    %13 = tpu.matmul %10, %12, %cst_17 {dimension_numbers = #tpu.dot_dimension_numbers<[1], [0], [0], [1], [0, 0, 1, 1], [], []>} : vector<64x4xbf16>, vector<4x4xbf16>, vector<64x4xf32> -> vector<64x4xf32>
    %14 = arith.addf %7, %13 : vector<64x4xf32>
    %c0_18 = arith.constant 0 : index
    %c0_19 = arith.constant 0 : index
    %c0_20 = arith.constant 0 : index
    %c1_21 = arith.constant 1 : index
    %c0_22 = arith.constant 0 : index
    %c0_23 = arith.constant 0 : index
    %15 = vector.load %arg1[%c0_18, %c0_19, %c0_20, %c1_21, %c0_22, %c0_23] : memref<1x9x2x9x2x4xbf16, #tpu.memory_space<vmem>>, vector<1x8x1x8x1x4xbf16>
    %16 = vector.shape_cast %15 : vector<1x8x1x8x1x4xbf16> to vector<8x8x4xbf16>
    %17 = vector.shape_cast %16 : vector<8x8x4xbf16> to vector<64x4xbf16>
    %c2 = arith.constant 2 : index
    %c0_24 = arith.constant 0 : index
    %c0_25 = arith.constant 0 : index
    %18 = vector.load %arg2[%c2, %c0_24, %c0_25] : memref<9x4x4xbf16, #tpu.memory_space<vmem>>, vector<1x4x4xbf16>
    %19 = vector.shape_cast %18 : vector<1x4x4xbf16> to vector<4x4xbf16>
    %cst_26 = arith.constant dense<0.000000e+00> : vector<64x4xf32>
    %20 = tpu.matmul %17, %19, %cst_26 {dimension_numbers = #tpu.dot_dimension_numbers<[1], [0], [0], [1], [0, 0, 1, 1], [], []>} : vector<64x4xbf16>, vector<4x4xbf16>, vector<64x4xf32> -> vector<64x4xf32>
    %21 = arith.addf %14, %20 : vector<64x4xf32>
    %c0_27 = arith.constant 0 : index
    %c0_28 = arith.constant 0 : index
    %c1_29 = arith.constant 1 : index
    %c0_30 = arith.constant 0 : index
    %c0_31 = arith.constant 0 : index
    %c0_32 = arith.constant 0 : index
    %22 = vector.load %arg1[%c0_27, %c0_28, %c1_29, %c0_30, %c0_31, %c0_32] : memref<1x9x2x9x2x4xbf16, #tpu.memory_space<vmem>>, vector<1x8x1x8x1x4xbf16>
    %23 = vector.shape_cast %22 : vector<1x8x1x8x1x4xbf16> to vector<8x8x4xbf16>
    %24 = vector.shape_cast %23 : vector<8x8x4xbf16> to vector<64x4xbf16>
    %c3 = arith.constant 3 : index
    %c0_33 = arith.constant 0 : index
    %c0_34 = arith.constant 0 : index
    %25 = vector.load %arg2[%c3, %c0_33, %c0_34] : memref<9x4x4xbf16, #tpu.memory_space<vmem>>, vector<1x4x4xbf16>
    %26 = vector.shape_cast %25 : vector<1x4x4xbf16> to vector<4x4xbf16>
    %cst_35 = arith.constant dense<0.000000e+00> : vector<64x4xf32>
    %27 = tpu.matmul %24, %26, %cst_35 {dimension_numbers = #tpu.dot_dimension_numbers<[1], [0], [0], [1], [0, 0, 1, 1], [], []>} : vector<64x4xbf16>, vector<4x4xbf16>, vector<64x4xf32> -> vector<64x4xf32>
    %28 = arith.addf %21, %27 : vector<64x4xf32>
    %c0_36 = arith.constant 0 : index
    %c0_37 = arith.constant 0 : index
    %c1_38 = arith.constant 1 : index
    %c0_39 = arith.constant 0 : index
    %c1_40 = arith.constant 1 : index
    %c0_41 = arith.constant 0 : index
    %29 = vector.load %arg1[%c0_36, %c0_37, %c1_38, %c0_39, %c1_40, %c0_41] : memref<1x9x2x9x2x4xbf16, #tpu.memory_space<vmem>>, vector<1x8x1x8x1x4xbf16>
    %30 = vector.shape_cast %29 : vector<1x8x1x8x1x4xbf16> to vector<8x8x4xbf16>
    %31 = vector.shape_cast %30 : vector<8x8x4xbf16> to vector<64x4xbf16>
    %c4 = arith.constant 4 : index
    %c0_42 = arith.constant 0 : index
    %c0_43 = arith.constant 0 : index
    %32 = vector.load %arg2[%c4, %c0_42, %c0_43] : memref<9x4x4xbf16, #tpu.memory_space<vmem>>, vector<1x4x4xbf16>
    %33 = vector.shape_cast %32 : vector<1x4x4xbf16> to vector<4x4xbf16>
    %cst_44 = arith.constant dense<0.000000e+00> : vector<64x4xf32>
    %34 = tpu.matmul %31, %33, %cst_44 {dimension_numbers = #tpu.dot_dimension_numbers<[1], [0], [0], [1], [0, 0, 1, 1], [], []>} : vector<64x4xbf16>, vector<4x4xbf16>, vector<64x4xf32> -> vector<64x4xf32>
    %35 = arith.addf %28, %34 : vector<64x4xf32>
    %c0_45 = arith.constant 0 : index
    %c0_46 = arith.constant 0 : index
    %c1_47 = arith.constant 1 : index
    %c1_48 = arith.constant 1 : index
    %c0_49 = arith.constant 0 : index
    %c0_50 = arith.constant 0 : index
    %36 = vector.load %arg1[%c0_45, %c0_46, %c1_47, %c1_48, %c0_49, %c0_50] : memref<1x9x2x9x2x4xbf16, #tpu.memory_space<vmem>>, vector<1x8x1x8x1x4xbf16>
    %37 = vector.shape_cast %36 : vector<1x8x1x8x1x4xbf16> to vector<8x8x4xbf16>
    %38 = vector.shape_cast %37 : vector<8x8x4xbf16> to vector<64x4xbf16>
    %c5 = arith.constant 5 : index
    %c0_51 = arith.constant 0 : index
    %c0_52 = arith.constant 0 : index
    %39 = vector.load %arg2[%c5, %c0_51, %c0_52] : memref<9x4x4xbf16, #tpu.memory_space<vmem>>, vector<1x4x4xbf16>
    %40 = vector.shape_cast %39 : vector<1x4x4xbf16> to vector<4x4xbf16>
    %cst_53 = arith.constant dense<0.000000e+00> : vector<64x4xf32>
    %41 = tpu.matmul %38, %40, %cst_53 {dimension_numbers = #tpu.dot_dimension_numbers<[1], [0], [0], [1], [0, 0, 1, 1], [], []>} : vector<64x4xbf16>, vector<4x4xbf16>, vector<64x4xf32> -> vector<64x4xf32>
    %42 = arith.addf %35, %41 : vector<64x4xf32>
    %c0_54 = arith.constant 0 : index
    %c1_55 = arith.constant 1 : index
    %c0_56 = arith.constant 0 : index
    %c0_57 = arith.constant 0 : index
    %c0_58 = arith.constant 0 : index
    %c0_59 = arith.constant 0 : index
    %43 = vector.load %arg1[%c0_54, %c1_55, %c0_56, %c0_57, %c0_58, %c0_59] : memref<1x9x2x9x2x4xbf16, #tpu.memory_space<vmem>>, vector<1x8x1x8x1x4xbf16>
    %44 = vector.shape_cast %43 : vector<1x8x1x8x1x4xbf16> to vector<8x8x4xbf16>
    %45 = vector.shape_cast %44 : vector<8x8x4xbf16> to vector<64x4xbf16>
    %c6 = arith.constant 6 : index
    %c0_60 = arith.constant 0 : index
    %c0_61 = arith.constant 0 : index
    %46 = vector.load %arg2[%c6, %c0_60, %c0_61] : memref<9x4x4xbf16, #tpu.memory_space<vmem>>, vector<1x4x4xbf16>
    %47 = vector.shape_cast %46 : vector<1x4x4xbf16> to vector<4x4xbf16>
    %cst_62 = arith.constant dense<0.000000e+00> : vector<64x4xf32>
    %48 = tpu.matmul %45, %47, %cst_62 {dimension_numbers = #tpu.dot_dimension_numbers<[1], [0], [0], [1], [0, 0, 1, 1], [], []>} : vector<64x4xbf16>, vector<4x4xbf16>, vector<64x4xf32> -> vector<64x4xf32>
    %49 = arith.addf %42, %48 : vector<64x4xf32>
    %c0_63 = arith.constant 0 : index
    %c1_64 = arith.constant 1 : index
    %c0_65 = arith.constant 0 : index
    %c0_66 = arith.constant 0 : index
    %c1_67 = arith.constant 1 : index
    %c0_68 = arith.constant 0 : index
    %50 = vector.load %arg1[%c0_63, %c1_64, %c0_65, %c0_66, %c1_67, %c0_68] : memref<1x9x2x9x2x4xbf16, #tpu.memory_space<vmem>>, vector<1x8x1x8x1x4xbf16>
    %51 = vector.shape_cast %50 : vector<1x8x1x8x1x4xbf16> to vector<8x8x4xbf16>
    %52 = vector.shape_cast %51 : vector<8x8x4xbf16> to vector<64x4xbf16>
    %c7 = arith.constant 7 : index
    %c0_69 = arith.constant 0 : index
    %c0_70 = arith.constant 0 : index
    %53 = vector.load %arg2[%c7, %c0_69, %c0_70] : memref<9x4x4xbf16, #tpu.memory_space<vmem>>, vector<1x4x4xbf16>
    %54 = vector.shape_cast %53 : vector<1x4x4xbf16> to vector<4x4xbf16>
    %cst_71 = arith.constant dense<0.000000e+00> : vector<64x4xf32>
    %55 = tpu.matmul %52, %54, %cst_71 {dimension_numbers = #tpu.dot_dimension_numbers<[1], [0], [0], [1], [0, 0, 1, 1], [], []>} : vector<64x4xbf16>, vector<4x4xbf16>, vector<64x4xf32> -> vector<64x4xf32>
    %56 = arith.addf %49, %55 : vector<64x4xf32>
    %c0_72 = arith.constant 0 : index
    %c1_73 = arith.constant 1 : index
    %c0_74 = arith.constant 0 : index
    %c1_75 = arith.constant 1 : index
    %c0_76 = arith.constant 0 : index
    %c0_77 = arith.constant 0 : index
    %57 = vector.load %arg1[%c0_72, %c1_73, %c0_74, %c1_75, %c0_76, %c0_77] : memref<1x9x2x9x2x4xbf16, #tpu.memory_space<vmem>>, vector<1x8x1x8x1x4xbf16>
    %58 = vector.shape_cast %57 : vector<1x8x1x8x1x4xbf16> to vector<8x8x4xbf16>
    %59 = vector.shape_cast %58 : vector<8x8x4xbf16> to vector<64x4xbf16>
    %c8 = arith.constant 8 : index
    %c0_78 = arith.constant 0 : index
    %c0_79 = arith.constant 0 : index
    %60 = vector.load %arg2[%c8, %c0_78, %c0_79] : memref<9x4x4xbf16, #tpu.memory_space<vmem>>, vector<1x4x4xbf16>
    %61 = vector.shape_cast %60 : vector<1x4x4xbf16> to vector<4x4xbf16>
    %cst_80 = arith.constant dense<0.000000e+00> : vector<64x4xf32>
    %62 = tpu.matmul %59, %61, %cst_80 {dimension_numbers = #tpu.dot_dimension_numbers<[1], [0], [0], [1], [0, 0, 1, 1], [], []>} : vector<64x4xbf16>, vector<4x4xbf16>, vector<64x4xf32> -> vector<64x4xf32>
    %63 = arith.addf %56, %62 : vector<64x4xf32>
    %c0_81 = arith.constant 0 : index
    %c0_82 = arith.constant 0 : index
    %64 = vector.load %arg3[%c0_81, %c0_82] : memref<1x4xf32, #tpu.memory_space<vmem>>, vector<1x4xf32>
    %65 = vector.broadcast %64 : vector<1x4xf32> to vector<64x4xf32>
    %66 = arith.addf %63, %65 : vector<64x4xf32>
    %cst_83 = arith.constant 0.000000e+00 : f32
    %67 = vector.broadcast %cst_83 : f32 to vector<64x4xf32>
    %68 = arith.maximumf %66, %67 : vector<64x4xf32>
    %69 = vector.shape_cast %68 : vector<64x4xf32> to vector<8x8x4xf32>
    %70 = arith.truncf %69 : vector<8x8x4xf32> to vector<8x8x4xbf16>
    %c0_84 = arith.constant 0 : index
    %c0_85 = arith.constant 0 : index
    %c0_86 = arith.constant 0 : index
    %c0_87 = arith.constant 0 : index
    %71 = vector.load %arg7[%c0_84, %c0_85, %c0_86, %c0_87] : memref<1x8x8x4xbf16, #tpu.memory_space<vmem>>, vector<1x8x8x4xbf16>
    %72 = vector.shape_cast %71 : vector<1x8x8x4xbf16> to vector<8x8x4xbf16>
    %73 = vector.shape_cast %70 : vector<8x8x4xbf16> to vector<1x8x8x4xbf16>
    tpu.vector_store %arg7[%c0_84, %c0_85, %c0_86, %c0_87], %73 {strides = array<i32>} : memref<1x8x8x4xbf16, #tpu.memory_space<vmem>>, vector<1x8x8x4xbf16>,
    %c0_88 = arith.constant 0 : index
    %c0_89 = arith.constant 0 : index
    %c0_90 = arith.constant 0 : index
    %c0_91 = arith.constant 0 : index
    %c0_92 = arith.constant 0 : index
    %c0_93 = arith.constant 0 : index
    %74 = vector.load %arg4[%c0_88, %c0_89, %c0_90, %c0_91, %c0_92, %c0_93] : memref<1x8x2x8x2x16xf32, #tpu.memory_space<vmem>>, vector<1x8x1x8x1x16xf32>
    %75 = vector.shape_cast %74 : vector<1x8x1x8x1x16xf32> to vector<8x8x16xf32>
    %76 = vector.shape_cast %75 : vector<8x8x16xf32> to vector<64x16xf32>
    %77 = arith.truncf %76 : vector<64x16xf32> to vector<64x16xbf16>
    %c0_94 = arith.constant 0 : index
    %c0_95 = arith.constant 0 : index
    %78 = vector.load %arg5[%c0_94, %c0_95] : memref<16x16xbf16, #tpu.memory_space<vmem>>, vector<16x16xbf16>
    %cst_96 = arith.constant dense<0.000000e+00> : vector<64x16xf32>
    %79 = tpu.matmul %77, %78, %cst_96 {dimension_numbers = #tpu.dot_dimension_numbers<[1], [0], [0], [1], [0, 0, 1, 1], [], []>} : vector<64x16xbf16>, vector<16x16xbf16>, vector<64x16xf32> -> vector<64x16xf32>
    %c0_97 = arith.constant 0 : index
    %c0_98 = arith.constant 0 : index
    %80 = vector.load %arg6[%c0_97, %c0_98] : memref<1x16xf32, #tpu.memory_space<vmem>>, vector<1x16xf32>
    %81 = vector.broadcast %80 : vector<1x16xf32> to vector<64x16xf32>
    %82 = arith.addf %79, %81 : vector<64x16xf32>
    %83 = vector.shape_cast %82 : vector<64x16xf32> to vector<8x8x16xf32>
    %c0_99 = arith.constant 0 : index
    %c0_100 = arith.constant 0 : index
    %c0_101 = arith.constant 0 : index
    %c0_102 = arith.constant 0 : index
    %84 = vector.load %arg8[%c0_99, %c0_100, %c0_101, %c0_102] : memref<1x8x8x16xf32, #tpu.memory_space<vmem>>, vector<1x8x8x16xf32>
    %85 = vector.shape_cast %84 : vector<1x8x8x16xf32> to vector<8x8x16xf32>
    %86 = vector.shape_cast %83 : vector<8x8x16xf32> to vector<1x8x8x16xf32>
    tpu.vector_store %arg8[%c0_99, %c0_100, %c0_101, %c0_102], %86 {strides = array<i32>} : memref<1x8x8x16xf32, #tpu.memory_space<vmem>>, vector<1x8x8x16xf32>,
    return
  }
  func.func @transform_0(%arg0: i32) -> (i32, i32, i32, i32, i32, i32) {
    %c0_i32 = arith.constant 0 : i32
    %c0_i32_0 = arith.constant 0 : i32
    %c0_i32_1 = arith.constant 0 : i32
    %c0_i32_2 = arith.constant 0 : i32
    %c0_i32_3 = arith.constant 0 : i32
    %c0_i32_4 = arith.constant 0 : i32
    return %arg0, %c0_i32, %c0_i32_0, %c0_i32_1, %c0_i32_2, %c0_i32_3 : i32, i32, i32, i32, i32, i32
  }
  func.func @transform_1(%arg0: i32) -> (i32, i32, i32) {
    %c0_i32 = arith.constant 0 : i32
    %c0_i32_0 = arith.constant 0 : i32
    %c0_i32_1 = arith.constant 0 : i32
    %c0_i32_2 = arith.constant 0 : i32
    return %c0_i32, %c0_i32_0, %c0_i32_1 : i32, i32, i32
  }
  func.func @transform_2(%arg0: i32) -> (i32, i32) {
    %c0_i32 = arith.constant 0 : i32
    %c0_i32_0 = arith.constant 0 : i32
    %c0_i32_1 = arith.constant 0 : i32
    return %c0_i32, %c0_i32_0 : i32, i32
  }
  func.func @transform_3(%arg0: i32) -> (i32, i32, i32, i32, i32, i32) {
    %c0_i32 = arith.constant 0 : i32
    %c0_i32_0 = arith.constant 0 : i32
    %c0_i32_1 = arith.constant 0 : i32
    %c0_i32_2 = arith.constant 0 : i32
    %c0_i32_3 = arith.constant 0 : i32
    %c0_i32_4 = arith.constant 0 : i32
    return %arg0, %c0_i32, %c0_i32_0, %c0_i32_1, %c0_i32_2, %c0_i32_3 : i32, i32, i32, i32, i32, i32
  }
  func.func @transform_4(%arg0: i32) -> (i32, i32) {
    %c0_i32 = arith.constant 0 : i32
    %c0_i32_0 = arith.constant 0 : i32
    %c0_i32_1 = arith.constant 0 : i32
    return %c0_i32, %c0_i32_0 : i32, i32
  }
  func.func @transform_5(%arg0: i32) -> (i32, i32) {
    %c0_i32 = arith.constant 0 : i32
    %c0_i32_0 = arith.constant 0 : i32
    %c0_i32_1 = arith.constant 0 : i32
    return %c0_i32, %c0_i32_0 : i32, i32
  }
  func.func @transform_6(%arg0: i32) -> (i32, i32, i32, i32) {
    %c0_i32 = arith.constant 0 : i32
    %c0_i32_0 = arith.constant 0 : i32
    %c0_i32_1 = arith.constant 0 : i32
    %c0_i32_2 = arith.constant 0 : i32
    return %arg0, %c0_i32, %c0_i32_0, %c0_i32_1 : i32, i32, i32, i32
  }
  func.func @transform_7(%arg0: i32) -> (i32, i32, i32, i32) {
    %c0_i32 = arith.constant 0 : i32
    %c0_i32_0 = arith.constant 0 : i32
    %c0_i32_1 = arith.constant 0 : i32
    %c0_i32_2 = arith.constant 0 : i32
    return %arg0, %c0_i32, %c0_i32_0, %c0_i32_1 : i32, i32, i32, i32
  }
}

module attributes {stable_mosaic.version = 11 : i64} {
  func.func @_mm_add_relu_preact_kernel(%arg0: i32, %arg1: memref<64x4xbf16, #tpu.memory_space<vmem>>, %arg2: memref<4x16xbf16, #tpu.memory_space<vmem>>, %arg3: memref<1x16xf32, #tpu.memory_space<vmem>>, %arg4: memref<64x16xf32, #tpu.memory_space<vmem>>, %arg5: memref<64x16xf32, #tpu.memory_space<vmem>>, %arg6: memref<64x16xf32, #tpu.memory_space<vmem>>) attributes {dimension_semantics = [#tpu.dimension_semantics<parallel>], iteration_bounds = array<i64: 2>, scalar_prefetch = 0 : i64, scratch_operands = 0 : i64, tpu.core_type = #tpu.core_type<tc>, window_params = [{transform_indices = @transform_0, window_bounds = array<i64: 64, 4>}, {pipeline_mode = #tpu.pipeline_mode<synchronous>, transform_indices = @transform_1, window_bounds = array<i64: 4, 16>}, {pipeline_mode = #tpu.pipeline_mode<synchronous>, transform_indices = @transform_2, window_bounds = array<i64: 1, 16>}, {transform_indices = @transform_3, window_bounds = array<i64: 64, 16>}, {transform_indices = @transform_4, window_bounds = array<i64: 64, 16>}, {transform_indices = @transform_5, window_bounds = array<i64: 64, 16>}]} {
    %c0 = arith.constant 0 : index
    %c0_0 = arith.constant 0 : index
    %0 = vector.load %arg1[%c0, %c0_0] : memref<64x4xbf16, #tpu.memory_space<vmem>>, vector<64x4xbf16>
    %c0_1 = arith.constant 0 : index
    %c0_2 = arith.constant 0 : index
    %1 = vector.load %arg2[%c0_1, %c0_2] : memref<4x16xbf16, #tpu.memory_space<vmem>>, vector<4x16xbf16>
    %cst = arith.constant dense<0.000000e+00> : vector<64x16xf32>
    %2 = tpu.matmul %0, %1, %cst {dimension_numbers = #tpu.dot_dimension_numbers<[1], [0], [0], [1], [0, 0, 1, 1], [], []>} : vector<64x4xbf16>, vector<4x16xbf16>, vector<64x16xf32> -> vector<64x16xf32>
    %c0_3 = arith.constant 0 : index
    %c0_4 = arith.constant 0 : index
    %3 = vector.load %arg3[%c0_3, %c0_4] : memref<1x16xf32, #tpu.memory_space<vmem>>, vector<1x16xf32>
    %4 = vector.broadcast %3 : vector<1x16xf32> to vector<64x16xf32>
    %5 = arith.addf %2, %4 : vector<64x16xf32>
    %c0_5 = arith.constant 0 : index
    %c0_6 = arith.constant 0 : index
    %6 = vector.load %arg4[%c0_5, %c0_6] : memref<64x16xf32, #tpu.memory_space<vmem>>, vector<64x16xf32>
    %7 = arith.addf %5, %6 : vector<64x16xf32>
    %c0_7 = arith.constant 0 : index
    %c0_8 = arith.constant 0 : index
    %8 = vector.load %arg6[%c0_7, %c0_8] : memref<64x16xf32, #tpu.memory_space<vmem>>, vector<64x16xf32>
    tpu.vector_store %arg6[%c0_7, %c0_8], %7 {strides = array<i32>} : memref<64x16xf32, #tpu.memory_space<vmem>>, vector<64x16xf32>,
    %cst_9 = arith.constant 0.000000e+00 : f32
    %9 = vector.broadcast %cst_9 : f32 to vector<64x16xf32>
    %10 = arith.maximumf %7, %9 : vector<64x16xf32>
    %c0_10 = arith.constant 0 : index
    %c0_11 = arith.constant 0 : index
    %11 = vector.load %arg5[%c0_10, %c0_11] : memref<64x16xf32, #tpu.memory_space<vmem>>, vector<64x16xf32>
    tpu.vector_store %arg5[%c0_10, %c0_11], %10 {strides = array<i32>} : memref<64x16xf32, #tpu.memory_space<vmem>>, vector<64x16xf32>,
    return
  }
  func.func @transform_0(%arg0: i32) -> (i32, i32) {
    %c0_i32 = arith.constant 0 : i32
    %c0_i32_0 = arith.constant 0 : i32
    return %arg0, %c0_i32 : i32, i32
  }
  func.func @transform_1(%arg0: i32) -> (i32, i32) {
    %c0_i32 = arith.constant 0 : i32
    %c0_i32_0 = arith.constant 0 : i32
    %c0_i32_1 = arith.constant 0 : i32
    return %c0_i32, %c0_i32_0 : i32, i32
  }
  func.func @transform_2(%arg0: i32) -> (i32, i32) {
    %c0_i32 = arith.constant 0 : i32
    %c0_i32_0 = arith.constant 0 : i32
    %c0_i32_1 = arith.constant 0 : i32
    return %c0_i32, %c0_i32_0 : i32, i32
  }
  func.func @transform_3(%arg0: i32) -> (i32, i32) {
    %c0_i32 = arith.constant 0 : i32
    %c0_i32_0 = arith.constant 0 : i32
    return %arg0, %c0_i32 : i32, i32
  }
  func.func @transform_4(%arg0: i32) -> (i32, i32) {
    %c0_i32 = arith.constant 0 : i32
    %c0_i32_0 = arith.constant 0 : i32
    return %arg0, %c0_i32 : i32, i32
  }
  func.func @transform_5(%arg0: i32) -> (i32, i32) {
    %c0_i32 = arith.constant 0 : i32
    %c0_i32_0 = arith.constant 0 : i32
    return %arg0, %c0_i32 : i32, i32
  }
}

</mosaic_0001>

<bundles_post_ra>
// kernel: bottleneck_forward.3
= control target key start
LH: loop header
LB: loop body
LE: loop exit
PB: predicated region body
PF: predicated region fallthrough
CT: control target
= control target key end

     0   :  { %s880_s12 = smov 0   ;;  %s1057_s0 = inlined_call_operand.vmem [shape: f32[512,16], index: 0, kind: input, shape index: {}]   ;;  %s1058_s1 = inlined_call_operand.vmem [shape: bf16[16,4], index: 1, kind: input, shape index: {}]   ;;  %s1059_s2 = inlined_call_operand.vmem [shape: f32[1,4], index: 2, kind: input, shape index: {}]   ;;  %s1060_s3 = inlined_call_operand.vmem [shape: bf16[512,4], index: 3, kind: output, shape index: {}]  }
   0x1 LB: > { %s697_s13 = sadd.s32 4294967295, %s858_s12   ;;  %p701_p0 = scmp.ge.s32.totalorder %s858_s12, 1  ;;  %s858_s12 = sphi %s880_s12, %s13_s12  }
   0x2   : > { %p138_p1 = scmp.lt.s32.totalorder %s858_s12, 3 }
   0x4   : > { %p139_p2 = pnand %p701_p0, %p138_p1 }
   0x5   : > { %v851_v0 = vld [vmem:[%s1058_s1] sm:$0xff] (!%p139_p2)   ;;  %s702_s16 = sshll.u32 (!%p139_p2), %s697_s13, 5  ;;  %vm238_vm0 = vcmask (!%p139_p2), 130048   ;;  %vm608_vm1 = vcmask (!%p139_p2), 27648  }
   0x6   : > { %142 = sbr.rel (%p139_p2) target bundleno = 267 (0x10b), region = 32  ;;  %p163_p3 = scmp.lt.s32.totalorder (!%p139_p2), %s702_s16, 63  ;;  %807 = vmatprep.subr.bf16.mxu0 (!%p139_p2), %v851_v0  ;;  %841 = vmatprep.subr.bf16.mxu1 (!%p139_p2), %v851_v0  ;;  %v950_v49 = vld [vmem:[%s1059_s2] ss:$0 sm:$0xff] (!%p139_p2) }
   0x7   : > { %808 = vmatpush3.bf16.msra.mxu0 (!%p139_p2), %v851_v0  ;;  %842 = vmatpush3.bf16.msra.mxu1 (!%p139_p2), %v851_v0 }
   0xd   : > { %s1062_s16 = smov (!%p163_p3, %s702_s16), 63 }
   0xe   : > { %s703_s17 = sshll.u32 %s1062_s16, 3  ;;  %s705_s23 = sshll.u32 %s1062_s16, 2 }
   0xf   : > { %s897_s20 = scalar_lea.vmem %s1057_s0, %s703_s17  ;;  %s961_s26 = scalar_lea.vmem %s1060_s3, %s705_s23 }
  0x10   : > { %v175_v1 = vld [vmem:[%s897_s20] sm:$0xff]  ;;  %v176_v2 = vld [vmem:[%s897_s20 + $0x8] sm:$0xff]  ;;  %v177_v6 = vld [vmem:[%s897_s20 + $0x10] sm:$0xff] }
  0x11   : > { %v191_v3 = vld [vmem:[%s897_s20 + $0x80] sm:$0xff]  ;;  %v207_v4 = vpack.c.bf16 %v176_v2, %v175_v1  ;;  %v192_v5 = vld [vmem:[%s897_s20 + $0x88] sm:$0xff]  ;;  %v178_v7 = vld [vmem:[%s897_s20 + $0x18] sm:$0xff] }
  0x12   : > { %v215_v8 = vpack.c.bf16 %v192_v5, %v191_v3  ;;  %v208_v9 = vpack.c.bf16 %v178_v7, %v177_v6  ;;  %v193_v10 = vld [vmem:[%s897_s20 + $0x90] sm:$0xff]  ;;  %v194_v11 = vld [vmem:[%s897_s20 + $0x98] sm:$0xff]  ;;  %v179_v12 = vld [vmem:[%s897_s20 + $0x20] sm:$0xff] }
  0x13   : > { %809 = vmatprep.mubr.msk.bf16.mxu0 %vm238_vm0, %v207_v4  ;;  %v216_v13 = vpack.c.bf16 %v194_v11, %v193_v10  ;;  %v180_v14 = vld [vmem:[%s897_s20 + $0x28] sm:$0xff]  ;;  %v195_v15 = vld [vmem:[%s897_s20 + $0xa0] sm:$0xff]  ;;  %v181_v19 = vld [vmem:[%s897_s20 + $0x30] sm:$0xff] }
  0x14   : > { %v196_v16 = vld [vmem:[%s897_s20 + $0xa8] sm:$0xff]  ;;  %825 = vmatprep.mubr.msk.bf16.mxu1 %vm238_vm0, %v215_v8  ;;  %810 = vmatmul.mubr.msk.bf16.vlgmr.msra.gmra.mrb[0].mxu0 %vm238_vm0, %v208_v9  ;;  %v209_v17 = vpack.c.bf16 %v180_v14, %v179_v12  ;;  %v182_v20 = vld [vmem:[%s897_s20 + $0x38] sm:$0xff]  ;;  %v197_v21 = vld [vmem:[%s897_s20 + $0xb0] sm:$0xff] }
  0x15   : > { %v217_v18 = vpack.c.bf16 %v196_v16, %v195_v15  ;;  %826 = vmatmul.mubr.msk.bf16.vlgmr.msra.gmra.mrb[0].mxu1 %vm238_vm0, %v216_v13  ;;  %v198_v22 = vld [vmem:[%s897_s20 + $0xb8] sm:$0xff]  ;;  %v183_v23 = vld [vmem:[%s897_s20 + $0x40] sm:$0xff]  ;;  %v184_v24 = vld [vmem:[%s897_s20 + $0x48] sm:$0xff]  ;;  %v210_v27 = vpack.c.bf16 %v182_v20, %v181_v19 }
  0x16   : > { %813 = vmatprep.mubr.msk.bf16.mxu0 %vm238_vm0, %v209_v17  ;;  %v199_v25 = vld [vmem:[%s897_s20 + $0xc0] sm:$0xff]  ;;  %v200_v26 = vld [vmem:[%s897_s20 + $0xc8] sm:$0xff]  ;;  %v218_v28 = vpack.c.bf16 %v198_v22, %v197_v21  ;;  %v211_v29 = vpack.c.bf16 %v184_v24, %v183_v23  ;;  %v185_v31 = vld [vmem:[%s897_s20 + $0x50] sm:$0xff] }
  0x17   : > { %829 = vmatprep.mubr.msk.bf16.mxu1 %vm238_vm0, %v217_v18  ;;  %v219_v30 = vpack.c.bf16 %v200_v26, %v199_v25  ;;  %v186_v32 = vld [vmem:[%s897_s20 + $0x58] sm:$0xff]  ;;  %v201_v33 = vld [vmem:[%s897_s20 + $0xd0] sm:$0xff]  ;;  %v187_v35 = vld [vmem:[%s897_s20 + $0x60] sm:$0xff] }
  0x18   : > { %v202_v34 = vld [vmem:[%s897_s20 + $0xd8] sm:$0xff]  ;;  %v188_v36 = vld [vmem:[%s897_s20 + $0x68] sm:$0xff]  ;;  %v203_v37 = vld [vmem:[%s897_s20 + $0xe0] sm:$0xff]  ;;  %v212_v39 = vpack.c.bf16 %v186_v32, %v185_v31 }
  0x19   : > { %v204_v38 = vld [vmem:[%s897_s20 + $0xe8] sm:$0xff]  ;;  %v220_v40 = vpack.c.bf16 %v202_v34, %v201_v33  ;;  %v213_v41 = vpack.c.bf16 %v188_v36, %v187_v35  ;;  %v189_v43 = vld [vmem:[%s897_s20 + $0x70] sm:$0xff]  ;;  %v190_v44 = vld [vmem:[%s897_s20 + $0x78] sm:$0xff] }
  0x1a   : > { %v221_v42 = vpack.c.bf16 %v204_v38, %v203_v37  ;;  %v205_v45 = vld [vmem:[%s897_s20 + $0xf0] sm:$0xff]  ;;  %v206_v46 = vld [vmem:[%s897_s20 + $0xf8] sm:$0xff]  ;;  %v214_v47 = vpack.c.bf16 %v190_v44, %v189_v43 }
  0x1b   : > { %v222_v48 = vpack.c.bf16 %v206_v46, %v205_v45 }
  0x1c   : > { %814 = vmatmul.mubr.msk.bf16.gmra.mrb[4].mxu0 %vm238_vm0, %v210_v27 }
  0x1d   : > { %830 = vmatmul.mubr.msk.bf16.gmra.mrb[4].mxu1 %vm238_vm0, %v218_v28  ;;  %817 = vmatprep.mubr.msk.bf16.mxu0 %vm238_vm0, %v211_v29 }
  0x1e   : > { %833 = vmatprep.mubr.msk.bf16.mxu1 %vm238_vm0, %v219_v30 }
  0x24   : > { %818 = vmatmul.mubr.msk.bf16.gmra.mrb[8].mxu0 %vm238_vm0, %v212_v39 }
  0x25   : > { %834 = vmatmul.mubr.msk.bf16.gmra.mrb[8].mxu1 %vm238_vm0, %v220_v40  ;;  %821 = vmatprep.mubr.msk.bf16.mxu0 %vm238_vm0, %v213_v41 }
  0x26   : > { %837 = vmatprep.mubr.msk.bf16.mxu1 %vm238_vm0, %v221_v42 }
  0x2c   : > { %822 = vmatmul.mubr.msk.bf16.gmra.mrb[12].mxu0 %vm238_vm0, %v214_v47 }
  0x2d   : > { %838 = vmatmul.mubr.msk.bf16.gmra.mrb[12].mxu1 %vm238_vm0, %v222_v48 }
  0xe7   : > { %v811_v50 = vpop.f32.mrb[0].mxu0 }
  0xe8   : > { %v330_v51 = vadd.f32 %v811_v50, %v950_v49  ;;  %v827_v52 = vpop.f32.mrb[0].mxu1  ;;  %v321_v53 = vpop.f32.mrb[1].mxu0 }
  0xe9   : > { %v394_v54 = vadd.f32 %v827_v52, %v950_v49  ;;  %v322_v55 = vadd.f32 %v950_v49, %v321_v53  ;;  %v385_v56 = vpop.f32.mrb[1].mxu1  ;;  %v812_v57 = vpop.f32.mrb[2].mxu0 }
  0xea   : > { %v450_v58 = vmax.f32 %v330_v51, 0.0  ;;  %v386_v59 = vadd.f32 %v950_v49, %v385_v56  ;;  %v333_v60 = vadd.f32 %v812_v57, %v950_v49  ;;  %v828_v61 = vpop.f32.mrb[2].mxu1  ;;  %v324_v62 = vpop.f32.mrb[3].mxu0 }
  0xeb   : > { %v466_v63 = vmax.f32 %v394_v54, 0.0  ;;  %v448_v0 = vmax.f32 %v322_v55, 0.0  ;;  %v397_v1 = vadd.f32 %v828_v61, %v950_v49  ;;  %v325_v2 = vadd.f32 %v950_v49, %v324_v62  ;;  %v388_v3 = vpop.f32.mrb[3].mxu1 }
  0xec   : > { %v760_v4 = vpack.c.bf16 %v450_v58, %v450_v58  ;;  %v464_v5 = vmax.f32 %v386_v59, 0.0  ;;  %v451_v6 = vmax.f32 %v333_v60, 0.0  ;;  %v389_v7 = vadd.f32 %v950_v49, %v388_v3 }
  0xed   : > { %v776_v8 = vpack.c.bf16 %v466_v63, %v466_v63  ;;  %v758_v9 = vpack.c.bf16 %v448_v0, %v448_v0  ;;  %v467_v10 = vmax.f32 %v397_v1, 0.0  ;;  %v449_v11 = vmax.f32 %v325_v2, 0.0 }
  0xee   : > { %611 = vst.msk [vmem:[%s961_s26 + $0x8] sm:$0xf] %vm608_vm1, %v760_v4  ;;  %v774_v12 = vpack.c.bf16 %v464_v5, %v464_v5  ;;  %v761_v13 = vpack.c.bf16 %v451_v6, %v451_v6  ;;  %v465_v14 = vmax.f32 %v389_v7, 0.0 }
  0xef   : > { %627 = vst.msk [vmem:[%s961_s26 + $0x48] sm:$0xf] %vm608_vm1, %v776_v8  ;;  %609 = vst.msk [vmem:[%s961_s26] sm:$0xf] %vm608_vm1, %v758_v9  ;;  %v777_v15 = vpack.c.bf16 %v467_v10, %v467_v10  ;;  %v759_v16 = vpack.c.bf16 %v449_v11, %v449_v11  ;;  %v815_v17 = vpop.f32.mrb[4].mxu0 }
  0xf0   : > { %625 = vst.msk [vmem:[%s961_s26 + $0x40] sm:$0xf] %vm608_vm1, %v774_v12  ;;  %612 = vst.msk [vmem:[%s961_s26 + $0xc] sm:$0xf] %vm608_vm1, %v761_v13  ;;  %v775_v18 = vpack.c.bf16 %v465_v14, %v465_v14  ;;  %v346_v19 = vadd.f32 %v815_v17, %v950_v49  ;;  %v831_v20 = vpop.f32.mrb[4].mxu1  ;;  %v337_v21 = vpop.f32.mrb[5].mxu0 }
  0xf1   : > { %628 = vst.msk [vmem:[%s961_s26 + $0x4c] sm:$0xf] %vm608_vm1, %v777_v15  ;;  %610 = vst.msk [vmem:[%s961_s26 + $0x4] sm:$0xf] %vm608_vm1, %v759_v16  ;;  %v410_v22 = vadd.f32 %v831_v20, %v950_v49  ;;  %v338_v23 = vadd.f32 %v950_v49, %v337_v21  ;;  %v401_v24 = vpop.f32.mrb[5].mxu1  ;;  %v816_v25 = vpop.f32.mrb[6].mxu0 }
  0xf2   : > { %626 = vst.msk [vmem:[%s961_s26 + $0x44] sm:$0xf] %vm608_vm1, %v775_v18  ;;  %v454_v26 = vmax.f32 %v346_v19, 0.0  ;;  %v402_v27 = vadd.f32 %v950_v49, %v401_v24  ;;  %v349_v28 = vadd.f32 %v816_v25, %v950_v49  ;;  %v832_v29 = vpop.f32.mrb[6].mxu1  ;;  %v340_v30 = vpop.f32.mrb[7].mxu0 }
  0xf3   : > { %v470_v31 = vmax.f32 %v410_v22, 0.0  ;;  %v452_v32 = vmax.f32 %v338_v23, 0.0  ;;  %v413_v33 = vadd.f32 %v832_v29, %v950_v49  ;;  %v341_v34 = vadd.f32 %v950_v49, %v340_v30  ;;  %v404_v35 = vpop.f32.mrb[7].mxu1 }
  0xf4   : > { %v764_v36 = vpack.c.bf16 %v454_v26, %v454_v26  ;;  %v468_v37 = vmax.f32 %v402_v27, 0.0  ;;  %v455_v38 = vmax.f32 %v349_v28, 0.0  ;;  %v405_v39 = vadd.f32 %v950_v49, %v404_v35 }
  0xf5   : > { %v780_v40 = vpack.c.bf16 %v470_v31, %v470_v31  ;;  %v762_v41 = vpack.c.bf16 %v452_v32, %v452_v32  ;;  %v471_v42 = vmax.f32 %v413_v33, 0.0  ;;  %v453_v43 = vmax.f32 %v341_v34, 0.0 }
  0xf6   : > { %615 = vst.msk [vmem:[%s961_s26 + $0x18] sm:$0xf] %vm608_vm1, %v764_v36  ;;  %v778_v44 = vpack.c.bf16 %v468_v37, %v468_v37  ;;  %v765_v45 = vpack.c.bf16 %v455_v38, %v455_v38  ;;  %v469_v46 = vmax.f32 %v405_v39, 0.0 }
  0xf7   : > { %631 = vst.msk [vmem:[%s961_s26 + $0x58] sm:$0xf] %vm608_vm1, %v780_v40  ;;  %613 = vst.msk [vmem:[%s961_s26 + $0x10] sm:$0xf] %vm608_vm1, %v762_v41  ;;  %v781_v47 = vpack.c.bf16 %v471_v42, %v471_v42  ;;  %v763_v48 = vpack.c.bf16 %v453_v43, %v453_v43  ;;  %v819_v50 = vpop.f32.mrb[8].mxu0 }
  0xf8   : > { %629 = vst.msk [vmem:[%s961_s26 + $0x50] sm:$0xf] %vm608_vm1, %v778_v44  ;;  %616 = vst.msk [vmem:[%s961_s26 + $0x1c] sm:$0xf] %vm608_vm1, %v765_v45  ;;  %v779_v51 = vpack.c.bf16 %v469_v46, %v469_v46  ;;  %v362_v52 = vadd.f32 %v819_v50, %v950_v49  ;;  %v835_v53 = vpop.f32.mrb[8].mxu1  ;;  %v353_v54 = vpop.f32.mrb[9].mxu0 }
  0xf9   : > { %632 = vst.msk [vmem:[%s961_s26 + $0x5c] sm:$0xf] %vm608_vm1, %v781_v47  ;;  %614 = vst.msk [vmem:[%s961_s26 + $0x14] sm:$0xf] %vm608_vm1, %v763_v48  ;;  %v426_v55 = vadd.f32 %v835_v53, %v950_v49  ;;  %v354_v56 = vadd.f32 %v950_v49, %v353_v54  ;;  %v417_v57 = vpop.f32.mrb[9].mxu1  ;;  %v820_v58 = vpop.f32.mrb[10].mxu0 }
  0xfa   : > { %630 = vst.msk [vmem:[%s961_s26 + $0x54] sm:$0xf] %vm608_vm1, %v779_v51  ;;  %v458_v59 = vmax.f32 %v362_v52, 0.0  ;;  %v418_v60 = vadd.f32 %v950_v49, %v417_v57  ;;  %v365_v61 = vadd.f32 %v820_v58, %v950_v49  ;;  %v836_v62 = vpop.f32.mrb[10].mxu1  ;;  %v356_v63 = vpop.f32.mrb[11].mxu0 }
  0xfb   : > { %v474_v0 = vmax.f32 %v426_v55, 0.0  ;;  %v456_v1 = vmax.f32 %v354_v56, 0.0  ;;  %v429_v2 = vadd.f32 %v836_v62, %v950_v49  ;;  %v357_v3 = vadd.f32 %v950_v49, %v356_v63  ;;  %v420_v4 = vpop.f32.mrb[11].mxu1 }
  0xfc   : > { %v768_v5 = vpack.c.bf16 %v458_v59, %v458_v59  ;;  %v472_v6 = vmax.f32 %v418_v60, 0.0  ;;  %v459_v7 = vmax.f32 %v365_v61, 0.0  ;;  %v421_v8 = vadd.f32 %v950_v49, %v420_v4 }
  0xfd   : > { %v784_v9 = vpack.c.bf16 %v474_v0, %v474_v0  ;;  %v766_v10 = vpack.c.bf16 %v456_v1, %v456_v1  ;;  %v475_v11 = vmax.f32 %v429_v2, 0.0  ;;  %v457_v12 = vmax.f32 %v357_v3, 0.0 }
  0xfe   : > { %619 = vst.msk [vmem:[%s961_s26 + $0x28] sm:$0xf] %vm608_vm1, %v768_v5  ;;  %v782_v13 = vpack.c.bf16 %v472_v6, %v472_v6  ;;  %v769_v14 = vpack.c.bf16 %v459_v7, %v459_v7  ;;  %v473_v15 = vmax.f32 %v421_v8, 0.0 }
  0xff   : > { %635 = vst.msk [vmem:[%s961_s26 + $0x68] sm:$0xf] %vm608_vm1, %v784_v9  ;;  %617 = vst.msk [vmem:[%s961_s26 + $0x20] sm:$0xf] %vm608_vm1, %v766_v10  ;;  %v785_v16 = vpack.c.bf16 %v475_v11, %v475_v11  ;;  %v767_v17 = vpack.c.bf16 %v457_v12, %v457_v12  ;;  %v823_v18 = vpop.f32.mrb[12].mxu0 }
 0x100   : > { %633 = vst.msk [vmem:[%s961_s26 + $0x60] sm:$0xf] %vm608_vm1, %v782_v13  ;;  %620 = vst.msk [vmem:[%s961_s26 + $0x2c] sm:$0xf] %vm608_vm1, %v769_v14  ;;  %v783_v19 = vpack.c.bf16 %v473_v15, %v473_v15  ;;  %v378_v20 = vadd.f32 %v823_v18, %v950_v49  ;;  %v839_v21 = vpop.f32.mrb[12].mxu1  ;;  %v369_v22 = vpop.f32.mrb[13].mxu0 }
 0x101   : > { %636 = vst.msk [vmem:[%s961_s26 + $0x6c] sm:$0xf] %vm608_vm1, %v785_v16  ;;  %618 = vst.msk [vmem:[%s961_s26 + $0x24] sm:$0xf] %vm608_vm1, %v767_v17  ;;  %v442_v23 = vadd.f32 %v839_v21, %v950_v49  ;;  %v370_v24 = vadd.f32 %v950_v49, %v369_v22  ;;  %v433_v25 = vpop.f32.mrb[13].mxu1  ;;  %v824_v26 = vpop.f32.mrb[14].mxu0 }
 0x102   : > { %634 = vst.msk [vmem:[%s961_s26 + $0x64] sm:$0xf] %vm608_vm1, %v783_v19  ;;  %v462_v27 = vmax.f32 %v378_v20, 0.0  ;;  %v434_v28 = vadd.f32 %v950_v49, %v433_v25  ;;  %v381_v29 = vadd.f32 %v824_v26, %v950_v49  ;;  %v840_v30 = vpop.f32.mrb[14].mxu1  ;;  %v372_v31 = vpop.f32.mrb[15].mxu0 }
 0x103   : > { %v478_v32 = vmax.f32 %v442_v23, 0.0  ;;  %v460_v33 = vmax.f32 %v370_v24, 0.0  ;;  %v445_v34 = vadd.f32 %v840_v30, %v950_v49  ;;  %v373_v35 = vadd.f32 %v950_v49, %v372_v31  ;;  %v436_v36 = vpop.f32.mrb[15].mxu1 }
 0x104   : > { %v772_v37 = vpack.c.bf16 %v462_v27, %v462_v27  ;;  %v476_v38 = vmax.f32 %v434_v28, 0.0  ;;  %v463_v39 = vmax.f32 %v381_v29, 0.0  ;;  %v437_v40 = vadd.f32 %v950_v49, %v436_v36 }
 0x105   : > { %v788_v41 = vpack.c.bf16 %v478_v32, %v478_v32  ;;  %v770_v42 = vpack.c.bf16 %v460_v33, %v460_v33  ;;  %v479_v43 = vmax.f32 %v445_v34, 0.0  ;;  %v461_v44 = vmax.f32 %v373_v35, 0.0 }
 0x106   : > { %623 = vst.msk [vmem:[%s961_s26 + $0x38] sm:$0xf] %vm608_vm1, %v772_v37  ;;  %v786_v45 = vpack.c.bf16 %v476_v38, %v476_v38  ;;  %v773_v46 = vpack.c.bf16 %v463_v39, %v463_v39  ;;  %v477_v47 = vmax.f32 %v437_v40, 0.0 }
 0x107   : > { %639 = vst.msk [vmem:[%s961_s26 + $0x78] sm:$0xf] %vm608_vm1, %v788_v41  ;;  %621 = vst.msk [vmem:[%s961_s26 + $0x30] sm:$0xf] %vm608_vm1, %v770_v42  ;;  %v789_v48 = vpack.c.bf16 %v479_v43, %v479_v43  ;;  %v771_v50 = vpack.c.bf16 %v461_v44, %v461_v44 }
 0x108   : > { %637 = vst.msk [vmem:[%s961_s26 + $0x70] sm:$0xf] %vm608_vm1, %v786_v45  ;;  %624 = vst.msk [vmem:[%s961_s26 + $0x3c] sm:$0xf] %vm608_vm1, %v773_v46  ;;  %v787_v49 = vpack.c.bf16 %v477_v47, %v477_v47 }
 0x109   : > { %640 = vst.msk [vmem:[%s961_s26 + $0x7c] sm:$0xf] %vm608_vm1, %v789_v48  ;;  %622 = vst.msk [vmem:[%s961_s26 + $0x34] sm:$0xf] %vm608_vm1, %v771_v50 }
 0x10a   : > { %638 = vst.msk [vmem:[%s961_s26 + $0x74] sm:$0xf] %vm608_vm1, %v787_v49 }
 0x10b PF: > { %s13_s12 = sadd.s32 1, %s858_s12  }
 0x10c   : > { %p10_p4 = scmp.ge.s32.totalorder %s13_s12, 4  }
 0x10e   :  { %12 = sbr.rel (!%p10_p4) target bundleno = 1 (0x1), region = 62 }

// kernel: bottleneck_forward.5
= control target key start
LH: loop header
LB: loop body
LE: loop exit
PB: predicated region body
PF: predicated region fallthrough
CT: control target
= control target key end

     0   :  { %11 = vsyncpa [#allocation3], 0  ;;  %s986_s0 = inlined_call_operand.vmem [shape: bf16[128,4], index: 0, kind: input, shape index: {}]   ;;  %s987_s1 = inlined_call_operand.vmem [shape: bf16[4,16], index: 1, kind: input, shape index: {}]   ;;  %s988_s2 = inlined_call_operand.vmem [shape: f32[1,16], index: 2, kind: input, shape index: {}]   ;;  %s989_s3 = inlined_call_operand.vmem [shape: f32[128,16], index: 3, kind: input, shape index: {}]   ;;  %s990_s4 = inlined_call_operand.hbm [shape: f32[128,16], index: 4, kind: output, shape index: {0}]   ;;  %s991_s5 = inlined_call_operand.hbm [shape: f32[128,16], index: 5, kind: output, shape index: {1}]  }
   0x1   :  { %13 = vsyncpa [#allocation3 + $0x1], 0 }
   0x2   :  { %14 = vsyncpa [#allocation5], 0 }
   0x3   :  { %16 = vsyncpa [#allocation5 + $0x1], 0  ;;  %s789_s18 = smov 0   ;;  %s791_s19 = smov 0  }
   0x4   :  { %s793_s20 = smov 0   ;;  %s795_s21 = smov 0  }
   0x5 LB: > { %s810_s22 = sadd.s32 4294967295, %s753_s21   ;;  %s561_s23 = sadd.s32 4294967294, %s753_s21   ;;  %s753_s21 = sphi %s795_s21, %s997_s21   ;;  %s749_s20 = sphi %s793_s20, %s996_s20   ;;  %s745_s19 = sphi %s791_s19, %s995_s19   ;;  %s741_s18 = sphi %s789_s18, %s994_s18  }
   0x6   : > { %s814_s24 = sadd.s32 1, %s753_s21   ;;  %s123_s25 = sadd.s32 1, %s749_s20 }
   0x7   : > { %s120_s26 = ssub.s32 %s753_s21, %s814_s24  ;;  %p133_p0 = scmp.ne.s32.totalorder %s749_s20, %s745_s19 }
   0x8   : > { %p121_p1 = scmp.eq.s32.totalorder %s120_s26, 0  ;;  %p134_p2 = scmp.eq.s32.totalorder %s810_s22, 1 }
   0x9   : > { %p139_p3 = scmp.ne.s32.totalorder %s745_s19, %s741_s18  ;;  %p140_p4 = scmp.eq.s32.totalorder %s561_s23, 1 }
   0xa   : > { %s825_s27 = scalar_select %p121_p1, %s749_s20, %s123_s25  }
   0xb   : > { %p827_p5 = por %p134_p2, %p133_p0  ;;  %p831_p6 = por %p140_p4, %p139_p3 }
   0xc   : > { %p564_p7 = scmp.ge.s32.totalorder %s753_s21, 1  ;;  %p208_p8 = scmp.lt.s32.totalorder %s753_s21, 3 }
   0xe   : > { %p209_p9 = pnand %p564_p7, %p208_p8 }
   0xf   : > { %v269_v0 = vld [vmem:[%s987_s1] sm:$0x3] (!%p209_p9)  ;;  %vm310_vm0 = vcmask (!%p209_p9), 1041408   ;;  %s567_s7 = sshll.u32 (!%p209_p9), %s810_s22, 3  ;;  %vm297_vm1 = vcmask (!%p209_p9), 31744   ;;  %s845_s13 = sand.u32 (!%p209_p9), 1, %s745_s19  }
  0x10   : > { %212 = sbr.rel (%p209_p9) target bundleno = 289 (0x121), region = 36  ;;  %607 = vmatprep.subr.msk.bf16.mxu0 (!%p209_p9), %vm310_vm0, %v269_v0  ;;  %608 = vmatprep.subr.msk.bf16.mxu1 (!%p209_p9), %vm310_vm0, %v269_v0  ;;  %v312_v1 = vsel (!%p209_p9), %vm310_vm0, %v269_v0, 0  ;;  %p247_p10 = scmp.lt.s32.totalorder (!%p209_p9), %s567_s7, 15  ;;  %v571_v6 = vld [vmem:[%s988_s2] ss:$0 sm:$0xff] (!%p209_p9)  ;;  %vm395_vm2 = vcmask (!%p209_p9), 130048  }
  0x11   : > { %596 = vmatpush3.bf16.msra.mxu0 (!%p209_p9), %v312_v1  ;;  %606 = vmatpush3.bf16.msra.mxu1 (!%p209_p9), %v312_v1  ;;  %s565_s25 = sshll.u32 (!%p209_p9), %s845_s13, 6  ;;  %s588_s26 = sshll.u32 (!%p209_p9), %s810_s22, 10 }
  0x12   : > { %s857_s30 = scalar_lea.vmem (!%p209_p9), [#allocation4], %s565_s25  ;;  %s905_s15 = scalar_lea.hbm (!%p209_p9), %s990_s4, %s588_s26 }
  0x13   : > { %s455_s6 = sshll.u32 (!%p209_p9), %s857_s30, 4  ;;  %s755_s23 = smov (!%p209_p9), [#allocation4]   ;;  %s884_s6 = int_to_ptr.vmem [resolvable:$true] %s455_s6 }
  0x14   : > { %s659_s17 = scalar_lea.vmem (!%p209_p9), %s884_s6, 1024 }
  0x15   : > { %p660_p11 = scmp.ne.s32.totalorder (!%p209_p9), %s884_s6, %s659_s17 }
  0x17   : > { %s999_s7 = smov (!%p247_p10, %s567_s7), 15  ;;  %p661_p12 = pnand %p660_p11, %p827_p5 }
  0x18   : > { %s568_s8 = sshll.u32 %s999_s7, 2  ;;  %s570_s12 = sshll.u32 %s999_s7, 3 }
  0x19   : > { %s250_s11 = scalar_lea.vmem %s986_s0, %s568_s8  ;;  %s256_s16 = scalar_lea.vmem %s989_s3, %s570_s12 }
  0x1a   : > { %v655_v2 = vld [vmem:[%s250_s11] sm:$0xff]   ;;  %v656_v3 = vld [vmem:[%s250_s11 + $0x10] sm:$0xff]   ;;  %v657_v4 = vld [vmem:[%s250_s11 + $0x8] sm:$0xff]   ;;  %s864_s7 = scalar_lea.vmem [#allocation2], %s565_s25  ;;  %p662_p13 = pneg %p661_p12 }
  0x1b   : > { %597 = vmatprep.mubr.msk.bf16.mxu0 %vm297_vm1, %v655_v2  ;;  %601 = vmatprep.mubr.msk.bf16.mxu1 %vm297_vm1, %v656_v3  ;;  %v658_v5 = vld [vmem:[%s250_s11 + $0x18] sm:$0xff]   ;;  %v381_v8 = vld [vmem:[%s256_s16 + $0x10] sm:$0xff]  ;;  %v379_v13 = vld [vmem:[%s256_s16] sm:$0xff]  ;;  %s439_s8 = sshll.u32 %s864_s7, 4  ;;  %s882_s11 = scalar_lea.hbm %s991_s5, %s588_s26  ;;  %s907_s8 = int_to_ptr.vmem [resolvable:$true] %s439_s8 }
  0x1c   : > { %598 = vmatmul.mubr.msk.bf16.vlgmr.msra.gmra.mrb[0].mxu0 %vm297_vm1, %v657_v4  ;;  %602 = vmatmul.mubr.msk.bf16.vlgmr.msra.gmra.mrb[0].mxu1 %vm297_vm1, %v658_v5  ;;  %v385_v11 = vld [vmem:[%s256_s16 + $0x30] sm:$0xff]  ;;  %v383_v17 = vld [vmem:[%s256_s16 + $0x20] sm:$0xff]  ;;  %v382_v19 = vld [vmem:[%s256_s16 + $0x18] sm:$0xff]  ;;  %s663_s25 = sshll.u32 %s755_s23, 4  ;;  %s664_s25 = int_to_ptr.vmem [resolvable:$false] %s663_s25 }
  0x1d   : > { %v386_v24 = vld [vmem:[%s256_s16 + $0x38] sm:$0xff]  ;;  %v380_v26 = vld [vmem:[%s256_s16 + $0x8] sm:$0xff]  ;;  %s665_s22 = scalar_lea.vmem %s664_s25, 2048  ;;  %p666_p0 = scmp.lt.s32.totalorder %s884_s6, %s664_s25 }
  0x1e   : > { %v384_v32 = vld [vmem:[%s256_s16 + $0x28] sm:$0xff]  ;;  %s426_s16 = scalar_lea.sflag [#allocation5], %s845_s13  ;;  %p667_p1 = scmp.lt.s32.totalorder %s665_s22, %s659_s17 }
  0x20   : > { %p668_p2 = por %p667_p1, %p666_p0 }
  0x22   : > { %p669_p3 = pnand %p668_p2, %p662_p13 }
  0xef   : > { %v599_v7 = vpop.f32.mrb[0].mxu0  ;;  %v603_v10 = vpop.f32.mrb[0].mxu1 }
  0xf0   : > { %v357_v9 = vadd.f32 %v599_v7, %v571_v6  ;;  %v348_v12 = vpop.f32.mrb[1].mxu0  ;;  %v373_v14 = vadd.f32 %v603_v10, %v571_v6  ;;  %v364_v16 = vpop.f32.mrb[1].mxu1 }
  0xf1   : > { %v349_v15 = vadd.f32 %v571_v6, %v348_v12  ;;  %v600_v18 = vpop.f32.mrb[2].mxu0  ;;  %v365_v21 = vadd.f32 %v571_v6, %v364_v16  ;;  %v604_v23 = vpop.f32.mrb[2].mxu1 }
  0xf2   : > { %v389_v20 = vadd.f32 %v381_v8, %v357_v9  ;;  %v360_v22 = vadd.f32 %v600_v18, %v571_v6  ;;  %v351_v25 = vpop.f32.mrb[3].mxu0  ;;  %v393_v27 = vadd.f32 %v385_v11, %v373_v14  ;;  %v376_v29 = vadd.f32 %v604_v23, %v571_v6  ;;  %v367_v31 = vpop.f32.mrb[3].mxu1 }
  0xf3   : > { %v387_v28 = vadd.f32 %v379_v13, %v349_v15  ;;  %v352_v30 = vadd.f32 %v571_v6, %v351_v25  ;;  %v391_v34 = vadd.f32 %v383_v17, %v365_v21  ;;  %v368_v36 = vadd.f32 %v571_v6, %v367_v31 }
  0xf4   : > { %398 = vst.msk [vmem:[%s857_s30 + $0x10] sm:$0xff] %vm395_vm2, %v389_v20  ;;  %v406_v33 = vmax.f32 %v389_v20, 0.0  ;;  %v390_v35 = vadd.f32 %v382_v19, %v360_v22  ;;  %402 = vst.msk [vmem:[%s857_s30 + $0x30] sm:$0xff] %vm395_vm2, %v393_v27  ;;  %v410_v37 = vmax.f32 %v393_v27, 0.0  ;;  %v394_v39 = vadd.f32 %v386_v24, %v376_v29 }
  0xf5   : > { %396 = vst.msk [vmem:[%s857_s30] sm:$0xff] %vm395_vm2, %v387_v28  ;;  %v404_v38 = vmax.f32 %v387_v28, 0.0  ;;  %v388_v40 = vadd.f32 %v380_v26, %v352_v30  ;;  %400 = vst.msk [vmem:[%s857_s30 + $0x20] sm:$0xff] %vm395_vm2, %v391_v34  ;;  %v408_v41 = vmax.f32 %v391_v34, 0.0  ;;  %v392_v43 = vadd.f32 %v384_v32, %v368_v36 }
  0xf6   : > { %414 = vst.msk [vmem:[%s864_s7 + $0x10] sm:$0xff] %vm395_vm2, %v406_v33  ;;  %399 = vst.msk [vmem:[%s857_s30 + $0x18] sm:$0xff] %vm395_vm2, %v390_v35  ;;  %v407_v42 = vmax.f32 %v390_v35, 0.0  ;;  %v411_v44 = vmax.f32 %v394_v39, 0.0 }
  0xf7   : > { %418 = vst.msk [vmem:[%s864_s7 + $0x30] sm:$0xff] %vm395_vm2, %v410_v37  ;;  %412 = vst.msk [vmem:[%s864_s7] sm:$0xff] %vm395_vm2, %v404_v38  ;;  %v405_v45 = vmax.f32 %v388_v40, 0.0  ;;  %v409_v46 = vmax.f32 %v392_v43, 0.0 }
  0xf8   : > { %403 = vst.msk [vmem:[%s857_s30 + $0x38] sm:$0xff] %vm395_vm2, %v394_v39  ;;  %397 = vst.msk [vmem:[%s857_s30 + $0x8] sm:$0xff] %vm395_vm2, %v388_v40 }
  0xf9   : > { %416 = vst.msk [vmem:[%s864_s7 + $0x20] sm:$0xff] %vm395_vm2, %v408_v41  ;;  %415 = vst.msk [vmem:[%s864_s7 + $0x18] sm:$0xff] %vm395_vm2, %v407_v42 }
  0xfa   : > { %401 = vst.msk [vmem:[%s857_s30 + $0x28] sm:$0xff] %vm395_vm2, %v392_v43  ;;  %419 = vst.msk [vmem:[%s864_s7 + $0x38] sm:$0xff] %vm395_vm2, %v411_v44 }
  0xfb   : > { %413 = vst.msk [vmem:[%s864_s7 + $0x8] sm:$0xff] %vm395_vm2, %v405_v45 }
  0xfc   : > { %672 = shalt.err (!%p669_p3)
}
  0xfd   : > { %s673_s26 = scalar_lea.hbm %s882_s11, 1024  ;;  %s677_s10 = scalar_lea.hbm %s991_s5, 2048 }
  0xfe   : > { %p674_p4 = scmp.ne.s32.totalorder %s882_s11, %s673_s26  ;;  %p678_p9 = scmp.lt.u32.totalorder %s882_s11, %s991_s5 }
  0xff   : > { %p679_p10 = scmp.lt.u32.totalorder %s677_s10, %s673_s26  ;;  %p681_p12 = scmp.lt.u32.totalorder %s673_s26, %s882_s11 }
 0x100   : > { %p675_p7 = pnand %p674_p4, %p827_p5 }
 0x101   : > { %p680_p11 = por %p679_p10, %p678_p9 }
 0x102   : > { %p676_p8 = pneg %p675_p7 }
 0x103   : > { %p682_p13 = por %p681_p12, %p680_p11 }
 0x105   : > { %p683_p0 = pnand %p682_p13, %p676_p8 }
 0x107   : > { %686 = shalt.err (!%p683_p0)
}
 0x108   : > { %s756_s17 = smov 128   ;;  %s757_s23 = smov 8   ;;  %417 = vst.msk [vmem:[%s864_s7 + $0x28] sm:$0xff] %vm395_vm2, %v409_v46 }
 0x109   : > { %610 = dma.vmem_to_hbm [thread:$0]  (%p827_p5), %s884_s6, 1024, %s882_s11, %s426_s16, %s756_s17, %s756_s17, %s757_s23  }
 0x10a   : > { %s421_s25 = scalar_lea.sflag [#allocation3], %s845_s13  ;;  %s687_s22 = scalar_lea.vmem %s907_s8, 1024 }
 0x10b   : > { %p688_p1 = scmp.ne.s32.totalorder %s907_s8, %s687_s22  ;;  %s758_s26 = smov [#allocation2]  }
 0x10c   : > { %s691_s30 = sshll.u32 %s758_s26, 4  ;;  %s692_s30 = int_to_ptr.vmem [resolvable:$false] %s691_s30 }
 0x10d   : > { %p689_p2 = pnand %p688_p1, %p827_p5  ;;  %s693_s9 = scalar_lea.vmem %s692_s30, 2048 }
 0x10e   : > { %p694_p4 = scmp.lt.s32.totalorder %s907_s8, %s692_s30  ;;  %p695_p7 = scmp.lt.s32.totalorder %s693_s9, %s687_s22 }
 0x10f   : > { %p690_p3 = pneg %p689_p2 }
 0x110   : > { %p696_p8 = por %p695_p7, %p694_p4 }
 0x112   : > { %p697_p9 = pnand %p696_p8, %p690_p3 }
 0x114   : > { %700 = shalt.err (!%p697_p9)
}
 0x115   : > { %s701_s6 = scalar_lea.hbm %s905_s15, 1024  ;;  %s705_s16 = scalar_lea.hbm %s990_s4, 2048 }
 0x116   : > { %p702_p10 = scmp.ne.s32.totalorder %s905_s15, %s701_s6  ;;  %p706_p13 = scmp.lt.u32.totalorder %s905_s15, %s990_s4 }
 0x117   : > { %p707_p0 = scmp.lt.u32.totalorder %s705_s16, %s701_s6  ;;  %p709_p2 = scmp.lt.u32.totalorder %s701_s6, %s905_s15 }
 0x118   : > { %p703_p11 = pnand %p702_p10, %p827_p5 }
 0x119   : > { %p708_p1 = por %p707_p0, %p706_p13 }
 0x11a   : > { %p704_p12 = pneg %p703_p11 }
 0x11b   : > { %p710_p3 = por %p709_p2, %p708_p1 }
 0x11d   : > { %p711_p4 = pnand %p710_p3, %p704_p12 }
 0x11f   : > { %714 = shalt.err (!%p711_p4)
}
 0x120   : > { %609 = dma.vmem_to_hbm [thread:$0]  (%p827_p5), %s907_s8, 1024, %s905_s15, %s421_s25, %s756_s17, %s756_s17, %s757_s23  }
 0x121 PF: > { %p620_p7 = scmp.ge.s32.totalorder %s753_s21, 2  ;;  %s470_s14 = sand.u32 1, %s741_s18  }
 0x122   : > { %s471_s22 = scalar_lea.sflag [#allocation3], %s470_s14 }
 0x123   : > { %p614_p8 = pnand %p620_p7, %p831_p6 }
 0x125   : > { %732 = dma.done.wait (!%p614_p8), %s471_s22, 1024  }
 0x126   : > { %734 = vsyncadd (!%p614_p8), %s471_s22, 4294966272  ;;  %s480_s28 = scalar_lea.sflag [#allocation5], %s470_s14 }
 0x127   : > { %736 = dma.done.wait (!%p614_p8), %s480_s28, 1024  }
 0x128   : > { %738 = vsyncadd (!%p614_p8), %s480_s28, 4294966272  ;;  %p19_p5 = scmp.ge.s32.totalorder %s814_s24, 4   ;;  %s994_s18 = smov %s745_s19 }
 0x129   : > { %s995_s19 = smov %s749_s20  ;;  %s996_s20 = smov %s825_s27 }
 0x12a   : > { %s997_s21 = smov %s814_s24  ;;  %21 = sbr.rel (!%p19_p5) target bundleno = 5 (0x5), region = 91 }
 0x131   :  { %485 = vsyncpa [#allocation3], 1 }
 0x132   :  { %487 = vsyncpa [#allocation3 + $0x1], 1 }
 0x133   :  { %488 = vsyncpa [#allocation5], 1 }
 0x134   :  { %490 = vsyncpa [#allocation5 + $0x1], 1 }

// kernel: bottleneck_forward.4
= control target key start
LH: loop header
LB: loop body
LE: loop exit
PB: predicated region body
PF: predicated region fallthrough
CT: control target
= control target key end

     0   :  { %s12789_s24 = smov 0   ;;  %s15378_s0 = inlined_call_operand.vmem [shape: bf16[2,9,2,9,2,4], index: 0, kind: input, shape index: {}]   ;;  %s15379_s1 = inlined_call_operand.vmem [shape: bf16[9,4,4], index: 1, kind: input, shape index: {}]   ;;  %s15380_s2 = inlined_call_operand.vmem [shape: f32[1,4], index: 2, kind: input, shape index: {}]   ;;  %s15381_s3 = inlined_call_operand.vmem [shape: f32[2,8,2,8,2,16], index: 3, kind: input, shape index: {}]   ;;  %s15382_s4 = inlined_call_operand.vmem [shape: bf16[16,16], index: 4, kind: input, shape index: {}]   ;;  %s15383_s5 = inlined_call_operand.vmem [shape: f32[1,16], index: 5, kind: input, shape index: {}]   ;;  %s15384_s6 = inlined_call_operand.vmem [shape: bf16[2,8,8,4], index: 6, kind: output, shape index: {0}]   ;;  %s15385_s7 = inlined_call_operand.vmem [shape: f32[2,8,8,16], index: 7, kind: output, shape index: {1}]  }
   0x1 LB: > { %s11478_s25 = sadd.s32 4294967295, %s12746_s24   ;;  %p11482_p0 = scmp.ge.s32.totalorder %s12746_s24, 1  ;;  %s12746_s24 = sphi %s12789_s24, %s18_s24  }
   0x2   : > { %p249_p1 = scmp.lt.s32.totalorder %s12746_s24, 3 }
   0x4   : > { %p250_p2 = pnand %p11482_p0, %p249_p1 }
   0x6   : > { %253 = sbr.rel (%p250_p2) target bundleno = 763 (0x2fb), region = 44 }
   0xd   : > { %vm1537_vm0 = vcmask 1041408   ;;  %v11892_v0 = vld [vmem:[%s15379_s1 + $0x8] sm:$0x3]  ;;  %v11489_v1 = vld [vmem:[%s15379_s1 + $0x2] sm:$0x3]  ;;  %p290_p3 = scmp.lt.s32.totalorder %s11478_s25, 1  ;;  %v451_v2 = vlaneseq }
   0xe   : > { %12723 = vmatprep.subr.msk.bf16.mxu0 %vm1537_vm0, %v11892_v0  ;;  %12719 = vmatprep.subr.msk.bf16.mxu1 %vm1537_vm0, %v11489_v1  ;;  %v5611_v3 = vsel %vm1537_vm0, %v11892_v0, 0  ;;  %v1539_v4 = vsel %vm1537_vm0, %v11489_v1, 0  ;;  %v12748_v5 = vmov 1966171168   ;;  %v12025_v8 = vld [vmem:[%s15379_s1 + $0xa] sm:$0x3] }
   0xf   : > { %12596 = vmatpush3.bf16.msra.mxu0 %v5611_v3  ;;  %12556 = vmatpush3.bf16.msra.mxu1 %v1539_v4  ;;  %s15593_s25 = smov (!%p290_p3, %s11478_s25), 1  ;;  %v449_v6 = vunpack.c.l.s4 %v12748_v5  ;;  %v452_v7 = vshrl.u32 %v451_v2, 7  ;;  %v374_v9 = vld [vmem:[%s15379_s1] sm:$0x3]  ;;  %vm1402_vm1 = vcmask 1041409   ;;  %vm1405_vm2 = vcmask 1042434  }
  0x10   : > { %12724 = vmatprep.subr.msk.bf16.mxu0 %vm1537_vm0, %v12025_v8  ;;  %s12728_s11 = smul.u32 162, %s15593_s25  ;;  %12720 = vmatprep.subr.msk.bf16.mxu1 %vm1537_vm0, %v374_v9  ;;  %vm1408_vm3 = vcmask 1043459   ;;  %vm1411_vm4 = vcmask 1044484   ;;  %vm1414_vm5 = vcmask 1045509   ;;  %vm1417_vm6 = vcmask 1046534   ;;  %s12502_s8 = sshll.u32 %s15593_s25, 8 }
  0x11   : > { %v450_v10 = vunpack.c.0.s8 %v449_v6  ;;  %vm1420_vm7 = vcmask 1047559   ;;  %v12844_v27 = vsel %vm1537_vm0, %v12025_v8, 0  ;;  %v12852_v32 = vsel %vm1537_vm0, %v374_v9, 0  ;;  %s12504_s18 = sshll.u32 %s15593_s25, 6 }
  0x12   : > { %s12821_s14 = scalar_lea.vmem %s15378_s0, %s12728_s11  ;;  %vm1524_vm8 = vcmask 31744   ;;  %s15078_s11 = scalar_lea.vmem %s15381_s3, %s12502_s8  ;;  %vm11292_vm9 = vcmask 130048   ;;  %vm10896_vm10 = vcmask 27648  }
  0x13   : > { %v12823_v11 = vsub.s32 %v450_v10, %v452_v7  ;;  %v11490_v12 = vld.sshfl [vmem:[%s12821_s14] sm:$0x1 pattern:$0x75316420]  ;;  %s15349_s23 = scalar_lea.vmem %s15385_s7, %s12504_s18 }
  0x14   : > { %v11491_v13 = vld.sshfl [vmem:[%s12821_s14 + $0x1] sm:$0x1 pattern:$0x75316420] }
  0x15   : > { %v454_v14 = vrot.slane %v11490_v12, %v12823_v11  ;;  %v11492_v15 = vld.sshfl [vmem:[%s12821_s14 + $0x2] sm:$0x1 pattern:$0x75316420]  ;;  %v468_v16 = vrot.slane %v11491_v13, %v12823_v11 }
  0x16   : > { %v11493_v17 = vld.sshfl [vmem:[%s12821_s14 + $0x3] sm:$0x1 pattern:$0x75316420]  ;;  %v482_v18 = vrot.slane %v11492_v15, %v12823_v11 }
  0x17   : > { %v12832_v19 = vunpack.c.l.b16 %v454_v14  ;;  %v11494_v20 = vld.sshfl [vmem:[%s12821_s14 + $0x4] sm:$0x1 pattern:$0x75316420]  ;;  %v496_v21 = vrot.slane %v11493_v17, %v12823_v11  ;;  %v12836_v22 = vunpack.c.l.b16 %v468_v16 }
  0x18   : > { %v11495_v23 = vld.sshfl [vmem:[%s12821_s14 + $0x5] sm:$0x1 pattern:$0x75316420]  ;;  %v510_v24 = vrot.slane %v11494_v20, %v12823_v11  ;;  %v12840_v25 = vunpack.c.l.b16 %v482_v18 }
  0x19   : > { %v1401_v26 = vrot.slane %v12832_v19, 1  ;;  %v11496_v28 = vld.sshfl [vmem:[%s12821_s14 + $0x6] sm:$0x1 pattern:$0x75316420]  ;;  %v524_v29 = vrot.slane %v11495_v23, %v12823_v11  ;;  %v12848_v30 = vunpack.c.l.b16 %v496_v21  ;;  %v1606_v31 = vrot.slane %v12836_v22, 7 }
  0x1a   : > { %v11497_v33 = vld.sshfl [vmem:[%s12821_s14 + $0x7] sm:$0x1 pattern:$0x75316420]  ;;  %v538_v34 = vrot.slane %v11496_v28, %v12823_v11  ;;  %v12856_v35 = vunpack.c.l.b16 %v510_v24  ;;  %v1404_v37 = vrot.slane %v12840_v25, 7  ;;  %v1608_v42 = vrot.slane %v12840_v25, 6 }
  0x1b   : > { %v1403_v36 = vsel %vm1402_vm1, %v12836_v22, %v1401_v26  ;;  %v11498_v38 = vld.sshfl [vmem:[%s12821_s14 + $0x12] sm:$0x1 pattern:$0x75316420]  ;;  %v552_v39 = vrot.slane %v11497_v33, %v12823_v11  ;;  %v12863_v40 = vunpack.c.l.b16 %v524_v29  ;;  %v1407_v41 = vrot.slane %v12848_v30, 6 }
  0x1c   : > { %v11499_v43 = vld.sshfl [vmem:[%s12821_s14 + $0x13] sm:$0x1 pattern:$0x75316420]  ;;  %v566_v44 = vrot.slane %v11498_v38, %v12823_v11  ;;  %v12869_v45 = vunpack.c.l.b16 %v538_v34  ;;  %v1406_v46 = vsel %vm1405_vm2, %v1404_v37, %v1403_v36  ;;  %v1410_v47 = vrot.slane %v12856_v35, 5 }
  0x1d   : > { %v11500_v48 = vld.sshfl [vmem:[%s12821_s14 + $0x14] sm:$0x1 pattern:$0x75316420]  ;;  %v580_v49 = vrot.slane %v11499_v43, %v12823_v11  ;;  %v12875_v50 = vunpack.c.l.b16 %v552_v39  ;;  %v1409_v51 = vsel %vm1408_vm3, %v1407_v41, %v1406_v46  ;;  %v1413_v52 = vrot.slane %v12863_v40, 4 }
  0x1e   : > { %v11501_v53 = vld.sshfl [vmem:[%s12821_s14 + $0x15] sm:$0x1 pattern:$0x75316420]  ;;  %v594_v54 = vrot.slane %v11500_v48, %v12823_v11  ;;  %v12881_v55 = vunpack.c.l.b16 %v566_v44  ;;  %v1412_v56 = vsel %vm1411_vm4, %v1410_v47, %v1409_v51  ;;  %v1416_v57 = vrot.slane %v12869_v45, 3 }
  0x1f   : > { %v11502_v58 = vld.sshfl [vmem:[%s12821_s14 + $0x16] sm:$0x1 pattern:$0x75316420]  ;;  %v608_v59 = vrot.slane %v11501_v53, %v12823_v11  ;;  %v12887_v60 = vunpack.c.l.b16 %v580_v49  ;;  %v1415_v61 = vsel %vm1414_vm5, %v1413_v52, %v1412_v56  ;;  %v1419_v62 = vrot.slane %v12875_v50, 2 }
  0x20   : > { %v11503_v63 = vld.sshfl [vmem:[%s12821_s14 + $0x17] sm:$0x1 pattern:$0x75316420]  ;;  %v622_v0 = vrot.slane %v11502_v58, %v12823_v11  ;;  %v12893_v1 = vunpack.c.l.b16 %v594_v54  ;;  %v1418_v2 = vsel %vm1417_vm6, %v1416_v57, %v1415_v61  ;;  %v1422_v3 = vrot.slane %v12881_v55, 1 }
  0x21   : > { %v11504_v4 = vld.sshfl [vmem:[%s12821_s14 + $0x18] sm:$0x1 pattern:$0x75316420]  ;;  %v636_v5 = vrot.slane %v11503_v63, %v12823_v11  ;;  %v12899_v6 = vunpack.c.l.b16 %v608_v59  ;;  %v1421_v7 = vsel %vm1420_vm7, %v1419_v62, %v1418_v2  ;;  %v1610_v8 = vrot.slane %v12848_v30, 5 }
  0x22   : > { %v11505_v9 = vld.sshfl [vmem:[%s12821_s14 + $0x19] sm:$0x1 pattern:$0x75316420]  ;;  %v650_v10 = vrot.slane %v11504_v4, %v12823_v11  ;;  %v12905_v12 = vunpack.c.l.b16 %v622_v0  ;;  %v1423_v13 = vsel %vm1402_vm1, %v12887_v60, %v1422_v3  ;;  %v1424_v14 = vrot.slane %v12893_v1, 7 }
  0x23   : > { %v664_v15 = vrot.slane %v11505_v9, %v12823_v11  ;;  %v12911_v16 = vunpack.c.l.b16 %v636_v5  ;;  %v1426_v17 = vrot.slane %v12899_v6, 6  ;;  %v1612_v18 = vrot.slane %v12856_v35, 4  ;;  %v11893_v26 = vld.sshfl [vmem:[%s12821_s14 + $0x9] sm:$0x1 pattern:$0x75316420] }
  0x24   : > { %v12915_v20 = vunpack.c.l.b16 %v650_v10  ;;  %v1425_v21 = vsel %vm1405_vm2, %v1424_v14, %v1423_v13  ;;  %v1428_v23 = vrot.slane %v12905_v12, 5  ;;  %v1614_v24 = vrot.slane %v12863_v40, 3  ;;  %v11894_v28 = vld.sshfl [vmem:[%s12821_s14 + $0xa] sm:$0x1 pattern:$0x75316420] }
  0x25   : > { %v12922_v29 = vunpack.c.l.b16 %v664_v15  ;;  %v1427_v30 = vsel %vm1408_vm3, %v1426_v17, %v1425_v21  ;;  %v1430_v33 = vrot.slane %v12911_v16, 4  ;;  %v1616_v34 = vrot.slane %v12869_v45, 2  ;;  %v11895_v35 = vld.sshfl [vmem:[%s12821_s14 + $0xb] sm:$0x1 pattern:$0x75316420] }
  0x26   : > { %v1429_v36 = vsel %vm1411_vm4, %v1428_v23, %v1427_v30  ;;  %v1432_v37 = vrot.slane %v12915_v20, 3  ;;  %v1618_v38 = vrot.slane %v12875_v50, 1  ;;  %v1620_v39 = vrot.slane %v12887_v60, 7 }
  0x27   : > { %v1431_v41 = vsel %vm1414_vm5, %v1430_v33, %v1429_v36  ;;  %v1434_v43 = vrot.slane %v12922_v29, 2  ;;  %v1622_v44 = vrot.slane %v12893_v1, 6  ;;  %v1624_v46 = vrot.slane %v12899_v6, 5 }
  0x28   : > { %v1433_v47 = vsel %vm1417_vm6, %v1432_v37, %v1431_v41  ;;  %v1626_v48 = vrot.slane %v12905_v12, 4  ;;  %v1628_v49 = vrot.slane %v12911_v16, 3  ;;  %v1630_v51 = vrot.slane %v12915_v20, 2 }
  0x29   : > { %v1435_v52 = vsel %vm1420_vm7, %v1434_v43, %v1433_v47  ;;  %v1632_v53 = vrot.slane %v12922_v29, 1  ;;  %v11896_v54 = vld.sshfl [vmem:[%s12821_s14 + $0xc] sm:$0x1 pattern:$0x75316420]  ;;  %v4535_v56 = vrot.slane %v11893_v26, %v12823_v11  ;;  %v4549_v57 = vrot.slane %v11894_v28, %v12823_v11 }
  0x2a   : > { %v1520_v58 = vpack.c.b16 %v1435_v52, %v1421_v7  ;;  %v11897_v59 = vld.sshfl [vmem:[%s12821_s14 + $0xd] sm:$0x1 pattern:$0x75316420]  ;;  %v4563_v61 = vrot.slane %v11895_v35, %v12823_v11  ;;  %v4577_v62 = vrot.slane %v11896_v54, %v12823_v11  ;;  %v1607_v63 = vsel %vm1402_vm1, %v1606_v31, %v12832_v19 }
  0x2b   : > { %v11898_v0 = vld.sshfl [vmem:[%s12821_s14 + $0xe] sm:$0x1 pattern:$0x75316420]  ;;  %v4591_v2 = vrot.slane %v11897_v59, %v12823_v11  ;;  %v5418_v3 = vunpack.c.l.b16 %v4535_v56  ;;  %v5419_v4 = vunpack.c.l.b16 %v4549_v57  ;;  %v1609_v5 = vsel %vm1405_vm2, %v1608_v42, %v1607_v63 }
  0x2c   : > { %12557 = vmatprep.mubr.msk.bf16.mxu1 %vm1524_vm8, %v1520_v58  ;;  %v11899_v7 = vld.sshfl [vmem:[%s12821_s14 + $0xf] sm:$0x1 pattern:$0x75316420]  ;;  %v4605_v9 = vrot.slane %v11898_v0, %v12823_v11  ;;  %v5420_v10 = vunpack.c.l.b16 %v4563_v61  ;;  %v5421_v22 = vunpack.c.l.b16 %v4577_v62  ;;  %v1611_v19 = vsel %vm1408_vm3, %v1610_v8, %v1609_v5 }
  0x2d   : > { %v11900_v31 = vld.sshfl [vmem:[%s12821_s14 + $0x10] sm:$0x1 pattern:$0x75316420]  ;;  %v4619_v13 = vrot.slane %v11899_v7, %v12823_v11  ;;  %v5422_v14 = vunpack.c.l.b16 %v4591_v2  ;;  %v5482_v15 = vrot.slane %v5418_v3, 1  ;;  %v1613_v25 = vsel %vm1411_vm4, %v1612_v18, %v1611_v19 }
  0x2e   : > { %v11901_v42 = vld.sshfl [vmem:[%s12821_s14 + $0x1b] sm:$0x1 pattern:$0x75316420]  ;;  %v4633_v17 = vrot.slane %v11900_v31, %v12823_v11  ;;  %v5423_v21 = vunpack.c.l.b16 %v4605_v9  ;;  %v5484_v23 = vrot.slane %v5420_v10, 7  ;;  %v5486_v26 = vrot.slane %v5421_v22, 6 }
  0x2f   : > { %v11902_v28 = vld.sshfl [vmem:[%s12821_s14 + $0x1c] sm:$0x1 pattern:$0x75316420]  ;;  %v4647_v30 = vrot.slane %v11901_v42, %v12823_v11  ;;  %v5424_v8 = vunpack.c.l.b16 %v4619_v13  ;;  %v5483_v33 = vsel %vm1402_vm1, %v5419_v4, %v5482_v15  ;;  %v5488_v35 = vrot.slane %v5422_v14, 5 }
  0x30   : > { %v11903_v36 = vld.sshfl [vmem:[%s12821_s14 + $0x1d] sm:$0x1 pattern:$0x75316420]  ;;  %v4661_v37 = vrot.slane %v11902_v28, %v12823_v11  ;;  %v5425_v18 = vunpack.c.l.b16 %v4633_v17  ;;  %v5485_v41 = vsel %vm1405_vm2, %v5484_v23, %v5483_v33  ;;  %v5490_v43 = vrot.slane %v5423_v21, 4 }
  0x31   : > { %v11904_v47 = vld.sshfl [vmem:[%s12821_s14 + $0x1e] sm:$0x1 pattern:$0x75316420]  ;;  %v4675_v52 = vrot.slane %v11903_v36, %v12823_v11  ;;  %v5426_v54 = vunpack.c.l.b16 %v4647_v30  ;;  %v5487_v56 = vsel %vm1408_vm3, %v5486_v26, %v5485_v41  ;;  %v5492_v57 = vrot.slane %v5424_v8, 3 }
  0x32   : > { %v11905_v58 = vld.sshfl [vmem:[%s12821_s14 + $0x1f] sm:$0x1 pattern:$0x75316420]  ;;  %v4689_v59 = vrot.slane %v11904_v47, %v12823_v11  ;;  %v5427_v61 = vunpack.c.l.b16 %v4661_v37  ;;  %v5489_v62 = vsel %vm1411_vm4, %v5488_v35, %v5487_v56  ;;  %v5494_v63 = vrot.slane %v5425_v18, 2 }
  0x33   : > { %v11906_v0 = vld.sshfl [vmem:[%s12821_s14 + $0x20] sm:$0x1 pattern:$0x75316420]  ;;  %v4703_v2 = vrot.slane %v11905_v58, %v12823_v11  ;;  %v5428_v3 = vunpack.c.l.b16 %v4675_v52  ;;  %v5491_v4 = vsel %vm1414_vm5, %v5490_v43, %v5489_v62  ;;  %v5496_v5 = vrot.slane %v5426_v54, 1 }
  0x34   : > { %v11907_v7 = vld.sshfl [vmem:[%s12821_s14 + $0x21] sm:$0x1 pattern:$0x75316420]  ;;  %v4717_v9 = vrot.slane %v11906_v0, %v12823_v11  ;;  %v5429_v10 = vunpack.c.l.b16 %v4689_v59  ;;  %v5493_v22 = vsel %vm1417_vm6, %v5492_v57, %v5491_v4  ;;  %v1615_v19 = vsel %vm1414_vm5, %v1614_v24, %v1613_v25 }
  0x35   : > { %v11908_v31 = vld.sshfl [vmem:[%s12821_s14 + $0x22] sm:$0x1 pattern:$0x75316420]  ;;  %v4731_v13 = vrot.slane %v11907_v7, %v12823_v11  ;;  %v5430_v14 = vunpack.c.l.b16 %v4703_v2  ;;  %v5495_v15 = vsel %vm1420_vm7, %v5494_v63, %v5493_v22  ;;  %v5497_v42 = vsel %vm1402_vm1, %v5427_v61, %v5496_v5 }
  0x36   : > { %v4745_v17 = vrot.slane %v11908_v31, %v12823_v11  ;;  %v5431_v21 = vunpack.c.l.b16 %v4717_v9  ;;  %v5498_v23 = vrot.slane %v5428_v3, 7  ;;  %v5500_v26 = vrot.slane %v5429_v10, 6  ;;  %v11506_v28 = vld.sshfl [vmem:[%s12821_s14 + $0x24] sm:$0x1 pattern:$0x75316420] }
  0x37   : > { %v5432_v30 = vunpack.c.l.b16 %v4731_v13  ;;  %v5502_v40 = vrot.slane %v5430_v14, 5  ;;  %v11507_v24 = vld.sshfl [vmem:[%s12821_s14 + $0x25] sm:$0x1 pattern:$0x75316420]  ;;  %v678_v25 = vrot.slane %v11506_v28, %v12823_v11  ;;  %v12998_v8 = vsel %vm1417_vm6, %v1616_v34, %v1615_v19 }
  0x38   : > { %v5433_v33 = vunpack.c.l.b16 %v4745_v17  ;;  %v5499_v35 = vsel %vm1405_vm2, %v5498_v23, %v5497_v42  ;;  %v5504_v36 = vrot.slane %v5431_v21, 4  ;;  %v11508_v37 = vld.sshfl [vmem:[%s12821_s14 + $0x26] sm:$0x1 pattern:$0x75316420]  ;;  %v692_v18 = vrot.slane %v11507_v24, %v12823_v11 }
  0x39   : > { %v5501_v41 = vsel %vm1408_vm3, %v5500_v26, %v5499_v35  ;;  %v5506_v43 = vrot.slane %v5432_v30, 3  ;;  %v11509_v47 = vld.sshfl [vmem:[%s12821_s14 + $0x27] sm:$0x1 pattern:$0x75316420]  ;;  %v706_v52 = vrot.slane %v11508_v37, %v12823_v11  ;;  %v13006_v54 = vunpack.c.l.b16 %v678_v25 }
  0x3a   : > { %v5503_v45 = vsel %vm1411_vm4, %v5502_v40, %v5501_v41  ;;  %v5508_v34 = vrot.slane %v5433_v33, 2  ;;  %v11510_v56 = vld.sshfl [vmem:[%s12821_s14 + $0x28] sm:$0x1 pattern:$0x75316420]  ;;  %v720_v57 = vrot.slane %v11509_v47, %v12823_v11  ;;  %v13011_v58 = vunpack.c.l.b16 %v692_v18 }
  0x3b   : > { %v5505_v59 = vsel %vm1414_vm5, %v5504_v36, %v5503_v45  ;;  %v11511_v61 = vld.sshfl [vmem:[%s12821_s14 + $0x29] sm:$0x1 pattern:$0x75316420]  ;;  %v734_v62 = vrot.slane %v11510_v56, %v12823_v11  ;;  %v13016_v63 = vunpack.c.l.b16 %v706_v52  ;;  %v1436_v0 = vrot.slane %v13006_v54, 1 }
  0x3c   : > { %v5507_v2 = vsel %vm1417_vm6, %v5506_v43, %v5505_v59  ;;  %v11512_v3 = vld.sshfl [vmem:[%s12821_s14 + $0x2a] sm:$0x1 pattern:$0x75316420]  ;;  %v748_v4 = vrot.slane %v11511_v61, %v12823_v11  ;;  %v13022_v5 = vunpack.c.l.b16 %v720_v57  ;;  %v1634_v7 = vrot.slane %v13011_v58, 7 }
  0x3d   : > { %v5509_v9 = vsel %vm1420_vm7, %v5508_v34, %v5507_v2  ;;  %v11513_v10 = vld.sshfl [vmem:[%s12821_s14 + $0x2b] sm:$0x1 pattern:$0x75316420]  ;;  %v762_v22 = vrot.slane %v11512_v3, %v12823_v11  ;;  %v13028_v19 = vunpack.c.l.b16 %v734_v62  ;;  %v1437_v31 = vsel %vm1402_vm1, %v13011_v58, %v1436_v0 }
  0x3e   : > { %v5594_v13 = vpack.c.b16 %v5509_v9, %v5495_v15  ;;  %v11514_v14 = vld.sshfl [vmem:[%s12821_s14 + $0x36] sm:$0x1 pattern:$0x75316420]  ;;  %v776_v42 = vrot.slane %v11513_v10, %v12823_v11  ;;  %v13034_v17 = vunpack.c.l.b16 %v748_v4  ;;  %v1438_v21 = vrot.slane %v13016_v63, 7 }
  0x3f   : > { %v11515_v23 = vld.sshfl [vmem:[%s12821_s14 + $0x37] sm:$0x1 pattern:$0x75316420]  ;;  %v790_v26 = vrot.slane %v11514_v14, %v12823_v11  ;;  %v13039_v28 = vunpack.c.l.b16 %v762_v22  ;;  %v1440_v30 = vrot.slane %v13022_v5, 6  ;;  %v1442_v40 = vrot.slane %v13028_v19, 5 }
  0x40   : > { %12597 = vmatprep.mubr.msk.bf16.mxu0 %vm1524_vm8, %v5594_v13  ;;  %v11516_v15 = vld.sshfl [vmem:[%s12821_s14 + $0x38] sm:$0x1 pattern:$0x75316420]  ;;  %v804_v24 = vrot.slane %v11515_v23, %v12823_v11  ;;  %v13046_v25 = vunpack.c.l.b16 %v776_v42  ;;  %v1439_v33 = vsel %vm1405_vm2, %v1438_v21, %v1437_v31  ;;  %v1444_v35 = vrot.slane %v13034_v17, 4 }
  0x41   : > { %v11517_v36 = vld.sshfl [vmem:[%s12821_s14 + $0x39] sm:$0x1 pattern:$0x75316420]  ;;  %v818_v37 = vrot.slane %v11516_v15, %v12823_v11  ;;  %v13052_v18 = vunpack.c.l.b16 %v790_v26  ;;  %v1441_v41 = vsel %vm1408_vm3, %v1440_v30, %v1439_v33  ;;  %v1446_v43 = vrot.slane %v13039_v28, 3 }
  0x42   : > { %v11518_v47 = vld.sshfl [vmem:[%s12821_s14 + $0x3a] sm:$0x1 pattern:$0x75316420]  ;;  %v832_v52 = vrot.slane %v11517_v36, %v12823_v11  ;;  %v13058_v45 = vunpack.c.l.b16 %v804_v24  ;;  %v1443_v34 = vsel %vm1411_vm4, %v1442_v40, %v1441_v41  ;;  %v1448_v56 = vrot.slane %v13046_v25, 2 }
  0x43   : > { %v11519_v57 = vld.sshfl [vmem:[%s12821_s14 + $0x3b] sm:$0x1 pattern:$0x75316420]  ;;  %v846_v59 = vrot.slane %v11518_v47, %v12823_v11  ;;  %v13064_v61 = vunpack.c.l.b16 %v818_v37  ;;  %v1445_v62 = vsel %vm1414_vm5, %v1444_v35, %v1443_v34  ;;  %v1450_v0 = vrot.slane %v13052_v18, 1 }
  0x44   : > { %v11520_v2 = vld.sshfl [vmem:[%s12821_s14 + $0x3c] sm:$0x1 pattern:$0x75316420]  ;;  %v860_v3 = vrot.slane %v11519_v57, %v12823_v11  ;;  %v13070_v4 = vunpack.c.l.b16 %v832_v52  ;;  %v1447_v9 = vsel %vm1417_vm6, %v1446_v43, %v1445_v62 }
  0x45   : > { %v11521_v22 = vld.sshfl [vmem:[%s12821_s14 + $0x3d] sm:$0x1 pattern:$0x75316420]  ;;  %v874_v31 = vrot.slane %v11520_v2, %v12823_v11  ;;  %v13076_v13 = vunpack.c.l.b16 %v846_v59  ;;  %v1449_v14 = vsel %vm1420_vm7, %v1448_v56, %v1447_v9  ;;  %v1451_v42 = vsel %vm1402_vm1, %v13058_v45, %v1450_v0 }
  0x46   : > { %v888_v21 = vrot.slane %v11521_v22, %v12823_v11  ;;  %v13082_v23 = vunpack.c.l.b16 %v860_v3  ;;  %v1452_v26 = vrot.slane %v13064_v61, 7  ;;  %v1454_v30 = vrot.slane %v13070_v4, 6  ;;  %v11909_v35 = vld.sshfl [vmem:[%s12821_s14 + $0x2d] sm:$0x1 pattern:$0x75316420] }
  0x47   : > { %v13086_v40 = vunpack.c.l.b16 %v874_v31  ;;  %v1456_v15 = vrot.slane %v13076_v13, 5  ;;  %v11910_v47 = vld.sshfl [vmem:[%s12821_s14 + $0x2e] sm:$0x1 pattern:$0x75316420] }
  0x48   : > { %v13092_v36 = vunpack.c.l.b16 %v888_v21  ;;  %v1453_v37 = vsel %vm1405_vm2, %v1452_v26, %v1451_v42  ;;  %v1458_v41 = vrot.slane %v13082_v23, 4  ;;  %v11913_v21 = vld.sshfl [vmem:[%s12821_s14 + $0x31] sm:$0x1 pattern:$0x75316420] }
  0x49   : > { %v1455_v52 = vsel %vm1408_vm3, %v1454_v30, %v1453_v37  ;;  %v1460_v34 = vrot.slane %v13086_v40, 3  ;;  %v11911_v30 = vld.sshfl [vmem:[%s12821_s14 + $0x2f] sm:$0x1 pattern:$0x75316420] }
  0x4a   : > { %v1457_v59 = vsel %vm1411_vm4, %v1456_v15, %v1455_v52  ;;  %v1462_v62 = vrot.slane %v13092_v36, 2  ;;  %v4759_v15 = vrot.slane %v11909_v35, %v12823_v11  ;;  %v11912_v52 = vld.sshfl [vmem:[%s12821_s14 + $0x30] sm:$0x1 pattern:$0x75316420] }
  0x4b   : > { %v1459_v3 = vsel %vm1414_vm5, %v1458_v41, %v1457_v59  ;;  %v4773_v41 = vrot.slane %v11910_v47, %v12823_v11  ;;  %v4787_v59 = vrot.slane %v11911_v30, %v12823_v11  ;;  %v4801_v26 = vrot.slane %v11912_v52, %v12823_v11  ;;  %v11914_v47 = vld.sshfl [vmem:[%s12821_s14 + $0x32] sm:$0x1 pattern:$0x75316420] }
  0x4c   : > { %v1461_v42 = vsel %vm1417_vm6, %v1460_v34, %v1459_v3  ;;  %v13123_v34 = vsel %vm1420_vm7, %v1618_v38, %v12998_v8  ;;  %v5434_v35 = vunpack.c.l.b16 %v4759_v15  ;;  %v13143_v8 = vld [vmem:[%s15379_s1 + $0x4] sm:$0x3]  ;;  %v4829_v60 = vrot.slane %v11914_v47, %v12823_v11  ;;  %v11917_v52 = vld.sshfl [vmem:[%s12821_s14 + $0x3f] sm:$0x1 pattern:$0x75316420] }
  0x4d   : > { %v1463_v37 = vsel %vm1420_vm7, %v1462_v62, %v1461_v42  ;;  %v1621_v62 = vsel %vm1402_vm1, %v1620_v39, %v12881_v55  ;;  %v4815_v42 = vrot.slane %v11913_v21, %v12823_v11  ;;  %v13133_v30 = vunpack.c.l.b16 %v4773_v41  ;;  %v11915_v55 = vld.sshfl [vmem:[%s12821_s14 + $0x33] sm:$0x1 pattern:$0x75316420] }
  0x4e   : > { %v1521_v3 = vpack.c.b16 %v1463_v37, %v1449_v14  ;;  %v13135_v50 = vunpack.c.l.b16 %v4787_v59  ;;  %v1623_v38 = vsel %vm1405_vm2, %v1622_v44, %v1621_v62  ;;  %v13148_v39 = vunpack.c.l.b16 %v4801_v26  ;;  %v11916_v21 = vld.sshfl [vmem:[%s12821_s14 + $0x34] sm:$0x1 pattern:$0x75316420] }
  0x4f   : > { %v5510_v14 = vrot.slane %v5434_v35, 1  ;;  %v1625_v1 = vsel %vm1408_vm3, %v1624_v46, %v1623_v38  ;;  %v4843_v44 = vrot.slane %v11915_v55, %v12823_v11  ;;  %v13155_v15 = vunpack.c.l.b16 %v4815_v42  ;;  %v11919_v62 = vld.sshfl [vmem:[%s12821_s14 + $0x41] sm:$0x1 pattern:$0x75316420] }
  0x50   : > { %12558 = vmatmul.mubr.msk.bf16.vlgmr.msra.gmra.mrb[0].mxu1 %vm1524_vm8, %v1521_v3  ;;  %v15388_v37 = vrot.slane %v13135_v50, 7  ;;  %v1627_v26 = vsel %vm1411_vm4, %v1626_v48, %v1625_v1  ;;  %v4857_v6 = vrot.slane %v11916_v21, %v12823_v11  ;;  %v13164_v41 = vunpack.c.l.b16 %v4829_v60  ;;  %v11920_v60 = vld.sshfl [vmem:[%s12821_s14 + $0x42] sm:$0x1 pattern:$0x75316420] }
  0x51   : > { %12566 = vmatpush3.bf16.msra.mxu1 %v12852_v32  ;;  %v5511_v46 = vsel %vm1402_vm1, %v13133_v30, %v5510_v14  ;;  %v15386_v59 = vrot.slane %v13148_v39, 6  ;;  %v11918_v32 = vld.sshfl [vmem:[%s12821_s14 + $0x40] sm:$0x1 pattern:$0x75316420]  ;;  %v4871_v12 = vrot.slane %v11917_v52, %v12823_v11  ;;  %v13173_v3 = vunpack.c.l.b16 %v4843_v44 }
  0x52   : > { %12721 = vmatprep.subr.msk.bf16.mxu1 %vm1537_vm0, %v13143_v8  ;;  %v5513_v48 = vsel %vm1405_vm2, %v15388_v37, %v5511_v46  ;;  %v15387_v35 = vrot.slane %v13155_v15, 5  ;;  %v4885_v47 = vrot.slane %v11918_v32, %v12823_v11  ;;  %v13181_v42 = vunpack.c.l.b16 %v4857_v6  ;;  %v11921_v52 = vld.sshfl [vmem:[%s12821_s14 + $0x43] sm:$0x1 pattern:$0x75316420] }
  0x53   : > { %v5515_v38 = vsel %vm1408_vm3, %v15386_v59, %v5513_v48  ;;  %v15389_v55 = vrot.slane %v13164_v41, 4  ;;  %v4899_v14 = vrot.slane %v11919_v62, %v12823_v11  ;;  %v5442_v1 = vunpack.c.l.b16 %v4871_v12  ;;  %v11922_v62 = vld.sshfl [vmem:[%s12821_s14 + $0x44] sm:$0x1 pattern:$0x75316420] }
  0x54   : > { %v5517_v21 = vsel %vm1411_vm4, %v15387_v35, %v5515_v38  ;;  %v15391_v44 = vrot.slane %v13173_v3, 3  ;;  %v4913_v6 = vrot.slane %v11920_v60, %v12823_v11  ;;  %v13195_v46 = vunpack.c.l.b16 %v4885_v47  ;;  %v11923_v60 = vld.sshfl [vmem:[%s12821_s14 + $0x45] sm:$0x1 pattern:$0x75316420] }
  0x55   : > { %v5519_v32 = vsel %vm1414_vm5, %v15389_v55, %v5517_v21  ;;  %v15390_v48 = vrot.slane %v13181_v42, 2  ;;  %v4927_v12 = vrot.slane %v11921_v52, %v12823_v11  ;;  %v13203_v59 = vunpack.c.l.b16 %v4899_v14  ;;  %v11924_v52 = vld.sshfl [vmem:[%s12821_s14 + $0x46] sm:$0x1 pattern:$0x75316420] }
  0x56   : > { %v5521_v38 = vsel %vm1417_vm6, %v15391_v44, %v5519_v32  ;;  %v5524_v35 = vrot.slane %v5442_v1, 1  ;;  %v4941_v47 = vrot.slane %v11922_v62, %v12823_v11  ;;  %v13210_v37 = vunpack.c.l.b16 %v4913_v6  ;;  %v11528_v9 = vld.sshfl [vmem:[%s12821_s14 + $0x4e] sm:$0x1 pattern:$0x75316420] }
  0x57   : > { %v5523_v21 = vsel %vm1420_vm7, %v15390_v48, %v5521_v38  ;;  %v1629_v14 = vsel %vm1414_vm5, %v1628_v49, %v1627_v26  ;;  %v4955_v55 = vrot.slane %v11923_v60, %v12823_v11  ;;  %v13220_v31 = vunpack.c.l.b16 %v4927_v12  ;;  %v11522_v38 = vld.sshfl [vmem:[%s12821_s14 + $0x48] sm:$0x1 pattern:$0x75316420] }
  0x58   : > { %v5525_v1 = vsel %vm1402_vm1, %v13195_v46, %v5524_v35  ;;  %v15393_v6 = vrot.slane %v13203_v59, 7  ;;  %v4969_v32 = vrot.slane %v11924_v52, %v12823_v11  ;;  %v13226_v62 = vunpack.c.l.b16 %v4941_v47  ;;  %v11523_v60 = vld.sshfl [vmem:[%s12821_s14 + $0x49] sm:$0x1 pattern:$0x75316420] }
  0x59   : > { %v15392_v16 = vrot.slane %v13210_v37, 6  ;;  %v1631_v49 = vsel %vm1417_vm6, %v1630_v51, %v1629_v14  ;;  %v13233_v26 = vunpack.c.l.b16 %v4955_v55  ;;  %v15394_v12 = vrot.slane %v13220_v31, 5  ;;  %v11524_v55 = vld.sshfl [vmem:[%s12821_s14 + $0x4a] sm:$0x1 pattern:$0x75316420] }
  0x5a   : > { %v5527_v35 = vsel %vm1405_vm2, %v15393_v6, %v5525_v1  ;;  %v902_v47 = vrot.slane %v11522_v38, %v12823_v11  ;;  %v13241_v52 = vunpack.c.l.b16 %v4969_v32  ;;  %v15395_v51 = vrot.slane %v13226_v62, 4  ;;  %v11525_v38 = vld.sshfl [vmem:[%s12821_s14 + $0x4b] sm:$0x1 pattern:$0x75316420] }
  0x5b   : > { %v5529_v20 = vsel %vm1408_vm3, %v15392_v16, %v5527_v35  ;;  %v916_v14 = vrot.slane %v11523_v60, %v12823_v11  ;;  %v15396_v48 = vrot.slane %v13233_v26, 3  ;;  %v930_v32 = vrot.slane %v11524_v55, %v12823_v11  ;;  %v11526_v60 = vld.sshfl [vmem:[%s12821_s14 + $0x4c] sm:$0x1 pattern:$0x75316420] }
  0x5c   : > { %v5531_v1 = vsel %vm1411_vm4, %v15394_v12, %v5529_v20  ;;  %v13255_v44 = vunpack.c.l.b16 %v902_v47  ;;  %v15397_v16 = vrot.slane %v13241_v52, 2  ;;  %v944_v6 = vrot.slane %v11525_v38, %v12823_v11  ;;  %v11527_v55 = vld.sshfl [vmem:[%s12821_s14 + $0x4d] sm:$0x1 pattern:$0x75316420] }
  0x5d   : > { %v5533_v35 = vsel %vm1414_vm5, %v15395_v51, %v5531_v1  ;;  %v13263_v22 = vunpack.c.l.b16 %v916_v14  ;;  %v958_v47 = vrot.slane %v11526_v60, %v12823_v11  ;;  %v13270_v12 = vunpack.c.l.b16 %v930_v32  ;;  %v11529_v32 = vld.sshfl [vmem:[%s12821_s14 + $0x4f] sm:$0x1 pattern:$0x75316420] }
  0x5e   : > { %v5535_v20 = vsel %vm1417_vm6, %v15396_v48, %v5533_v35  ;;  %v1464_v1 = vrot.slane %v13255_v44, 1  ;;  %v972_v14 = vrot.slane %v11527_v55, %v12823_v11  ;;  %v13278_v38 = vunpack.c.l.b16 %v944_v6  ;;  %v13294_v6 = vld [vmem:[%s15379_s1 + $0xc] sm:$0x3] }
  0x5f   : > { %v5537_v51 = vsel %vm1420_vm7, %v15397_v16, %v5535_v20  ;;  %v13283_v35 = vsel %vm1420_vm7, %v1632_v53, %v1631_v49  ;;  %v986_v48 = vrot.slane %v11528_v9, %v12823_v11  ;;  %v13287_v2 = vunpack.c.l.b16 %v958_v47  ;;  %v11530_v55 = vld.sshfl [vmem:[%s12821_s14 + $0x5a] sm:$0x1 pattern:$0x75316420] }
  0x60   : > { %v5595_v60 = vpack.c.b16 %v5537_v51, %v5523_v21  ;;  %v1465_v20 = vsel %vm1402_vm1, %v13263_v22, %v1464_v1  ;;  %v1000_v29 = vrot.slane %v11529_v32, %v12823_v11  ;;  %v13298_v53 = vunpack.c.l.b16 %v972_v14  ;;  %v11531_v49 = vld.sshfl [vmem:[%s12821_s14 + $0x5b] sm:$0x1 pattern:$0x75316420] }
  0x61   : > { %v1466_v21 = vrot.slane %v13270_v12, 7  ;;  %v1468_v9 = vrot.slane %v13278_v38, 6  ;;  %v1014_v51 = vrot.slane %v11530_v55, %v12823_v11  ;;  %v13305_v47 = vunpack.c.l.b16 %v986_v48  ;;  %v11532_v14 = vld.sshfl [vmem:[%s12821_s14 + $0x5c] sm:$0x1 pattern:$0x75316420] }
  0x62   : > { %12598 = vmatmul.mubr.msk.bf16.vlgmr.msra.gmra.mrb[0].mxu0 %vm1524_vm8, %v5595_v60  ;;  %v1470_v1 = vrot.slane %v13287_v2, 5  ;;  %v1028_v16 = vrot.slane %v11531_v49, %v12823_v11  ;;  %v13313_v0 = vunpack.c.l.b16 %v1000_v29  ;;  %v1472_v55 = vrot.slane %v13298_v53, 4  ;;  %v11533_v57 = vld.sshfl [vmem:[%s12821_s14 + $0x5d] sm:$0x1 pattern:$0x75316420] }
  0x63   : > { %12606 = vmatpush3.bf16.msra.mxu0 %v12844_v27  ;;  %v1467_v60 = vsel %vm1405_vm2, %v1466_v21, %v1465_v20  ;;  %v1042_v48 = vrot.slane %v11532_v14, %v12823_v11  ;;  %v13319_v56 = vunpack.c.l.b16 %v1014_v51  ;;  %v1474_v27 = vrot.slane %v13305_v47, 3  ;;  %v11534_v29 = vld.sshfl [vmem:[%s12821_s14 + $0x5e] sm:$0x1 pattern:$0x75316420] }
  0x64   : > { %v1469_v32 = vsel %vm1408_vm3, %v1468_v9, %v1467_v60  ;;  %12725 = vmatprep.subr.msk.bf16.mxu0 %vm1537_vm0, %v13294_v6  ;;  %v1056_v49 = vrot.slane %v11533_v57, %v12823_v11  ;;  %v13327_v20 = vunpack.c.l.b16 %v1028_v16  ;;  %v1476_v43 = vrot.slane %v13313_v0, 2  ;;  %v11535_v14 = vld.sshfl [vmem:[%s12821_s14 + $0x5f] sm:$0x1 pattern:$0x75316420] }
  0x65   : > { %15444 = vst [vmem:[#allocation2_spill] sm:$0xff] %v13319_v56  ;;  %v1471_v21 = vsel %vm1411_vm4, %v1470_v1, %v1469_v32  ;;  %v1070_v51 = vrot.slane %v11534_v29, %v12823_v11  ;;  %v13333_v33 = vunpack.c.l.b16 %v1042_v48  ;;  %v1478_v60 = vrot.slane %v13319_v56, 1  ;;  %v11536_v24 = vld.sshfl [vmem:[%s12821_s14 + $0x60] sm:$0x1 pattern:$0x75316420] }
  0x66   : > { %v1473_v9 = vsel %vm1414_vm5, %v1472_v55, %v1471_v21  ;;  %v1084_v10 = vrot.slane %v11535_v14, %v12823_v11  ;;  %v13339_v57 = vunpack.c.l.b16 %v1056_v49  ;;  %v1635_v1 = vsel %vm1402_vm1, %v1634_v7, %v13006_v54  ;;  %v11537_v32 = vld.sshfl [vmem:[%s12821_s14 + $0x61] sm:$0x1 pattern:$0x75316420] }
  0x67   : > { %15445 = vst [vmem:[#allocation3_spill] sm:$0xff] %v13333_v33  ;;  %v1475_v16 = vsel %vm1417_vm6, %v1474_v27, %v1473_v9  ;;  %v1098_v48 = vrot.slane %v11536_v24, %v12823_v11  ;;  %v13348_v55 = vunpack.c.l.b16 %v1070_v51  ;;  %v1479_v21 = vsel %vm1402_vm1, %v13327_v20, %v1478_v60  ;;  %v11925_v7 = vld.sshfl [vmem:[%s12821_s14 + $0x51] sm:$0x1 pattern:$0x75316420] }
  0x68   : > { %15446 = vst [vmem:[#allocation4_spill] sm:$0xff] %v13339_v57  ;;  %v1477_v29 = vsel %vm1420_vm7, %v1476_v43, %v1475_v16  ;;  %v1112_v49 = vrot.slane %v11537_v32, %v12823_v11  ;;  %v13354_v14 = vunpack.c.l.b16 %v1084_v10  ;;  %v1480_v58 = vrot.slane %v13333_v33, 7  ;;  %v11926_v51 = vld.sshfl [vmem:[%s12821_s14 + $0x52] sm:$0x1 pattern:$0x75316420] }
  0x69   : > { %15447 = vst [vmem:[#allocation5_spill] sm:$0xff] %v13348_v55  ;;  %v1482_v54 = vrot.slane %v13339_v57, 6  ;;  %v13359_v27 = vunpack.c.l.b16 %v1098_v48  ;;  %v1484_v24 = vrot.slane %v13348_v55, 5  ;;  %v4983_v43 = vrot.slane %v11925_v7, %v12823_v11 }
  0x6a   : > { %v15449_v9 = vrot.slane %v13016_v63, 6  ;;  %v13367_v10 = vunpack.c.l.b16 %v1112_v49  ;;  %v1481_v16 = vsel %vm1405_vm2, %v1480_v58, %v1479_v21  ;;  %v1486_v32 = vrot.slane %v13354_v14, 4  ;;  %v11927_v56 = vld.sshfl [vmem:[%s12821_s14 + $0x53] sm:$0x1 pattern:$0x75316420] }
  0x6b   : > { %15448 = vst [vmem:[#allocation6_spill] sm:$0xff] %v13359_v27  ;;  %v4997_v48 = vrot.slane %v11926_v51, %v12823_v11  ;;  %v1483_v55 = vsel %vm1408_vm3, %v1482_v54, %v1481_v16  ;;  %v1488_v57 = vrot.slane %v13359_v27, 3  ;;  %v11928_v7 = vld.sshfl [vmem:[%s12821_s14 + $0x54] sm:$0x1 pattern:$0x75316420]  ;;  %v5011_v63 = vrot.slane %v11927_v56, %v12823_v11 }
  0x6c   : > { %v1637_v60 = vsel %vm1405_vm2, %v15449_v9, %v1635_v1  ;;  %15450 = vst [vmem:[#allocation7_spill] sm:$0xff] %v13367_v10  ;;  %v5450_v33 = vunpack.c.l.b16 %v4983_v43  ;;  %v1485_v1 = vsel %vm1411_vm4, %v1484_v24, %v1483_v55  ;;  %v1490_v49 = vrot.slane %v13367_v10, 2  ;;  %v11929_v21 = vld.sshfl [vmem:[%s12821_s14 + $0x55] sm:$0x1 pattern:$0x75316420] }
  0x6d   : > { %v5025_v58 = vrot.slane %v11928_v7, %v12823_v11  ;;  %v13381_v9 = vunpack.c.l.b16 %v4997_v48  ;;  %v1487_v51 = vsel %vm1414_vm5, %v1486_v32, %v1485_v1  ;;  %v11930_v54 = vld.sshfl [vmem:[%s12821_s14 + $0x56] sm:$0x1 pattern:$0x75316420]  ;;  %v5039_v16 = vrot.slane %v11929_v21, %v12823_v11 }
  0x6e   : > { %v13386_v27 = vunpack.c.l.b16 %v5011_v63  ;;  %v5538_v56 = vrot.slane %v5450_v33, 1  ;;  %v1489_v55 = vsel %vm1417_vm6, %v1488_v57, %v1487_v51  ;;  %v11931_v24 = vld.sshfl [vmem:[%s12821_s14 + $0x57] sm:$0x1 pattern:$0x75316420]  ;;  %v5053_v43 = vrot.slane %v11930_v54, %v12823_v11 }
  0x6f   : > { %v13391_v10 = vunpack.c.l.b16 %v5025_v58  ;;  %v15453_v48 = vrot.slane %v13022_v5, 5  ;;  %v1491_v32 = vsel %vm1420_vm7, %v1490_v49, %v1489_v55  ;;  %v11932_v1 = vld.sshfl [vmem:[%s12821_s14 + $0x58] sm:$0x1 pattern:$0x75316420]  ;;  %v5067_v63 = vrot.slane %v11931_v24, %v12823_v11 }
  0x70   : > { %15451 = vst [vmem:[#allocation8_spill] sm:$0xff] %v13386_v27  ;;  %v13399_v21 = vunpack.c.l.b16 %v5039_v16  ;;  %v5539_v33 = vsel %vm1402_vm1, %v13381_v9, %v5538_v56  ;;  %v1522_v57 = vpack.c.b16 %v1491_v32, %v1477_v29  ;;  %v11933_v51 = vld.sshfl [vmem:[%s12821_s14 + $0x63] sm:$0x1 pattern:$0x75316420]  ;;  %v5081_v58 = vrot.slane %v11932_v1, %v12823_v11 }
  0x71   : > { %15452 = vst [vmem:[#allocation9_spill] sm:$0xff] %v13391_v10  ;;  %v1639_v7 = vsel %vm1408_vm3, %v15453_v48, %v1637_v60  ;;  %v13405_v54 = vunpack.c.l.b16 %v5053_v43  ;;  %v15405_v5 = vrot.slane %v13386_v27, 7  ;;  %v11934_v60 = vld.sshfl [vmem:[%s12821_s14 + $0x64] sm:$0x1 pattern:$0x75316420]  ;;  %v5095_v49 = vrot.slane %v11933_v51, %v12823_v11 }
  0x72   : > { %15454 = vst [vmem:[#allocation10_spill] sm:$0xff] %v13399_v21  ;;  %v13410_v55 = vunpack.c.l.b16 %v5067_v63  ;;  %v15407_v16 = vrot.slane %v13391_v10, 6  ;;  %12561 = vmatprep.mubr.msk.bf16.mxu1 %vm1524_vm8, %v1522_v57  ;;  %v11935_v29 = vld.sshfl [vmem:[%s12821_s14 + $0x65] sm:$0x1 pattern:$0x75316420]  ;;  %v5109_v56 = vrot.slane %v11934_v60, %v12823_v11  ;;  %v13417_v43 = vunpack.c.l.b16 %v5081_v58 }
  0x73   : > { %15455 = vst [vmem:[#allocation11_spill] sm:$0xff] %v13405_v54  ;;  %v5541_v48 = vsel %vm1405_vm2, %v15405_v5, %v5539_v33  ;;  %v11936_v1 = vld.sshfl [vmem:[%s12821_s14 + $0x66] sm:$0x1 pattern:$0x75316420]  ;;  %v5123_v63 = vrot.slane %v11935_v29, %v12823_v11  ;;  %v5458_v51 = vunpack.c.l.b16 %v5095_v49  ;;  %v15458_v33 = vrot.slane %v13399_v21, 5 }
  0x74   : > { %15456 = vst [vmem:[#allocation12_spill] sm:$0xff] %v13410_v55  ;;  %15457 = vst [vmem:[#allocation13_spill] sm:$0xff] %v13417_v43  ;;  %v5543_v57 = vsel %vm1408_vm3, %v15407_v16, %v5541_v48  ;;  %v11937_v58 = vld.sshfl [vmem:[%s12821_s14 + $0x67] sm:$0x1 pattern:$0x75316420]  ;;  %v5137_v60 = vrot.slane %v11936_v1, %v12823_v11  ;;  %v13431_v27 = vunpack.c.l.b16 %v5109_v56 }
  0x75   : > { %v5545_v5 = vsel %vm1411_vm4, %v15458_v33, %v5543_v57  ;;  %v11938_v29 = vld.sshfl [vmem:[%s12821_s14 + $0x68] sm:$0x1 pattern:$0x75316420]  ;;  %v5151_v49 = vrot.slane %v11937_v58, %v12823_v11  ;;  %v13439_v10 = vunpack.c.l.b16 %v5123_v63  ;;  %v15459_v48 = vrot.slane %v13405_v54, 4 }
  0x76   : > { %v5552_v24 = vrot.slane %v5458_v51, 1  ;;  %v11939_v1 = vld.sshfl [vmem:[%s12821_s14 + $0x69] sm:$0x1 pattern:$0x75316420]  ;;  %v5165_v56 = vrot.slane %v11938_v29, %v12823_v11  ;;  %v13446_v21 = vunpack.c.l.b16 %v5137_v60  ;;  %v15461_v57 = vrot.slane %v13410_v55, 3 }
  0x77   : > { %v5547_v16 = vsel %vm1414_vm5, %v15459_v48, %v5545_v5  ;;  %v15462_v58 = vrot.slane %v13028_v19, 4  ;;  %v11940_v32 = vld.sshfl [vmem:[%s12821_s14 + $0x6a] sm:$0x1 pattern:$0x75316420]  ;;  %v5179_v54 = vrot.slane %v11939_v1, %v12823_v11  ;;  %v13456_v5 = vunpack.c.l.b16 %v5151_v49 }
  0x78   : > { %15460 = vst [vmem:[#allocation14_spill] sm:$0xff] %v13446_v21  ;;  %v5549_v33 = vsel %vm1417_vm6, %v15461_v57, %v5547_v16  ;;  %v15464_v51 = vrot.slane %v13417_v43, 2  ;;  %v5553_v60 = vsel %vm1402_vm1, %v13431_v27, %v5552_v24  ;;  %v5193_v48 = vrot.slane %v11940_v32, %v12823_v11  ;;  %v11538_v1 = vld.sshfl [vmem:[%s12821_s14 + $0x6c] sm:$0x1 pattern:$0x75316420] }
  0x79   : > { %v1641_v63 = vsel %vm1411_vm4, %v15462_v58, %v1639_v7  ;;  %15463 = vst [vmem:[#allocation15_spill] sm:$0xff] %v13456_v5  ;;  %v13464_v16 = vunpack.c.l.b16 %v5165_v56  ;;  %v15412_v19 = vrot.slane %v13439_v10, 7  ;;  %v13469_v49 = vunpack.c.l.b16 %v5179_v54  ;;  %v11539_v58 = vld.sshfl [vmem:[%s12821_s14 + $0x6d] sm:$0x1 pattern:$0x75316420] }
  0x7a   : > { %v5551_v29 = vsel %vm1420_vm7, %v15464_v51, %v5549_v33  ;;  %v1126_v33 = vrot.slane %v11538_v1, %v12823_v11  ;;  %v15467_v24 = vrot.slane %v13034_v17, 3  ;;  %v13477_v56 = vunpack.c.l.b16 %v5193_v48  ;;  %v11540_v7 = vld.sshfl [vmem:[%s12821_s14 + $0x6e] sm:$0x1 pattern:$0x75316420] }
  0x7b   : > { %15465 = vst [vmem:[#allocation16_spill] sm:$0xff] %v13464_v16  ;;  %15466 = vst [vmem:[#allocation17_spill] sm:$0xff] %v13469_v49  ;;  %v5555_v51 = vsel %vm1405_vm2, %v15412_v19, %v5553_v60  ;;  %v1140_v57 = vrot.slane %v11539_v58, %v12823_v11  ;;  %v15469_v43 = vrot.slane %v13446_v21, 6  ;;  %v1154_v48 = vrot.slane %v11540_v7, %v12823_v11 }
  0x7c   : > { %v1643_v32 = vsel %vm1414_vm5, %v15467_v24, %v1641_v63  ;;  %15468 = vst [vmem:[#allocation18_spill] sm:$0xff] %v13477_v56  ;;  %v11541_v63 = vld.sshfl [vmem:[%s12821_s14 + $0x6f] sm:$0x1 pattern:$0x75316420]  ;;  %v13491_v24 = vunpack.c.l.b16 %v1126_v33  ;;  %v15471_v55 = vrot.slane %v13456_v5, 5 }
  0x7d   : > { %v5557_v1 = vsel %vm1408_vm3, %v15469_v43, %v5555_v51  ;;  %v11542_v58 = vld.sshfl [vmem:[%s12821_s14 + $0x70] sm:$0x1 pattern:$0x75316420]  ;;  %v1168_v54 = vrot.slane %v11541_v63, %v12823_v11  ;;  %v13499_v21 = vunpack.c.l.b16 %v1140_v57  ;;  %v15472_v43 = vrot.slane %v13464_v16, 4 }
  0x7e   : > { %15470 = vst [vmem:[#allocation19_spill] sm:$0xff] %v13491_v24  ;;  %v5559_v60 = vsel %vm1411_vm4, %v15471_v55, %v5557_v1  ;;  %v11543_v7 = vld.sshfl [vmem:[%s12821_s14 + $0x71] sm:$0x1 pattern:$0x75316420]  ;;  %v1182_v33 = vrot.slane %v11542_v58, %v12823_v11  ;;  %v13506_v17 = vunpack.c.l.b16 %v1154_v48  ;;  %v1492_v55 = vrot.slane %v13491_v24, 1 }
  0x7f   : > { %v5561_v51 = vsel %vm1414_vm5, %v15472_v43, %v5559_v60  ;;  %v15474_v1 = vrot.slane %v13469_v49, 3  ;;  %v11544_v63 = vld.sshfl [vmem:[%s12821_s14 + $0x72] sm:$0x1 pattern:$0x75316420]  ;;  %v1196_v57 = vrot.slane %v11543_v7, %v12823_v11  ;;  %v13514_v5 = vunpack.c.l.b16 %v1168_v54 }
  0x80   : > { %15473 = vst [vmem:[#allocation20_spill] sm:$0xff] %v13506_v17  ;;  %v15476_v60 = vrot.slane %v13039_v28, 2  ;;  %v15477_v58 = vrot.slane %v13477_v56, 2  ;;  %v1210_v49 = vrot.slane %v11544_v63, %v12823_v11  ;;  %v13524_v16 = vunpack.c.l.b16 %v1182_v33 }
  0x81   : > { %v5563_v19 = vsel %vm1417_vm6, %v15474_v1, %v5561_v51  ;;  %15475 = vst [vmem:[#allocation21_spill] sm:$0xff] %v13514_v5  ;;  %v11545_v24 = vld.sshfl [vmem:[%s12821_s14 + $0x73] sm:$0x1 pattern:$0x75316420]  ;;  %v1493_v51 = vsel %vm1402_vm1, %v13499_v21, %v1492_v55  ;;  %v13530_v1 = vunpack.c.l.b16 %v1196_v57  ;;  %v1496_v33 = vrot.slane %v13514_v5, 6 }
  0x82   : > { %v1645_v43 = vsel %vm1417_vm6, %v15476_v60, %v1643_v32  ;;  %v5565_v48 = vsel %vm1420_vm7, %v15477_v58, %v5563_v19  ;;  %15478 = vst [vmem:[#allocation22_spill] sm:$0xff] %v13524_v16  ;;  %v11546_v54 = vld.sshfl [vmem:[%s12821_s14 + $0x7e] sm:$0x1 pattern:$0x75316420]  ;;  %v1224_v28 = vrot.slane %v11545_v24, %v12823_v11  ;;  %v1494_v32 = vrot.slane %v13506_v17, 7 }
  0x83   : > { %v5596_v7 = vpack.c.b16 %v5565_v48, %v5551_v29  ;;  %15479 = vst [vmem:[#allocation23_spill] sm:$0xff] %v13530_v1  ;;  %v11547_v60 = vld.sshfl [vmem:[%s12821_s14 + $0x7f] sm:$0x1 pattern:$0x75316420]  ;;  %v1238_v19 = vrot.slane %v11546_v54, %v12823_v11  ;;  %v13535_v58 = vunpack.c.l.b16 %v1210_v49  ;;  %v1498_v63 = vrot.slane %v13524_v16, 5 }
  0x84   : > { %v11548_v29 = vld.sshfl [vmem:[%s12821_s14 + $0x80] sm:$0x1 pattern:$0x75316420]  ;;  %v1252_v24 = vrot.slane %v11547_v60, %v12823_v11  ;;  %v13542_v55 = vunpack.c.l.b16 %v1224_v28  ;;  %v1495_v57 = vsel %vm1405_vm2, %v1494_v32, %v1493_v51  ;;  %v1500_v48 = vrot.slane %v13530_v1, 4 }
  0x85   : > { %15480 = vst [vmem:[#allocation24_spill] sm:$0xff] %v13535_v58  ;;  %12601 = vmatprep.mubr.msk.bf16.mxu0 %vm1524_vm8, %v5596_v7  ;;  %v11549_v54 = vld.sshfl [vmem:[%s12821_s14 + $0x81] sm:$0x1 pattern:$0x75316420]  ;;  %v1266_v49 = vrot.slane %v11548_v29, %v12823_v11  ;;  %v13548_v56 = vunpack.c.l.b16 %v1238_v19  ;;  %v1497_v16 = vsel %vm1408_vm3, %v1496_v33, %v1495_v57  ;;  %v1502_v7 = vrot.slane %v13535_v58, 3 }
  0x86   : > { %v11550_v5 = vld.sshfl [vmem:[%s12821_s14 + $0x82] sm:$0x1 pattern:$0x75316420]  ;;  %v1280_v60 = vrot.slane %v11549_v54, %v12823_v11  ;;  %v13554_v28 = vunpack.c.l.b16 %v1252_v24  ;;  %v1499_v51 = vsel %vm1411_vm4, %v1498_v63, %v1497_v16  ;;  %v1504_v32 = vrot.slane %v13542_v55, 2 }
  0x87   : > { %15481 = vst [vmem:[#allocation25_spill] sm:$0xff] %v13548_v56  ;;  %v11551_v1 = vld.sshfl [vmem:[%s12821_s14 + $0x83] sm:$0x1 pattern:$0x75316420]  ;;  %v1294_v17 = vrot.slane %v11550_v5, %v12823_v11  ;;  %v13560_v29 = vunpack.c.l.b16 %v1266_v49  ;;  %v1501_v19 = vsel %vm1414_vm5, %v1500_v48, %v1499_v51  ;;  %v1506_v33 = vrot.slane %v13548_v56, 1 }
  0x88   : > { %15482 = vst [vmem:[#allocation26_spill] sm:$0xff] %v13554_v28  ;;  %v11552_v57 = vld.sshfl [vmem:[%s12821_s14 + $0x84] sm:$0x1 pattern:$0x75316420]  ;;  %v1308_v58 = vrot.slane %v11551_v1, %v12823_v11  ;;  %v13566_v24 = vunpack.c.l.b16 %v1280_v60  ;;  %v1503_v16 = vsel %vm1417_vm6, %v1502_v7, %v1501_v19  ;;  %v15485_v63 = vrot.slane %v13046_v25, 1 }
  0x89   : > { %15483 = vst [vmem:[#allocation27_spill] sm:$0xff] %v13560_v29  ;;  %v11553_v5 = vld.sshfl [vmem:[%s12821_s14 + $0x85] sm:$0x1 pattern:$0x75316420]  ;;  %v1322_v49 = vrot.slane %v11552_v57, %v12823_v11  ;;  %v13576_v48 = vunpack.c.l.b16 %v1294_v17  ;;  %v1505_v51 = vsel %vm1420_vm7, %v1504_v32, %v1503_v16  ;;  %v1507_v1 = vsel %vm1402_vm1, %v13554_v28, %v1506_v33 }
  0x8a   : > { %15484 = vst [vmem:[#allocation28_spill] sm:$0xff] %v13566_v24  ;;  %v13572_v54 = vsel %vm1420_vm7, %v15485_v63, %v1645_v43  ;;  %v1336_v60 = vrot.slane %v11553_v5, %v12823_v11  ;;  %v13582_v56 = vunpack.c.l.b16 %v1308_v58  ;;  %v1508_v25 = vrot.slane %v13560_v29, 7  ;;  %v11941_v7 = vld.sshfl [vmem:[%s12821_s14 + $0x75] sm:$0x1 pattern:$0x75316420] }
  0x8b   : > { %15486 = vst [vmem:[#allocation29_spill] sm:$0xff] %v13576_v48  ;;  %v1510_v43 = vrot.slane %v13566_v24, 6  ;;  %v13587_v19 = vunpack.c.l.b16 %v1322_v49  ;;  %v1512_v17 = vrot.slane %v13576_v48, 5  ;;  %v5207_v32 = vrot.slane %v11941_v7, %v12823_v11 }
  0x8c   : > { %v11942_v57 = vld.sshfl [vmem:[%s12821_s14 + $0x76] sm:$0x1 pattern:$0x75316420]  ;;  %v15488_v33 = vrot.slane %v13058_v45, 7  ;;  %v13596_v16 = vunpack.c.l.b16 %v1336_v60  ;;  %v1509_v63 = vsel %vm1405_vm2, %v1508_v25, %v1507_v1  ;;  %v1514_v5 = vrot.slane %v13582_v56, 4 }
  0x8d   : > { %15487 = vst [vmem:[#allocation30_spill] sm:$0xff] %v13587_v19  ;;  %v11943_v49 = vld.sshfl [vmem:[%s12821_s14 + $0x77] sm:$0x1 pattern:$0x75316420]  ;;  %v5221_v24 = vrot.slane %v11942_v57, %v12823_v11  ;;  %v1511_v48 = vsel %vm1408_vm3, %v1510_v43, %v1509_v63  ;;  %v1516_v7 = vrot.slane %v13587_v19, 3  ;;  %v5466_v28 = vunpack.c.l.b16 %v5207_v32 }
  0x8e   : > { %v1649_v58 = vsel %vm1402_vm1, %v15488_v33, %v13052_v18  ;;  %15489 = vst [vmem:[#allocation31_spill] sm:$0xff] %v13596_v16  ;;  %v11944_v29 = vld.sshfl [vmem:[%s12821_s14 + $0x78] sm:$0x1 pattern:$0x75316420]  ;;  %v5235_v45 = vrot.slane %v11943_v49, %v12823_v11  ;;  %v1513_v18 = vsel %vm1411_vm4, %v1512_v17, %v1511_v48  ;;  %v1518_v60 = vrot.slane %v13596_v16, 2 }
  0x8f   : > { %v11945_v1 = vld.sshfl [vmem:[%s12821_s14 + $0x79] sm:$0x1 pattern:$0x75316420]  ;;  %v5249_v25 = vrot.slane %v11944_v29, %v12823_v11  ;;  %v13610_v33 = vunpack.c.l.b16 %v5221_v24  ;;  %v1515_v57 = vsel %vm1414_vm5, %v1514_v5, %v1513_v18  ;;  %v5566_v49 = vrot.slane %v5466_v28, 1 }
  0x90   : > { %v11946_v43 = vld.sshfl [vmem:[%s12821_s14 + $0x7a] sm:$0x1 pattern:$0x75316420]  ;;  %v5263_v63 = vrot.slane %v11945_v1, %v12823_v11  ;;  %v13615_v19 = vunpack.c.l.b16 %v5235_v45  ;;  %v1517_v48 = vsel %vm1417_vm6, %v1516_v7, %v1515_v57  ;;  %v15491_v29 = vrot.slane %v13064_v61, 6 }
  0x91   : > { %v11947_v17 = vld.sshfl [vmem:[%s12821_s14 + $0x7b] sm:$0x1 pattern:$0x75316420]  ;;  %v5277_v32 = vrot.slane %v11946_v43, %v12823_v11  ;;  %v13620_v16 = vunpack.c.l.b16 %v5249_v25  ;;  %v1519_v5 = vsel %vm1420_vm7, %v1518_v60, %v1517_v48  ;;  %v5567_v28 = vsel %vm1402_vm1, %v13610_v33, %v5566_v49 }
  0x92   : > { %v1651_v24 = vsel %vm1405_vm2, %v15491_v29, %v1649_v58  ;;  %v11948_v18 = vld.sshfl [vmem:[%s12821_s14 + $0x7c] sm:$0x1 pattern:$0x75316420]  ;;  %v5291_v45 = vrot.slane %v11947_v17, %v12823_v11  ;;  %v13628_v1 = vunpack.c.l.b16 %v5263_v63  ;;  %v1523_v7 = vpack.c.b16 %v1519_v5, %v1505_v51 }
  0x93   : > { %15490 = vst [vmem:[#allocation32_spill] sm:$0xff] %v13620_v16  ;;  %v11949_v57 = vld.sshfl [vmem:[%s12821_s14 + $0x87] sm:$0x1 pattern:$0x75316420]  ;;  %v5305_v25 = vrot.slane %v11948_v18, %v12823_v11  ;;  %v13634_v43 = vunpack.c.l.b16 %v5277_v32  ;;  %v15431_v61 = vrot.slane %v13615_v19, 7 }
  0x94   : > { %15492 = vst [vmem:[#allocation33_spill] sm:$0xff] %v13628_v1  ;;  %v11950_v58 = vld.sshfl [vmem:[%s12821_s14 + $0x88] sm:$0x1 pattern:$0x75316420]  ;;  %v5319_v60 = vrot.slane %v11949_v57, %v12823_v11  ;;  %v13639_v48 = vunpack.c.l.b16 %v5291_v45  ;;  %v15432_v63 = vrot.slane %v13620_v16, 6  ;;  %12562 = vmatmul.mubr.msk.bf16.gmra.mrb[4].mxu1 %vm1524_vm8, %v1523_v7 }
  0x95   : > { %15493 = vst [vmem:[#allocation34_spill] sm:$0xff] %v13634_v43  ;;  %v11951_v51 = vld.sshfl [vmem:[%s12821_s14 + $0x89] sm:$0x1 pattern:$0x75316420]  ;;  %v5333_v49 = vrot.slane %v11950_v58, %v12823_v11  ;;  %v13646_v32 = vunpack.c.l.b16 %v5305_v25  ;;  %v5569_v29 = vsel %vm1405_vm2, %v15431_v61, %v5567_v28  ;;  %v15496_v25 = vpack.c.b16 %v13283_v35, %v13123_v34 }
  0x96   : > { %15494 = vst [vmem:[#allocation35_spill] sm:$0xff] %v13639_v48  ;;  %v11952_v18 = vld.sshfl [vmem:[%s12821_s14 + $0x8a] sm:$0x1 pattern:$0x75316420]  ;;  %v5347_v45 = vrot.slane %v11951_v51, %v12823_v11  ;;  %v5474_v57 = vunpack.c.l.b16 %v5319_v60  ;;  %v5571_v7 = vsel %vm1408_vm3, %v15432_v63, %v5569_v29  ;;  %v15497_v51 = vrot.slane %v13628_v1, 5 }
  0x97   : > { %15495 = vst [vmem:[#allocation36_spill] sm:$0xff] %v13646_v32  ;;  %12567 = vmatprep.mubr.msk.bf16.mxu1 %vm1524_vm8, %v15496_v25  ;;  %v11953_v28 = vld.sshfl [vmem:[%s12821_s14 + $0x8b] sm:$0x1 pattern:$0x75316420]  ;;  %v5361_v58 = vrot.slane %v11952_v18, %v12823_v11  ;;  %v13664_v61 = vunpack.c.l.b16 %v5333_v49  ;;  %v15498_v34 = vrot.slane %v13634_v43, 4 }
  0x98   : > { %v5573_v60 = vsel %vm1411_vm4, %v15497_v51, %v5571_v7  ;;  %v11954_v29 = vld.sshfl [vmem:[%s12821_s14 + $0x8c] sm:$0x1 pattern:$0x75316420]  ;;  %v5375_v63 = vrot.slane %v11953_v28, %v12823_v11  ;;  %v13672_v17 = vunpack.c.l.b16 %v5347_v45  ;;  %v5580_v25 = vrot.slane %v5474_v57, 1 }
  0x99   : > { %v5575_v35 = vsel %vm1414_vm5, %v15498_v34, %v5573_v60  ;;  %v11955_v18 = vld.sshfl [vmem:[%s12821_s14 + $0x8d] sm:$0x1 pattern:$0x75316420]  ;;  %v5389_v49 = vrot.slane %v11954_v29, %v12823_v11  ;;  %v13679_v1 = vunpack.c.l.b16 %v5361_v58  ;;  %v15500_v7 = vrot.slane %v13639_v48, 3 }
  0x9a   : > { %v15501_v28 = vrot.slane %v13070_v4, 5  ;;  %v11956_v5 = vld.sshfl [vmem:[%s12821_s14 + $0x8e] sm:$0x1 pattern:$0x75316420]  ;;  %v5403_v43 = vrot.slane %v11955_v18, %v12823_v11  ;;  %v13689_v60 = vunpack.c.l.b16 %v5375_v63  ;;  %v15503_v57 = vrot.slane %v13646_v32, 2 }
  0x9b   : > { %15499 = vst [vmem:[#allocation37_spill] sm:$0xff] %v13679_v1  ;;  %v5577_v51 = vsel %vm1417_vm6, %v15500_v7, %v5575_v35  ;;  %v5581_v58 = vsel %vm1402_vm1, %v13664_v61, %v5580_v25  ;;  %v5417_v34 = vrot.slane %v11956_v5, %v12823_v11  ;;  %v13697_v35 = vunpack.c.l.b16 %v5389_v49  ;;  %v12026_v18 = vld.sshfl [vmem:[%s12821_s14 + $0xa] sm:$0x1 pattern:$0x75316420] }
  0x9c   : > { %v1653_v45 = vsel %vm1408_vm3, %v15501_v28, %v1651_v24  ;;  %15502 = vst [vmem:[#allocation38_spill] sm:$0xff] %v13689_v60  ;;  %v5579_v29 = vsel %vm1420_vm7, %v15503_v57, %v5577_v51  ;;  %v15437_v4 = vrot.slane %v13672_v17, 7  ;;  %v13702_v63 = vunpack.c.l.b16 %v5403_v43  ;;  %v12027_v28 = vld.sshfl [vmem:[%s12821_s14 + $0xb] sm:$0x1 pattern:$0x75316420] }
  0x9d   : > { %15504 = vst [vmem:[#allocation39_spill] sm:$0xff] %v13697_v35  ;;  %v5830_v51 = vrot.slane %v12026_v18, %v12823_v11  ;;  %v15506_v25 = vrot.slane %v13076_v13, 4  ;;  %v13710_v49 = vunpack.c.l.b16 %v5417_v34  ;;  %v12028_v24 = vld.sshfl [vmem:[%s12821_s14 + $0xc] sm:$0x1 pattern:$0x75316420]  ;;  %v5844_v7 = vrot.slane %v12027_v28, %v12823_v11 }
  0x9e   : > { %15505 = vst [vmem:[#allocation40_spill] sm:$0xff] %v13702_v63  ;;  %v5583_v57 = vsel %vm1405_vm2, %v15437_v4, %v5581_v58  ;;  %v15508_v32 = vrot.slane %v13679_v1, 6  ;;  %v5858_v34 = vrot.slane %v12028_v24, %v12823_v11  ;;  %v15509_v48 = vrot.slane %v13689_v60, 5 }
  0x9f   : > { %v1655_v5 = vsel %vm1411_vm4, %v15506_v25, %v1653_v45  ;;  %15507 = vst [vmem:[#allocation41_spill] sm:$0xff] %v13710_v49  ;;  %v12029_v45 = vld.sshfl [vmem:[%s12821_s14 + $0xd] sm:$0x1 pattern:$0x75316420]  ;;  %v6713_v25 = vunpack.c.l.b16 %v5830_v51  ;;  %v6714_v1 = vunpack.c.l.b16 %v5844_v7  ;;  %v15511_v60 = vrot.slane %v13082_v23, 3 }
  0xa0   : > { %v5585_v18 = vsel %vm1408_vm3, %v15508_v32, %v5583_v57  ;;  %v12030_v43 = vld.sshfl [vmem:[%s12821_s14 + $0xe] sm:$0x1 pattern:$0x75316420]  ;;  %v5872_v28 = vrot.slane %v12029_v45, %v12823_v11  ;;  %v15510_v32 = vrot.slane %v13697_v35, 4  ;;  %v6715_v51 = vunpack.c.l.b16 %v5858_v34 }
  0xa1   : > { %v5587_v58 = vsel %vm1411_vm4, %v15509_v48, %v5585_v18  ;;  %v12031_v13 = vld.sshfl [vmem:[%s12821_s14 + $0xf] sm:$0x1 pattern:$0x75316420]  ;;  %v5886_v24 = vrot.slane %v12030_v43, %v12823_v11  ;;  %v1657_v48 = vsel %vm1414_vm5, %v15511_v60, %v1655_v5  ;;  %v15512_v18 = vrot.slane %v13702_v63, 3 }
  0xa2   : > { %v5589_v57 = vsel %vm1414_vm5, %v15510_v32, %v5587_v58  ;;  %v12032_v45 = vld.sshfl [vmem:[%s12821_s14 + $0x10] sm:$0x1 pattern:$0x75316420]  ;;  %v5900_v7 = vrot.slane %v12031_v13, %v12823_v11  ;;  %v6716_v35 = vunpack.c.l.b16 %v5872_v28  ;;  %v6777_v16 = vrot.slane %v6714_v1, 7 }
  0xa3   : > { %v5591_v4 = vsel %vm1417_vm6, %v15512_v18, %v5589_v57  ;;  %v15513_v58 = vrot.slane %v13710_v49, 2  ;;  %v12033_v43 = vld.sshfl [vmem:[%s12821_s14 + $0x11] sm:$0x1 pattern:$0x75316420]  ;;  %v5914_v23 = vrot.slane %v12032_v45, %v12823_v11  ;;  %v6717_v34 = vunpack.c.l.b16 %v5886_v24 }
  0xa4   : > { %v6779_v60 = vrot.slane %v6715_v51, 6  ;;  %v12034_v63 = vld.sshfl [vmem:[%s12821_s14 + $0x1c] sm:$0x1 pattern:$0x75316420]  ;;  %v5928_v57 = vrot.slane %v12033_v43, %v12823_v11  ;;  %v6718_v18 = vunpack.c.l.b16 %v5900_v7  ;;  %v6778_v13 = vsel %vm1402_vm1, %v6777_v16, %v6713_v25 }
  0xa5   : > { %v5593_v32 = vsel %vm1420_vm7, %v15513_v58, %v5591_v4  ;;  %v12035_v28 = vld.sshfl [vmem:[%s12821_s14 + $0x1d] sm:$0x1 pattern:$0x75316420]  ;;  %v5942_v1 = vrot.slane %v12034_v63, %v12823_v11  ;;  %v6719_v49 = vunpack.c.l.b16 %v5914_v23  ;;  %v6781_v58 = vrot.slane %v6716_v35, 5 }
  0xa6   : > { %v5597_v5 = vpack.c.b16 %v5593_v32, %v5579_v29  ;;  %v6780_v4 = vsel %vm1405_vm2, %v6779_v60, %v6778_v13  ;;  %v12036_v24 = vld.sshfl [vmem:[%s12821_s14 + $0x1e] sm:$0x1 pattern:$0x75316420]  ;;  %v5956_v29 = vrot.slane %v12035_v28, %v12823_v11  ;;  %v6720_v51 = vunpack.c.l.b16 %v5928_v57 }
  0xa7   : > { %v6783_v45 = vrot.slane %v6717_v34, 4  ;;  %v6785_v32 = vrot.slane %v6718_v18, 3  ;;  %v12037_v7 = vld.sshfl [vmem:[%s12821_s14 + $0x1f] sm:$0x1 pattern:$0x75316420]  ;;  %v5970_v16 = vrot.slane %v12036_v24, %v12823_v11  ;;  %v6721_v25 = vunpack.c.l.b16 %v5942_v1 }
  0xa8   : > { %12602 = vmatmul.mubr.msk.bf16.gmra.mrb[4].mxu0 %vm1524_vm8, %v5597_v5  ;;  %v6782_v63 = vsel %vm1408_vm3, %v6781_v58, %v6780_v4  ;;  %v6787_v43 = vrot.slane %v6719_v49, 2  ;;  %v12038_v23 = vld.sshfl [vmem:[%s12821_s14 + $0x20] sm:$0x1 pattern:$0x75316420]  ;;  %v5984_v35 = vrot.slane %v12037_v7, %v12823_v11  ;;  %v6722_v60 = vunpack.c.l.b16 %v5956_v29 }
  0xa9   : > { %v6784_v5 = vsel %vm1411_vm4, %v6783_v45, %v6782_v63  ;;  %v6789_v13 = vrot.slane %v6720_v51, 1  ;;  %v12039_v28 = vld.sshfl [vmem:[%s12821_s14 + $0x21] sm:$0x1 pattern:$0x75316420]  ;;  %v5998_v34 = vrot.slane %v12038_v23, %v12823_v11  ;;  %v6723_v57 = vunpack.c.l.b16 %v5970_v16 }
  0xaa   : > { %v6786_v18 = vsel %vm1414_vm5, %v6785_v32, %v6784_v5  ;;  %v15514_v24 = vrot.slane %v13086_v40, 2  ;;  %v12040_v49 = vld.sshfl [vmem:[%s12821_s14 + $0x22] sm:$0x1 pattern:$0x75316420]  ;;  %v6012_v4 = vrot.slane %v12039_v28, %v12823_v11  ;;  %v6724_v58 = vunpack.c.l.b16 %v5984_v35 }
  0xab   : > { %v6788_v29 = vsel %vm1417_vm6, %v6787_v43, %v6786_v18  ;;  %v6791_v45 = vrot.slane %v6722_v60, 7  ;;  %v12041_v51 = vld.sshfl [vmem:[%s12821_s14 + $0x23] sm:$0x1 pattern:$0x75316420]  ;;  %v6026_v7 = vrot.slane %v12040_v49, %v12823_v11  ;;  %v6725_v63 = vunpack.c.l.b16 %v5998_v34 }
  0xac   : > { %v1659_v1 = vsel %vm1417_vm6, %v15514_v24, %v1657_v48  ;;  %v6790_v16 = vsel %vm1420_vm7, %v6789_v13, %v6788_v29  ;;  %v6793_v32 = vrot.slane %v6723_v57, 6  ;;  %v6040_v40 = vrot.slane %v12041_v51, %v12823_v11  ;;  %v12049_v24 = vld.sshfl [vmem:[%s12821_s14 + $0x35] sm:$0x1 pattern:$0x75316420] }
  0xad   : > { %v6726_v23 = vunpack.c.l.b16 %v6012_v4  ;;  %v6792_v48 = vsel %vm1402_vm1, %v6791_v45, %v6721_v25  ;;  %v6795_v5 = vrot.slane %v6724_v58, 5  ;;  %v6727_v28 = vunpack.c.l.b16 %v6026_v7  ;;  %v12057_v49 = vld.sshfl [vmem:[%s12821_s14 + $0x47] sm:$0x1 pattern:$0x75316420] }
  0xae   : > { %v6794_v35 = vsel %vm1405_vm2, %v6793_v32, %v6792_v48  ;;  %v6797_v43 = vrot.slane %v6725_v63, 4  ;;  %v15515_v60 = vrot.slane %v13092_v36, 1  ;;  %v6728_v34 = vunpack.c.l.b16 %v6040_v40 }
  0xaf   : > { %v6796_v13 = vsel %vm1408_vm3, %v6795_v5, %v6794_v35  ;;  %v6799_v57 = vrot.slane %v6726_v23, 3  ;;  %v6801_v25 = vrot.slane %v6727_v28, 2  ;;  %v6152_v58 = vrot.slane %v12049_v24, %v12823_v11 }
  0xb0   : > { %v1661_v18 = vsel %vm1420_vm7, %v15515_v60, %v1659_v1  ;;  %v6798_v4 = vsel %vm1411_vm4, %v6797_v43, %v6796_v13  ;;  %v6264_v45 = vrot.slane %v12057_v49, %v12823_v11  ;;  %v6803_v7 = vrot.slane %v6728_v34, 1 }
  0xb1   : > { %v1719_v29 = vpack.c.b16 %v1661_v18, %v13572_v54  ;;  %v6800_v51 = vsel %vm1414_vm5, %v6799_v57, %v6798_v4  ;;  %v15516_v36 = vrot.slane %v13135_v50, 7  ;;  %v15517_v54 = vrot.slane %v13203_v59, 7 }
  0xb2   : > { %v6802_v32 = vsel %vm1417_vm6, %v6801_v25, %v6800_v51  ;;  %v6736_v40 = vunpack.c.l.b16 %v6152_v58  ;;  %v6744_v23 = vunpack.c.l.b16 %v6264_v45  ;;  %v15518_v48 = vrot.slane %v13148_v39, 6 }
  0xb3   : > { %12568 = vmatmul.mubr.msk.bf16.vlgmr.msra.gmra.mrb[0].mxu1 %vm1524_vm8, %v1719_v29  ;;  %v6806_v1 = vsel %vm1402_vm1, %v15516_v36, %v13133_v30  ;;  %v6820_v63 = vsel %vm1402_vm1, %v15517_v54, %v13195_v46  ;;  %v6804_v24 = vsel %vm1420_vm7, %v6803_v7, %v6802_v32  ;;  %v15519_v28 = vrot.slane %v13155_v15, 5  ;;  %v13820_v15 = vld [vmem:[%s15379_s1 + $0x6] sm:$0x3] }
  0xb4   : > { %v6808_v5 = vsel %vm1405_vm2, %v15518_v48, %v6806_v1  ;;  %v15520_v30 = vrot.slane %v13210_v37, 6  ;;  %v8201_v46 = vsel %vm1537_vm0, %v13294_v6, 0  ;;  %v6889_v35 = vpack.c.b16 %v6804_v24, %v6790_v16  ;;  %v12065_v7 = vld.sshfl [vmem:[%s12821_s14 + $0x59] sm:$0x1 pattern:$0x75316420] }
  0xb5   : > { %v6810_v50 = vsel %vm1408_vm3, %v15519_v28, %v6808_v5  ;;  %v15521_v43 = vrot.slane %v13164_v41, 4  ;;  %v6817_v60 = vrot.slane %v6736_v40, 1  ;;  %v15522_v18 = vrot.slane %v13220_v31, 5  ;;  %v15529_v40 = vld [vmem:[#allocation4_spill] sm:$0xff]  ;;  %v15532_v24 = vld [vmem:[#allocation6_spill] sm:$0xff] }
  0xb6   : > { %v6822_v59 = vsel %vm1405_vm2, %v15520_v30, %v6820_v63  ;;  %v15523_v37 = vrot.slane %v13173_v3, 3  ;;  %v15524_v6 = vrot.slane %v13226_v62, 4  ;;  %v6831_v16 = vrot.slane %v6744_v23, 1  ;;  %12607 = vmatprep.mubr.msk.bf16.mxu0 %vm1524_vm8, %v6889_v35  ;;  %v15528_v63 = vld [vmem:[#allocation3_spill] sm:$0xff] }
  0xb7   : > { %v6812_v39 = vsel %vm1411_vm4, %v15521_v43, %v6810_v50  ;;  %v6824_v49 = vsel %vm1408_vm3, %v15522_v18, %v6822_v59  ;;  %v3022_v13 = vsel %vm1537_vm0, %v13143_v8, 0  ;;  %v15525_v31 = vrot.slane %v13181_v42, 2  ;;  %v12073_v1 = vld.sshfl [vmem:[%s12821_s14 + $0x6b] sm:$0x1 pattern:$0x75316420] }
  0xb8   : > { %v6814_v34 = vsel %vm1414_vm5, %v15523_v37, %v6812_v39  ;;  %v6826_v41 = vsel %vm1411_vm4, %v15524_v6, %v6824_v49  ;;  %v15526_v29 = vrot.slane %v13233_v26, 3  ;;  %12576 = vmatpush3.bf16.msra.mxu1 %v3022_v13  ;;  %v1662_v62 = vrot.slane %v13263_v22, 7  ;;  %v15533_v59 = vld [vmem:[#allocation7_spill] sm:$0xff]  ;;  %v15534_v49 = vld [vmem:[#allocation8_spill] sm:$0xff] }
  0xb9   : > { %v6816_v57 = vsel %vm1417_vm6, %v15525_v31, %v6814_v34  ;;  %v1664_v4 = vrot.slane %v13270_v12, 6  ;;  %v15527_v8 = vrot.slane %v13241_v52, 2  ;;  %v1666_v42 = vrot.slane %v13278_v38, 5  ;;  %12722 = vmatprep.subr.msk.bf16.mxu1 %vm1537_vm0, %v13820_v15 }
  0xba   : > { %v6828_v3 = vsel %vm1414_vm5, %v15526_v29, %v6826_v41  ;;  %v6818_v25 = vsel %vm1420_vm7, %v6817_v60, %v6816_v57  ;;  %v1668_v45 = vrot.slane %v13287_v2, 4  ;;  %v1663_v22 = vsel %vm1402_vm1, %v1662_v62, %v13255_v44  ;;  %v15530_v44 = vld [vmem:[#allocation5_spill] sm:$0xff]  ;;  %v15538_v29 = vld [vmem:[#allocation10_spill] sm:$0xff] }
  0xbb   : > { %v6830_v58 = vsel %vm1417_vm6, %v15527_v8, %v6828_v3  ;;  %v1670_v12 = vrot.slane %v13298_v53, 3  ;;  %v1672_v51 = vrot.slane %v13305_v47, 2  ;;  %v1665_v36 = vsel %vm1405_vm2, %v1664_v4, %v1663_v22  ;;  %v13864_v53 = vld [vmem:[%s15379_s1 + $0xe] sm:$0x3]  ;;  %v15531_v47 = vld [vmem:[#allocation2_spill] sm:$0xff]  ;;  %v15536_v41 = vld [vmem:[#allocation9_spill] sm:$0xff] }
  0xbc   : > { %v6832_v26 = vsel %vm1420_vm7, %v6831_v16, %v6830_v58  ;;  %v1674_v38 = vrot.slane %v13313_v0, 1  ;;  %v1676_v2 = vrot.slane %v13327_v20, 7  ;;  %v1667_v54 = vsel %vm1408_vm3, %v1666_v42, %v1665_v36  ;;  %v15541_v8 = vld [vmem:[#allocation11_spill] sm:$0xff] }
  0xbd   : > { %v6890_v52 = vpack.c.b16 %v6832_v26, %v6818_v25  ;;  %v1678_v32 = vrot.slane %v15528_v63, 6  ;;  %v1680_v23 = vrot.slane %v15529_v40, 5  ;;  %v1682_v48 = vrot.slane %v15530_v44, 4  ;;  %v15543_v26 = vld [vmem:[#allocation14_spill] sm:$0xff]  ;;  %v15551_v40 = vld [vmem:[#allocation16_spill] sm:$0xff] }
  0xbe   : > { %v1669_v0 = vsel %vm1411_vm4, %v1668_v45, %v1667_v54  ;;  %v1677_v20 = vsel %vm1402_vm1, %v1676_v2, %v15531_v47  ;;  %v1684_v5 = vrot.slane %v13354_v14, 3  ;;  %v1686_v28 = vrot.slane %v15532_v24, 2  ;;  %v15549_v54 = vld [vmem:[#allocation13_spill] sm:$0xff]  ;;  %v15555_v24 = vld [vmem:[#allocation20_spill] sm:$0xff] }
  0xbf   : > { %12608 = vmatmul.mubr.msk.bf16.vlgmr.msra.gmra.mrb[0].mxu0 %vm1524_vm8, %v6890_v52  ;;  %v1671_v50 = vsel %vm1414_vm5, %v1670_v12, %v1669_v0  ;;  %v1679_v30 = vsel %vm1405_vm2, %v1678_v32, %v1677_v20  ;;  %v1688_v35 = vrot.slane %v15533_v59, 1  ;;  %v6376_v43 = vrot.slane %v12065_v7, %v12823_v11  ;;  %v15545_v7 = vld [vmem:[#allocation12_spill] sm:$0xff]  ;;  %v15553_v47 = vld [vmem:[#allocation17_spill] sm:$0xff]  ;;  %v15557_v59 = vld [vmem:[#allocation18_spill] sm:$0xff] }
  0xc0   : > { %12616 = vmatpush3.bf16.msra.mxu0 %v8201_v46  ;;  %v1673_v39 = vsel %vm1417_vm6, %v1672_v51, %v1671_v50  ;;  %v1681_v60 = vsel %vm1408_vm3, %v1680_v23, %v1679_v30  ;;  %v6488_v18 = vrot.slane %v12073_v1, %v12823_v11  ;;  %v15535_v14 = vrot.slane %v15534_v49, 7  ;;  %v15556_v50 = vld [vmem:[#allocation21_spill] sm:$0xff]  ;;  %v15561_v49 = vld [vmem:[#allocation23_spill] sm:$0xff] }
  0xc1   : > { %12726 = vmatprep.subr.msk.bf16.mxu0 %vm1537_vm0, %v13864_v53  ;;  %v1675_v46 = vsel %vm1420_vm7, %v1674_v38, %v1673_v39  ;;  %v1683_v34 = vsel %vm1411_vm4, %v1682_v48, %v1681_v60  ;;  %v6752_v6 = vunpack.c.l.b16 %v6376_v43  ;;  %v15537_v16 = vrot.slane %v15536_v41, 6  ;;  %v15559_v39 = vld [vmem:[#allocation19_spill] sm:$0xff]  ;;  %v15560_v60 = vld [vmem:[#allocation22_spill] sm:$0xff] }
  0xc2   : > { %v6834_v37 = vsel %vm1402_vm1, %v15535_v14, %v13381_v9  ;;  %v1685_v31 = vsel %vm1414_vm5, %v1684_v5, %v1683_v34  ;;  %v6760_v57 = vunpack.c.l.b16 %v6488_v18  ;;  %v15539_v3 = vrot.slane %v15538_v29, 5  ;;  %v15562_v34 = vld [vmem:[#allocation24_spill] sm:$0xff] }
  0xc3   : > { %v6836_v13 = vsel %vm1405_vm2, %v15537_v16, %v6834_v37  ;;  %v15540_v9 = vrot.slane %v13439_v10, 7  ;;  %v1687_v25 = vsel %vm1417_vm6, %v1686_v28, %v1685_v31  ;;  %v15542_v58 = vrot.slane %v15541_v8, 4  ;;  %v15547_v10 = vld [vmem:[#allocation15_spill] sm:$0xff] }
  0xc4   : > { %v6838_v62 = vsel %vm1408_vm3, %v15539_v3, %v6836_v13  ;;  %v6845_v45 = vrot.slane %v6752_v6, 1  ;;  %v15544_v22 = vrot.slane %v15543_v26, 6  ;;  %v1689_v51 = vsel %vm1420_vm7, %v1688_v35, %v1687_v25  ;;  %v12081_v16 = vld.sshfl [vmem:[%s12821_s14 + $0x7d] sm:$0x1 pattern:$0x75316420] }
  0xc5   : > { %v6848_v4 = vsel %vm1402_vm1, %v15540_v9, %v13431_v27  ;;  %v6840_v42 = vsel %vm1411_vm4, %v15542_v58, %v6838_v62  ;;  %v15546_v52 = vrot.slane %v15545_v7, 3  ;;  %v15548_v38 = vrot.slane %v15547_v10, 5  ;;  %v15564_v3 = vld [vmem:[#allocation27_spill] sm:$0xff]  ;;  %v15565_v25 = vld [vmem:[#allocation28_spill] sm:$0xff]  ;;  %v15566_v58 = vld [vmem:[#allocation29_spill] sm:$0xff] }
  0xc6   : > { %v6850_v12 = vsel %vm1405_vm2, %v15544_v22, %v6848_v4  ;;  %v6859_v2 = vrot.slane %v6760_v57, 1  ;;  %v1720_v1 = vpack.c.b16 %v1689_v51, %v1675_v46  ;;  %v15550_v63 = vrot.slane %v15549_v54, 2  ;;  %v15563_v57 = vld [vmem:[#allocation26_spill] sm:$0xff]  ;;  %v15567_v26 = vld [vmem:[#allocation25_spill] sm:$0xff]  ;;  %v15569_v7 = vld [vmem:[#allocation31_spill] sm:$0xff] }
  0xc7   : > { %v6842_v36 = vsel %vm1414_vm5, %v15546_v52, %v6840_v42  ;;  %v6852_v27 = vsel %vm1408_vm3, %v15548_v38, %v6850_v12  ;;  %v15552_v23 = vrot.slane %v15551_v40, 4  ;;  %v1690_v48 = vrot.slane %v13499_v21, 7  ;;  %v12089_v9 = vld.sshfl [vmem:[%s12821_s14 + $0x8f] sm:$0x1 pattern:$0x75316420] }
  0xc8   : > { %v6844_v32 = vsel %vm1417_vm6, %v15550_v63, %v6842_v36  ;;  %v15554_v20 = vrot.slane %v15553_v47, 3  ;;  %v1692_v28 = vrot.slane %v15555_v24, 6  ;;  %v1694_v30 = vrot.slane %v15556_v50, 5  ;;  %12571 = vmatprep.mubr.msk.bf16.mxu1 %vm1524_vm8, %v1720_v1  ;;  %v15568_v12 = vld [vmem:[#allocation30_spill] sm:$0xff]  ;;  %v15572_v47 = vld [vmem:[#allocation32_spill] sm:$0xff]  ;;  %v15576_v50 = vld [vmem:[#allocation37_spill] sm:$0xff] }
  0xc9   : > { %v6854_v44 = vsel %vm1411_vm4, %v15552_v23, %v6852_v27  ;;  %v6846_v0 = vsel %vm1420_vm7, %v6845_v45, %v6844_v32  ;;  %v15558_v35 = vrot.slane %v15557_v59, 2  ;;  %v1691_v21 = vsel %vm1402_vm1, %v1690_v48, %v15559_v39  ;;  %v11627_v27 = vld.sshfl [vmem:[%s12821_s14 + $0x1] sm:$0x1 pattern:$0x75316420] }
  0xca   : > { %v6856_v5 = vsel %vm1414_vm5, %v15554_v20, %v6854_v44  ;;  %v1696_v18 = vrot.slane %v15560_v60, 4  ;;  %v1698_v14 = vrot.slane %v15561_v49, 3  ;;  %v1693_v46 = vsel %vm1405_vm2, %v1692_v28, %v1691_v21  ;;  %v11628_v23 = vld.sshfl [vmem:[%s12821_s14 + $0x2] sm:$0x1 pattern:$0x75316420] }
  0xcb   : > { %v6858_v43 = vsel %vm1417_vm6, %v15558_v35, %v6856_v5  ;;  %v1700_v6 = vrot.slane %v15562_v34, 2  ;;  %v1702_v41 = vrot.slane %v13542_v55, 1  ;;  %v1695_v31 = vsel %vm1408_vm3, %v1694_v30, %v1693_v46  ;;  %v11630_v24 = vld.sshfl [vmem:[%s12821_s14 + $0x4] sm:$0x1 pattern:$0x75316420] }
  0xcc   : > { %v6860_v37 = vsel %vm1420_vm7, %v6859_v2, %v6858_v43  ;;  %v1704_v29 = vrot.slane %v15563_v57, 7  ;;  %v1706_v62 = vrot.slane %v15564_v3, 6  ;;  %v1697_v4 = vsel %vm1411_vm4, %v1696_v18, %v1695_v31  ;;  %v15574_v28 = vld [vmem:[#allocation33_spill] sm:$0xff]  ;;  %v15578_v18 = vld [vmem:[#allocation34_spill] sm:$0xff]  ;;  %v15582_v57 = vld [vmem:[#allocation35_spill] sm:$0xff] }
  0xcd   : > { %v6891_v13 = vpack.c.b16 %v6860_v37, %v6846_v0  ;;  %v1708_v8 = vrot.slane %v15565_v25, 5  ;;  %v1710_v42 = vrot.slane %v15566_v58, 4  ;;  %v1712_v45 = vrot.slane %v13582_v56, 3  ;;  %v15580_v46 = vld [vmem:[#allocation38_spill] sm:$0xff] }
  0xce   : > { %v1699_v55 = vsel %vm1414_vm5, %v1698_v14, %v1697_v4  ;;  %v1705_v22 = vsel %vm1402_vm1, %v1704_v29, %v15567_v26  ;;  %v1714_v51 = vrot.slane %v15568_v12, 2  ;;  %v1716_v52 = vrot.slane %v15569_v7, 1  ;;  %v11631_v35 = vld.sshfl [vmem:[%s12821_s14 + $0x5] sm:$0x1 pattern:$0x75316420] }
  0xcf   : > { %12611 = vmatprep.mubr.msk.bf16.mxu0 %vm1524_vm8, %v6891_v13  ;;  %v1701_v36 = vsel %vm1417_vm6, %v1700_v6, %v1699_v55  ;;  %v1707_v10 = vsel %vm1405_vm2, %v1706_v62, %v1705_v22  ;;  %v6600_v38 = vrot.slane %v12081_v16, %v12823_v11  ;;  %v6712_v56 = vrot.slane %v12089_v9, %v12823_v11  ;;  %v11632_v43 = vld.sshfl [vmem:[%s12821_s14 + $0x6] sm:$0x1 pattern:$0x75316420]  ;;  %v15584_v62 = vld [vmem:[#allocation39_spill] sm:$0xff]  ;;  %v15586_v55 = vld [vmem:[#allocation36_spill] sm:$0xff] }
  0xd0   : > { %v1703_v2 = vsel %vm1420_vm7, %v1702_v41, %v1701_v36  ;;  %v1709_v1 = vsel %vm1408_vm3, %v1708_v8, %v1707_v10  ;;  %v15570_v54 = vrot.slane %v13615_v19, 7  ;;  %v15571_v32 = vrot.slane %v13672_v17, 7  ;;  %v11629_v19 = vld.sshfl [vmem:[%s12821_s14 + $0x3] sm:$0x1 pattern:$0x75316420] }
  0xd1   : > { %v1711_v44 = vsel %vm1411_vm4, %v1710_v42, %v1709_v1  ;;  %v6768_v48 = vunpack.c.l.b16 %v6600_v38  ;;  %v6776_v0 = vunpack.c.l.b16 %v6712_v56  ;;  %v15573_v20 = vrot.slane %v15572_v47, 6  ;;  %v11633_v39 = vld.sshfl [vmem:[%s12821_s14 + $0x7] sm:$0x1 pattern:$0x75316420]  ;;  %v15588_v12 = vld [vmem:[#allocation40_spill] sm:$0xff] }
  0xd2   : > { %v6862_v63 = vsel %vm1402_vm1, %v15570_v54, %v13610_v33  ;;  %v6876_v40 = vsel %vm1402_vm1, %v15571_v32, %v13664_v61  ;;  %v1713_v33 = vsel %vm1414_vm5, %v1712_v45, %v1711_v44  ;;  %v15575_v17 = vrot.slane %v15574_v28, 5  ;;  %v11634_v41 = vld.sshfl [vmem:[%s12821_s14 + $0x8] sm:$0x1 pattern:$0x75316420]  ;;  %v15590_v38 = vld [vmem:[#allocation41_spill] sm:$0xff] }
  0xd3   : > { %v6864_v5 = vsel %vm1405_vm2, %v15573_v20, %v6862_v63  ;;  %v15577_v30 = vrot.slane %v15576_v50, 6  ;;  %v1946_v21 = vrot.slane %v11627_v27, %v12823_v11  ;;  %v1715_v60 = vsel %vm1417_vm6, %v1714_v51, %v1713_v33  ;;  %v11635_v16 = vld.sshfl [vmem:[%s12821_s14 + $0x13] sm:$0x1 pattern:$0x75316420] }
  0xd4   : > { %v6866_v61 = vsel %vm1408_vm3, %v15575_v17, %v6864_v5  ;;  %v15579_v49 = vrot.slane %v15578_v18, 4  ;;  %v6873_v37 = vrot.slane %v6768_v48, 1  ;;  %v15581_v34 = vrot.slane %v15580_v46, 5 }
  0xd5   : > { %v6878_v59 = vsel %vm1405_vm2, %v15577_v30, %v6876_v40  ;;  %v11636_v13 = vld.sshfl [vmem:[%s12821_s14 + $0x14] sm:$0x1 pattern:$0x75316420]  ;;  %v1717_v31 = vsel %vm1420_vm7, %v1716_v52, %v1715_v60  ;;  %v15583_v29 = vrot.slane %v15582_v57, 3  ;;  %v15585_v9 = vrot.slane %v15584_v62, 4 }
  0xd6   : > { %v6868_v14 = vsel %vm1411_vm4, %v15579_v49, %v6866_v61  ;;  %v6880_v6 = vsel %vm1408_vm3, %v15581_v34, %v6878_v59  ;;  %v6887_v25 = vrot.slane %v6776_v0, 1  ;;  %v11637_v8 = vld.sshfl [vmem:[%s12821_s14 + $0x15] sm:$0x1 pattern:$0x75316420]  ;;  %v1721_v45 = vpack.c.b16 %v1717_v31, %v1703_v2 }
  0xd7   : > { %v6870_v3 = vsel %vm1414_vm5, %v15583_v29, %v6868_v14  ;;  %v6882_v4 = vsel %vm1411_vm4, %v15585_v9, %v6880_v6  ;;  %v11638_v58 = vld.sshfl [vmem:[%s12821_s14 + $0x16] sm:$0x1 pattern:$0x75316420]  ;;  %v15587_v26 = vrot.slane %v15586_v55, 2  ;;  %v15589_v51 = vrot.slane %v15588_v12, 3 }
  0xd8   : > { %v11639_v42 = vld.sshfl [vmem:[%s12821_s14 + $0x17] sm:$0x1 pattern:$0x75316420]  ;;  %v1960_v36 = vrot.slane %v11628_v23, %v12823_v11  ;;  %v15591_v56 = vrot.slane %v15590_v38, 2  ;;  %v1974_v2 = vrot.slane %v11629_v19, %v12823_v11  ;;  %v1988_v54 = vrot.slane %v11630_v24, %v12823_v11  ;;  %12572 = vmatmul.mubr.msk.bf16.gmra.mrb[4].mxu1 %vm1524_vm8, %v1721_v45 }
  0xd9   : > { %v6872_v22 = vsel %vm1417_vm6, %v15587_v26, %v6870_v3  ;;  %v6884_v7 = vsel %vm1414_vm5, %v15589_v51, %v6882_v4  ;;  %v11640_v52 = vld.sshfl [vmem:[%s12821_s14 + $0x18] sm:$0x1 pattern:$0x75316420]  ;;  %v2002_v40 = vrot.slane %v11631_v35, %v12823_v11  ;;  %v2016_v23 = vrot.slane %v11632_v43, %v12823_v11 }
  0xda   : > { %v6874_v10 = vsel %vm1420_vm7, %v6873_v37, %v6872_v22  ;;  %v6886_v27 = vsel %vm1417_vm6, %v15591_v56, %v6884_v7  ;;  %v11641_v1 = vld.sshfl [vmem:[%s12821_s14 + $0x19] sm:$0x1 pattern:$0x75316420]  ;;  %v2030_v44 = vrot.slane %v11633_v39, %v12823_v11  ;;  %v2044_v0 = vrot.slane %v11634_v41, %v12823_v11 }
  0xdb   : > { %v6888_v63 = vsel %vm1420_vm7, %v6887_v25, %v6886_v27  ;;  %v11642_v32 = vld.sshfl [vmem:[%s12821_s14 + $0x1a] sm:$0x1 pattern:$0x75316420]  ;;  %v2058_v47 = vrot.slane %v11635_v16, %v12823_v11  ;;  %v2072_v20 = vrot.slane %v11636_v13, %v12823_v11  ;;  %v2086_v5 = vrot.slane %v11637_v8, %v12823_v11 }
  0xdc   : > { %v6892_v48 = vpack.c.b16 %v6888_v63, %v6874_v10  ;;  %v2100_v19 = vrot.slane %v11638_v58, %v12823_v11  ;;  %v2114_v24 = vrot.slane %v11639_v42, %v12823_v11  ;;  %v2128_v33 = vrot.slane %v11640_v52, %v12823_v11  ;;  %v12159_v13 = vld.sshfl [vmem:[%s12821_s14 + $0x12] sm:$0x1 pattern:$0x75316420] }
  0xdd   : > { %v2142_v28 = vrot.slane %v11641_v1, %v12823_v11  ;;  %v2156_v17 = vrot.slane %v11642_v32, %v12823_v11  ;;  %v2829_v61 = vunpack.c.l.b16 %v1946_v21  ;;  %v2830_v50 = vunpack.c.l.b16 %v1960_v36  ;;  %v12167_v31 = vld.sshfl [vmem:[%s12821_s14 + $0x24] sm:$0x1 pattern:$0x75316420] }
  0xde   : > { %12612 = vmatmul.mubr.msk.bf16.gmra.mrb[4].mxu0 %vm1524_vm8, %v6892_v48  ;;  %v2831_v30 = vunpack.c.l.b16 %v1974_v2  ;;  %v2832_v59 = vunpack.c.l.b16 %v1988_v54  ;;  %v2833_v35 = vunpack.c.l.b16 %v2002_v40  ;;  %v2834_v43 = vunpack.c.l.b16 %v2016_v23  ;;  %v12168_v9 = vld.sshfl [vmem:[%s12821_s14 + $0x25] sm:$0x1 pattern:$0x75316420] }
  0xdf   : > { %v2835_v39 = vunpack.c.l.b16 %v2030_v44  ;;  %v2836_v60 = vunpack.c.l.b16 %v2044_v0  ;;  %v14036_v18 = vunpack.c.l.b16 %v2058_v47  ;;  %v14038_v49 = vunpack.c.l.b16 %v2072_v20  ;;  %v12169_v4 = vld.sshfl [vmem:[%s12821_s14 + $0x26] sm:$0x1 pattern:$0x75316420] }
  0xe0   : > { %v14040_v14 = vunpack.c.l.b16 %v2086_v5  ;;  %v14042_v37 = vunpack.c.l.b16 %v2100_v19  ;;  %v14044_v21 = vunpack.c.l.b16 %v2114_v24  ;;  %v14046_v46 = vunpack.c.l.b16 %v2128_v33  ;;  %v12170_v45 = vld.sshfl [vmem:[%s12821_s14 + $0x27] sm:$0x1 pattern:$0x75316420] }
  0xe1   : > { %v14048_v34 = vunpack.c.l.b16 %v2142_v28  ;;  %v2844_v6 = vunpack.c.l.b16 %v2156_v17  ;;  %v2893_v41 = vrot.slane %v2830_v50, 7  ;;  %v2895_v16 = vrot.slane %v2831_v30, 6  ;;  %v12171_v55 = vld.sshfl [vmem:[%s12821_s14 + $0x28] sm:$0x1 pattern:$0x75316420] }
  0xe2   : > { %v2897_v57 = vrot.slane %v2832_v59, 5  ;;  %v2899_v29 = vrot.slane %v2833_v35, 4  ;;  %v2901_v3 = vrot.slane %v2834_v43, 3  ;;  %v2903_v62 = vrot.slane %v2835_v39, 2 }
  0xe3   : > { %v2894_v25 = vsel %vm1402_vm1, %v2893_v41, %v2829_v61  ;;  %v2905_v8 = vrot.slane %v2836_v60, 1  ;;  %v2907_v58 = vrot.slane %v14038_v49, 7  ;;  %v2909_v42 = vrot.slane %v14040_v14, 6 }
  0xe4   : > { %v2896_v26 = vsel %vm1405_vm2, %v2895_v16, %v2894_v25  ;;  %v2911_v22 = vrot.slane %v14042_v37, 5  ;;  %v2913_v12 = vrot.slane %v14044_v21, 4  ;;  %v2915_v51 = vrot.slane %v14046_v46, 3 }
  0xe5   : > { %v2898_v7 = vsel %vm1408_vm3, %v2897_v57, %v2896_v26  ;;  %v2908_v52 = vsel %vm1402_vm1, %v2907_v58, %v14036_v18  ;;  %v2917_v36 = vrot.slane %v14048_v34, 2  ;;  %v2919_v10 = vrot.slane %v2844_v6, 1  ;;  %v12172_v38 = vld.sshfl [vmem:[%s12821_s14 + $0x29] sm:$0x1 pattern:$0x75316420] }
  0xe6   : > { %v2900_v56 = vsel %vm1411_vm4, %v2899_v29, %v2898_v7  ;;  %v2910_v27 = vsel %vm1405_vm2, %v2909_v42, %v2908_v52  ;;  %v12173_v1 = vld.sshfl [vmem:[%s12821_s14 + $0x2a] sm:$0x1 pattern:$0x75316420]  ;;  %v7125_v2 = vrot.slane %v12159_v13, %v12823_v11  ;;  %v7237_v54 = vrot.slane %v12167_v31, %v12823_v11 }
  0xe7   : > { %v2902_v63 = vsel %vm1414_vm5, %v2901_v3, %v2900_v56  ;;  %v2912_v32 = vsel %vm1408_vm3, %v2911_v22, %v2910_v27  ;;  %v12174_v40 = vld.sshfl [vmem:[%s12821_s14 + $0x2b] sm:$0x1 pattern:$0x75316420]  ;;  %v7251_v23 = vrot.slane %v12168_v9, %v12823_v11  ;;  %v7265_v44 = vrot.slane %v12169_v4, %v12823_v11 }
  0xe8   : > { %v2904_v48 = vsel %vm1417_vm6, %v2903_v62, %v2902_v63  ;;  %v2914_v0 = vsel %vm1411_vm4, %v2913_v12, %v2912_v32  ;;  %v7279_v47 = vrot.slane %v12170_v45, %v12823_v11  ;;  %v7293_v20 = vrot.slane %v12171_v55, %v12823_v11  ;;  %v11650_v16 = vld.sshfl [vmem:[%s12821_s14 + $0x2c] sm:$0x1 pattern:$0x75316420] }
  0xe9   : > { %v2906_v5 = vsel %vm1420_vm7, %v2905_v8, %v2904_v48  ;;  %v2916_v19 = vsel %vm1414_vm5, %v2915_v51, %v2914_v0  ;;  %v7307_v24 = vrot.slane %v12172_v38, %v12823_v11  ;;  %v7321_v33 = vrot.slane %v12173_v1, %v12823_v11  ;;  %v11651_v3 = vld.sshfl [vmem:[%s12821_s14 + $0x37] sm:$0x1 pattern:$0x75316420] }
  0xea   : > { %v2918_v28 = vsel %vm1417_vm6, %v2917_v36, %v2916_v19  ;;  %v7335_v17 = vrot.slane %v12174_v40, %v12823_v11  ;;  %v8008_v61 = vunpack.c.l.b16 %v7125_v2  ;;  %v8016_v50 = vunpack.c.l.b16 %v7237_v54  ;;  %v11652_v62 = vld.sshfl [vmem:[%s12821_s14 + $0x38] sm:$0x1 pattern:$0x75316420] }
  0xeb   : > { %v2920_v30 = vsel %vm1420_vm7, %v2919_v10, %v2918_v28  ;;  %v14089_v59 = vunpack.c.l.b16 %v7251_v23  ;;  %v14091_v35 = vunpack.c.l.b16 %v7265_v44  ;;  %v14093_v43 = vunpack.c.l.b16 %v7279_v47  ;;  %v11654_v58 = vld.sshfl [vmem:[%s12821_s14 + $0x3a] sm:$0x1 pattern:$0x75316420] }
  0xec   : > { %v3005_v39 = vpack.c.b16 %v2920_v30, %v2906_v5  ;;  %v14095_v60 = vunpack.c.l.b16 %v7293_v20  ;;  %v14097_v6 = vunpack.c.l.b16 %v7307_v24  ;;  %v14099_v41 = vunpack.c.l.b16 %v7321_v33  ;;  %v11655_v55 = vld.sshfl [vmem:[%s12821_s14 + $0x3b] sm:$0x1 pattern:$0x75316420] }
  0xed   : > { %v14102_v13 = vunpack.c.l.b16 %v7335_v17  ;;  %v8072_v31 = vrot.slane %v14036_v18, 7  ;;  %v8074_v57 = vrot.slane %v14038_v49, 6  ;;  %v8076_v29 = vrot.slane %v14040_v14, 5 }
  0xee   : > { %12577 = vmatprep.mubr.msk.bf16.mxu1 %vm1524_vm8, %v3005_v39  ;;  %v8078_v9 = vrot.slane %v14042_v37, 4  ;;  %v8080_v4 = vrot.slane %v14044_v21, 3  ;;  %v8082_v25 = vrot.slane %v14046_v46, 2  ;;  %v8084_v8 = vrot.slane %v14048_v34, 1 }
  0xef   : > { %v11653_v18 = vld.sshfl [vmem:[%s12821_s14 + $0x39] sm:$0x1 pattern:$0x75316420]  ;;  %v8073_v49 = vsel %vm1402_vm1, %v8072_v31, %v8008_v61  ;;  %v8086_v42 = vrot.slane %v14089_v59, 7  ;;  %v8088_v14 = vrot.slane %v14091_v35, 6  ;;  %v2268_v52 = vrot.slane %v11650_v16, %v12823_v11 }
  0xf0   : > { %v8090_v45 = vrot.slane %v14093_v43, 5  ;;  %v11656_v37 = vld.sshfl [vmem:[%s12821_s14 + $0x3c] sm:$0x1 pattern:$0x75316420]  ;;  %v8075_v21 = vsel %vm1405_vm2, %v8074_v57, %v8073_v49  ;;  %v8092_v46 = vrot.slane %v14095_v60, 4  ;;  %v2282_v56 = vrot.slane %v11651_v3, %v12823_v11 }
  0xf1   : > { %v8094_v34 = vrot.slane %v14097_v6, 3  ;;  %v8096_v26 = vrot.slane %v14099_v41, 2  ;;  %v8077_v22 = vsel %vm1408_vm3, %v8076_v29, %v8075_v21  ;;  %v8087_v12 = vsel %vm1402_vm1, %v8086_v42, %v8016_v50  ;;  %v11657_v7 = vld.sshfl [vmem:[%s12821_s14 + $0x3d] sm:$0x1 pattern:$0x75316420] }
  0xf2   : > { %v8098_v51 = vrot.slane %v14102_v13, 1  ;;  %v8079_v36 = vsel %vm1411_vm4, %v8078_v9, %v8077_v22  ;;  %v8089_v10 = vsel %vm1405_vm2, %v8088_v14, %v8087_v12  ;;  %v11658_v38 = vld.sshfl [vmem:[%s12821_s14 + $0x3e] sm:$0x1 pattern:$0x75316420]  ;;  %v2296_v27 = vrot.slane %v11652_v62, %v12823_v11 }
  0xf3   : > { %v8081_v1 = vsel %vm1414_vm5, %v8080_v4, %v8079_v36  ;;  %v8091_v2 = vsel %vm1408_vm3, %v8090_v45, %v8089_v10  ;;  %v2310_v54 = vrot.slane %v11653_v18, %v12823_v11  ;;  %v2324_v63 = vrot.slane %v11654_v58, %v12823_v11  ;;  %v12175_v57 = vld.sshfl [vmem:[%s12821_s14 + $0x36] sm:$0x1 pattern:$0x75316420] }
  0xf4   : > { %v8083_v32 = vsel %vm1417_vm6, %v8082_v25, %v8081_v1  ;;  %v8093_v40 = vsel %vm1411_vm4, %v8092_v46, %v8091_v2  ;;  %v2338_v23 = vrot.slane %v11655_v55, %v12823_v11  ;;  %v2352_v44 = vrot.slane %v11656_v37, %v12823_v11  ;;  %v12183_v4 = vld.sshfl [vmem:[%s12821_s14 + $0x48] sm:$0x1 pattern:$0x75316420] }
  0xf5   : > { %v8085_v48 = vsel %vm1420_vm7, %v8084_v8, %v8083_v32  ;;  %v8095_v0 = vsel %vm1414_vm5, %v8094_v34, %v8093_v40  ;;  %v2366_v47 = vrot.slane %v11657_v7, %v12823_v11  ;;  %v2380_v20 = vrot.slane %v11658_v38, %v12823_v11  ;;  %v12184_v25 = vld.sshfl [vmem:[%s12821_s14 + $0x49] sm:$0x1 pattern:$0x75316420] }
  0xf6   : > { %v8097_v5 = vsel %vm1417_vm6, %v8096_v26, %v8095_v0  ;;  %v2852_v19 = vunpack.c.l.b16 %v2268_v52  ;;  %v14149_v24 = vunpack.c.l.b16 %v2282_v56  ;;  %v14151_v33 = vunpack.c.l.b16 %v2296_v27  ;;  %v12187_v45 = vld.sshfl [vmem:[%s12821_s14 + $0x4c] sm:$0x1 pattern:$0x75316420] }
  0xf7   : > { %v8099_v28 = vsel %vm1420_vm7, %v8098_v51, %v8097_v5  ;;  %v14154_v17 = vunpack.c.l.b16 %v2310_v54  ;;  %v14156_v61 = vunpack.c.l.b16 %v2324_v63  ;;  %v14158_v50 = vunpack.c.l.b16 %v2338_v23  ;;  %v12188_v21 = vld.sshfl [vmem:[%s12821_s14 + $0x4d] sm:$0x1 pattern:$0x75316420] }
  0xf8   : > { %v8184_v30 = vpack.c.b16 %v8099_v28, %v8085_v48  ;;  %v14160_v39 = vunpack.c.l.b16 %v2352_v44  ;;  %v14162_v16 = vunpack.c.l.b16 %v2366_v47  ;;  %v2860_v31 = vunpack.c.l.b16 %v2380_v20  ;;  %v12189_v26 = vld.sshfl [vmem:[%s12821_s14 + $0x4e] sm:$0x1 pattern:$0x75316420] }
  0xf9   : > { %v2921_v29 = vrot.slane %v14091_v35, 7  ;;  %v2923_v3 = vrot.slane %v14093_v43, 6  ;;  %v2925_v62 = vrot.slane %v14095_v60, 5  ;;  %v2927_v9 = vrot.slane %v14097_v6, 4 }
  0xfa   : > { %12617 = vmatprep.mubr.msk.bf16.mxu0 %vm1524_vm8, %v8184_v30  ;;  %v2929_v8 = vrot.slane %v14099_v41, 3  ;;  %v2931_v18 = vrot.slane %v14102_v13, 2  ;;  %v2933_v58 = vrot.slane %v2852_v19, 1  ;;  %v2935_v49 = vrot.slane %v14151_v33, 7 }
  0xfb   : > { %v12185_v35 = vld.sshfl [vmem:[%s12821_s14 + $0x4a] sm:$0x1 pattern:$0x75316420]  ;;  %v2922_v60 = vsel %vm1402_vm1, %v2921_v29, %v14089_v59  ;;  %v2937_v6 = vrot.slane %v14154_v17, 6  ;;  %v2939_v42 = vrot.slane %v14156_v61, 5  ;;  %v7349_v22 = vrot.slane %v12175_v57, %v12823_v11 }
  0xfc   : > { %v12186_v43 = vld.sshfl [vmem:[%s12821_s14 + $0x4b] sm:$0x1 pattern:$0x75316420]  ;;  %v2941_v14 = vrot.slane %v14158_v50, 4  ;;  %v2924_v41 = vsel %vm1405_vm2, %v2923_v3, %v2922_v60  ;;  %v2936_v13 = vsel %vm1402_vm1, %v2935_v49, %v14149_v24  ;;  %v2943_v55 = vrot.slane %v14160_v39, 3 }
  0xfd   : > { %v2945_v37 = vrot.slane %v14162_v16, 2  ;;  %v2926_v59 = vsel %vm1408_vm3, %v2925_v62, %v2924_v41  ;;  %v2938_v46 = vsel %vm1405_vm2, %v2937_v6, %v2936_v13  ;;  %v2947_v34 = vrot.slane %v2860_v31, 1  ;;  %v12190_v7 = vld.sshfl [vmem:[%s12821_s14 + $0x4f] sm:$0x1 pattern:$0x75316420] }
  0xfe   : > { %v2928_v12 = vsel %vm1411_vm4, %v2927_v9, %v2926_v59  ;;  %v2940_v51 = vsel %vm1408_vm3, %v2939_v42, %v2938_v46  ;;  %v7461_v52 = vrot.slane %v12183_v4, %v12823_v11  ;;  %v7475_v36 = vrot.slane %v12184_v25, %v12823_v11  ;;  %v11669_v60 = vld.sshfl [vmem:[%s12821_s14 + $0x5d] sm:$0x1 pattern:$0x75316420]  ;;  %v12738_v41 = vld [vmem:[%s15382_s4] sm:$0xff]  }
  0xff   : > { %v2930_v10 = vsel %vm1414_vm5, %v2929_v8, %v2928_v12  ;;  %v2942_v38 = vsel %vm1411_vm4, %v2941_v14, %v2940_v51  ;;  %v7489_v56 = vrot.slane %v12185_v35, %v12823_v11  ;;  %v7503_v27 = vrot.slane %v12186_v43, %v12823_v11  ;;  %v11666_v8 = vld.sshfl [vmem:[%s12821_s14 + $0x50] sm:$0x1 pattern:$0x75316420] }
 0x100   : > { %v2932_v1 = vsel %vm1417_vm6, %v2931_v18, %v2930_v10  ;;  %v2944_v2 = vsel %vm1414_vm5, %v2943_v55, %v2942_v38  ;;  %v7517_v54 = vrot.slane %v12187_v45, %v12823_v11  ;;  %v7531_v63 = vrot.slane %v12188_v21, %v12823_v11  ;;  %v11667_v35 = vld.sshfl [vmem:[%s12821_s14 + $0x5b] sm:$0x1 pattern:$0x75316420] }
 0x101   : > { %v2934_v32 = vsel %vm1420_vm7, %v2933_v58, %v2932_v1  ;;  %v2946_v40 = vsel %vm1417_vm6, %v2945_v37, %v2944_v2  ;;  %v7545_v23 = vrot.slane %v12189_v26, %v12823_v11  ;;  %v7559_v44 = vrot.slane %v12190_v7, %v12823_v11  ;;  %v11668_v43 = vld.sshfl [vmem:[%s12821_s14 + $0x5c] sm:$0x1 pattern:$0x75316420] }
 0x102   : > { %v2948_v48 = vsel %vm1420_vm7, %v2947_v34, %v2946_v40  ;;  %v8024_v0 = vunpack.c.l.b16 %v7349_v22  ;;  %v8032_v47 = vunpack.c.l.b16 %v7461_v52  ;;  %v14211_v20 = vunpack.c.l.b16 %v7475_v36  ;;  %v11670_v6 = vld.sshfl [vmem:[%s12821_s14 + $0x5e] sm:$0x1 pattern:$0x75316420] }
 0x103   : > { %v3006_v5 = vpack.c.b16 %v2948_v48, %v2934_v32  ;;  %v14213_v19 = vunpack.c.l.b16 %v7489_v56  ;;  %v14215_v28 = vunpack.c.l.b16 %v7503_v27  ;;  %v14217_v30 = vunpack.c.l.b16 %v7517_v54  ;;  %v11671_v45 = vld.sshfl [vmem:[%s12821_s14 + $0x5f] sm:$0x1 pattern:$0x75316420] }
 0x104   : > { %v14219_v31 = vunpack.c.l.b16 %v7531_v63  ;;  %v14221_v57 = vunpack.c.l.b16 %v7545_v23  ;;  %v14223_v29 = vunpack.c.l.b16 %v7559_v44  ;;  %v8100_v3 = vrot.slane %v14149_v24, 7  ;;  %v11672_v59 = vld.sshfl [vmem:[%s12821_s14 + $0x60] sm:$0x1 pattern:$0x75316420] }
 0x105   : > { %12578 = vmatmul.mubr.msk.bf16.vlgmr.msra.gmra.mrb[0].mxu1 %vm1524_vm8, %v3006_v5  ;;  %v8102_v62 = vrot.slane %v14151_v33, 6  ;;  %v8104_v9 = vrot.slane %v14154_v17, 5  ;;  %v8106_v4 = vrot.slane %v14156_v61, 4  ;;  %v8108_v25 = vrot.slane %v14158_v50, 3 }
 0x106   : > { %v8101_v18 = vsel %vm1402_vm1, %v8100_v3, %v8024_v0  ;;  %v8110_v58 = vrot.slane %v14160_v39, 2  ;;  %v8112_v24 = vrot.slane %v14162_v16, 1  ;;  %v8114_v49 = vrot.slane %v14211_v20, 7 }
 0x107   : > { %v8103_v33 = vsel %vm1405_vm2, %v8102_v62, %v8101_v18  ;;  %v8116_v17 = vrot.slane %v14213_v19, 6  ;;  %v8118_v61 = vrot.slane %v14215_v28, 5  ;;  %v8120_v50 = vrot.slane %v14217_v30, 4 }
 0x108   : > { %v8105_v39 = vsel %vm1408_vm3, %v8104_v9, %v8103_v33  ;;  %v8115_v16 = vsel %vm1402_vm1, %v8114_v49, %v8032_v47  ;;  %v8122_v42 = vrot.slane %v14219_v31, 3  ;;  %v8124_v14 = vrot.slane %v14221_v57, 2  ;;  %v11673_v22 = vld.sshfl [vmem:[%s12821_s14 + $0x61] sm:$0x1 pattern:$0x75316420] }
 0x109   : > { %v8107_v13 = vsel %vm1411_vm4, %v8106_v4, %v8105_v39  ;;  %v8117_v55 = vsel %vm1405_vm2, %v8116_v17, %v8115_v16  ;;  %v8126_v37 = vrot.slane %v14223_v29, 1  ;;  %v9495_v21 = vsel %vm1537_vm0, %v13864_v53, 0  ;;  %v11674_v52 = vld.sshfl [vmem:[%s12821_s14 + $0x62] sm:$0x1 pattern:$0x75316420] }
 0x10a   : > { %v8109_v46 = vsel %vm1414_vm5, %v8108_v25, %v8107_v13  ;;  %v8119_v34 = vsel %vm1408_vm3, %v8118_v61, %v8117_v55  ;;  %v4317_v26 = vsel %vm1537_vm0, %v13820_v15, 0  ;;  %v2492_v12 = vrot.slane %v11666_v8, %v12823_v11  ;;  %v12191_v4 = vld.sshfl [vmem:[%s12821_s14 + $0x5a] sm:$0x1 pattern:$0x75316420] }
 0x10b   : > { %v8111_v51 = vsel %vm1417_vm6, %v8110_v58, %v8109_v46  ;;  %v8121_v7 = vsel %vm1411_vm4, %v8120_v50, %v8119_v34  ;;  %12586 = vmatpush3.bf16.msra.mxu1 %v4317_v26  ;;  %v2506_v36 = vrot.slane %v11667_v35, %v12823_v11  ;;  %v2520_v53 = vrot.slane %v11668_v43, %v12823_v11  ;;  %v14297_v25 = vld [vmem:[%s15379_s1 + $0x10] sm:$0x3]  ;;  %v12199_v49 = vld.sshfl [vmem:[%s12821_s14 + $0x6c] sm:$0x1 pattern:$0x75316420] }
 0x10c   : > { %v8113_v10 = vsel %vm1420_vm7, %v8112_v24, %v8111_v51  ;;  %v8123_v38 = vsel %vm1414_vm5, %v8122_v42, %v8121_v7  ;;  %v2534_v56 = vrot.slane %v11669_v60, %v12823_v11  ;;  %v2548_v15 = vrot.slane %v11670_v6, %v12823_v11  ;;  %12645 = vmatprep.subr.bf16.mxu1 %v12738_v41  ;;  %v12200_v35 = vld.sshfl [vmem:[%s12821_s14 + $0x6d] sm:$0x1 pattern:$0x75316420] }
 0x10d   : > { %v8125_v27 = vsel %vm1417_vm6, %v8124_v14, %v8123_v38  ;;  %v2562_v1 = vrot.slane %v11671_v45, %v12823_v11  ;;  %v2576_v2 = vrot.slane %v11672_v59, %v12823_v11  ;;  %v2590_v54 = vrot.slane %v11673_v22, %v12823_v11  ;;  %v12201_v50 = vld.sshfl [vmem:[%s12821_s14 + $0x6e] sm:$0x1 pattern:$0x75316420] }
 0x10e   : > { %v8127_v63 = vsel %vm1420_vm7, %v8126_v37, %v8125_v27  ;;  %v2604_v32 = vrot.slane %v11674_v52, %v12823_v11  ;;  %v2868_v40 = vunpack.c.l.b16 %v2492_v12  ;;  %v14279_v23 = vunpack.c.l.b16 %v2506_v36  ;;  %v12204_v16 = vld.sshfl [vmem:[%s12821_s14 + $0x71] sm:$0x1 pattern:$0x75316420] }
 0x10f   : > { %v8185_v44 = vpack.c.b16 %v8127_v63, %v8113_v10  ;;  %v14281_v48 = vunpack.c.l.b16 %v2520_v53  ;;  %v14283_v0 = vunpack.c.l.b16 %v2534_v56  ;;  %v14285_v47 = vunpack.c.l.b16 %v2548_v15  ;;  %v12205_v41 = vld.sshfl [vmem:[%s12821_s14 + $0x72] sm:$0x1 pattern:$0x75316420] }
 0x110   : > { %v14287_v5 = vunpack.c.l.b16 %v2562_v1  ;;  %v14289_v3 = vunpack.c.l.b16 %v2576_v2  ;;  %v14291_v62 = vunpack.c.l.b16 %v2590_v54  ;;  %v2876_v9 = vunpack.c.l.b16 %v2604_v32 }
 0x111   : > { %12618 = vmatmul.mubr.msk.bf16.vlgmr.msra.gmra.mrb[0].mxu0 %vm1524_vm8, %v8185_v44  ;;  %v2949_v8 = vrot.slane %v14213_v19, 7  ;;  %v2951_v18 = vrot.slane %v14215_v28, 6  ;;  %v2953_v58 = vrot.slane %v14217_v30, 5  ;;  %v2955_v24 = vrot.slane %v14219_v31, 4 }
 0x112   : > { %12626 = vmatpush3.bf16.msra.mxu0 %v9495_v21  ;;  %v2957_v43 = vrot.slane %v14221_v57, 3  ;;  %v2959_v33 = vrot.slane %v14223_v29, 2  ;;  %v2961_v17 = vrot.slane %v2868_v40, 1  ;;  %v2963_v61 = vrot.slane %v14281_v48, 7 }
 0x113   : > { %v12202_v19 = vld.sshfl [vmem:[%s12821_s14 + $0x6f] sm:$0x1 pattern:$0x75316420]  ;;  %v2950_v28 = vsel %vm1402_vm1, %v2949_v8, %v14211_v20  ;;  %v2965_v30 = vrot.slane %v14283_v0, 6  ;;  %v2967_v31 = vrot.slane %v14285_v47, 5  ;;  %12727 = vmatprep.subr.msk.bf16.mxu0 %vm1537_vm0, %v14297_v25  ;;  %v7573_v13 = vrot.slane %v12191_v4, %v12823_v11 }
 0x114   : > { %v2969_v60 = vrot.slane %v14287_v5, 4  ;;  %v12203_v57 = vld.sshfl [vmem:[%s12821_s14 + $0x70] sm:$0x1 pattern:$0x75316420]  ;;  %v2952_v29 = vsel %vm1405_vm2, %v2951_v18, %v2950_v28  ;;  %v2964_v6 = vsel %vm1402_vm1, %v2963_v61, %v14279_v23  ;;  %v2971_v39 = vrot.slane %v14289_v3, 3 }
 0x115   : > { %v2973_v20 = vrot.slane %v14291_v62, 2  ;;  %v2954_v42 = vsel %vm1408_vm3, %v2953_v58, %v2952_v29  ;;  %v2966_v14 = vsel %vm1405_vm2, %v2965_v30, %v2964_v6  ;;  %v2975_v45 = vrot.slane %v2876_v9, 1  ;;  %v12206_v21 = vld.sshfl [vmem:[%s12821_s14 + $0x73] sm:$0x1 pattern:$0x75316420] }
 0x116   : > { %v2956_v55 = vsel %vm1411_vm4, %v2955_v24, %v2954_v42  ;;  %v2968_v37 = vsel %vm1408_vm3, %v2967_v31, %v2966_v14  ;;  %v7685_v59 = vrot.slane %v12199_v49, %v12823_v11  ;;  %v7699_v46 = vrot.slane %v12200_v35, %v12823_v11  ;;  %v11682_v18 = vld.sshfl [vmem:[%s12821_s14 + $0x74] sm:$0x1 pattern:$0x75316420] }
 0x117   : > { %v2958_v34 = vsel %vm1414_vm5, %v2957_v43, %v2956_v55  ;;  %v2970_v26 = vsel %vm1411_vm4, %v2969_v60, %v2968_v37  ;;  %v7713_v22 = vrot.slane %v12201_v50, %v12823_v11  ;;  %v7727_v12 = vrot.slane %v12202_v19, %v12823_v11  ;;  %v11683_v43 = vld.sshfl [vmem:[%s12821_s14 + $0x7f] sm:$0x1 pattern:$0x75316420] }
 0x118   : > { %v2960_v51 = vsel %vm1417_vm6, %v2959_v33, %v2958_v34  ;;  %v2972_v7 = vsel %vm1414_vm5, %v2971_v39, %v2970_v26  ;;  %v7741_v52 = vrot.slane %v12203_v57, %v12823_v11  ;;  %v7755_v36 = vrot.slane %v12204_v16, %v12823_v11  ;;  %v11684_v33 = vld.sshfl [vmem:[%s12821_s14 + $0x80] sm:$0x1 pattern:$0x75316420] }
 0x119   : > { %v2962_v53 = vsel %vm1420_vm7, %v2961_v17, %v2960_v51  ;;  %v2974_v10 = vsel %vm1417_vm6, %v2973_v20, %v2972_v7  ;;  %v7769_v38 = vrot.slane %v12205_v41, %v12823_v11  ;;  %v7783_v56 = vrot.slane %v12206_v21, %v12823_v11  ;;  %v11686_v19 = vld.sshfl [vmem:[%s12821_s14 + $0x82] sm:$0x1 pattern:$0x75316420] }
 0x11a   : > { %v2976_v15 = vsel %vm1420_vm7, %v2975_v45, %v2974_v10  ;;  %v8040_v27 = vunpack.c.l.b16 %v7573_v13  ;;  %v8048_v1 = vunpack.c.l.b16 %v7685_v59  ;;  %v14347_v2 = vunpack.c.l.b16 %v7699_v46  ;;  %v11687_v30 = vld.sshfl [vmem:[%s12821_s14 + $0x83] sm:$0x1 pattern:$0x75316420] }
 0x11b   : > { %v3007_v54 = vpack.c.b16 %v2976_v15, %v2962_v53  ;;  %v14349_v63 = vunpack.c.l.b16 %v7713_v22  ;;  %v14351_v32 = vunpack.c.l.b16 %v7727_v12  ;;  %v14353_v40 = vunpack.c.l.b16 %v7741_v52  ;;  %v11688_v57 = vld.sshfl [vmem:[%s12821_s14 + $0x84] sm:$0x1 pattern:$0x75316420] }
 0x11c   : > { %v14355_v44 = vunpack.c.l.b16 %v7755_v36  ;;  %v14357_v9 = vunpack.c.l.b16 %v7769_v38  ;;  %v14359_v4 = vunpack.c.l.b16 %v7783_v56  ;;  %v8128_v8 = vrot.slane %v14279_v23, 7  ;;  %v11689_v20 = vld.sshfl [vmem:[%s12821_s14 + $0x85] sm:$0x1 pattern:$0x75316420] }
 0x11d   : > { %12581 = vmatprep.mubr.msk.bf16.mxu1 %vm1524_vm8, %v3007_v54  ;;  %v8130_v58 = vrot.slane %v14281_v48, 6  ;;  %v8132_v24 = vrot.slane %v14283_v0, 5  ;;  %v8134_v49 = vrot.slane %v14285_v47, 4  ;;  %v8136_v35 = vrot.slane %v14287_v5, 3 }
 0x11e   : > { %v8129_v17 = vsel %vm1402_vm1, %v8128_v8, %v8040_v27  ;;  %v8138_v61 = vrot.slane %v14289_v3, 2  ;;  %v8140_v23 = vrot.slane %v14291_v62, 1  ;;  %v8142_v50 = vrot.slane %v14347_v2, 7 }
 0x11f   : > { %v11685_v48 = vld.sshfl [vmem:[%s12821_s14 + $0x81] sm:$0x1 pattern:$0x75316420]  ;;  %v8131_v0 = vsel %vm1405_vm2, %v8130_v58, %v8129_v17  ;;  %v8144_v47 = vrot.slane %v14349_v63, 6  ;;  %v8146_v5 = vrot.slane %v14351_v32, 5  ;;  %v2716_v16 = vrot.slane %v11682_v18, %v12823_v11 }
 0x120   : > { %v8148_v28 = vrot.slane %v14353_v40, 4  ;;  %v8133_v31 = vsel %vm1408_vm3, %v8132_v24, %v8131_v0  ;;  %v8143_v3 = vsel %vm1402_vm1, %v8142_v50, %v8048_v1  ;;  %v8150_v62 = vrot.slane %v14355_v44, 3  ;;  %v11690_v45 = vld.sshfl [vmem:[%s12821_s14 + $0x86] sm:$0x1 pattern:$0x75316420] }
 0x121   : > { %v8152_v60 = vrot.slane %v14357_v9, 2  ;;  %v8135_v29 = vsel %vm1411_vm4, %v8134_v49, %v8133_v31  ;;  %v8145_v6 = vsel %vm1405_vm2, %v8144_v47, %v8143_v3  ;;  %v8154_v39 = vrot.slane %v14359_v4, 1  ;;  %v12207_v24 = vld.sshfl [vmem:[%s12821_s14 + $0x7e] sm:$0x1 pattern:$0x75316420] }
 0x122   : > { %v8137_v42 = vsel %vm1414_vm5, %v8136_v35, %v8135_v29  ;;  %v8147_v14 = vsel %vm1408_vm3, %v8146_v5, %v8145_v6  ;;  %v2730_v41 = vrot.slane %v11683_v43, %v12823_v11  ;;  %v2744_v13 = vrot.slane %v11684_v33, %v12823_v11  ;;  %v12215_v49 = vld.sshfl [vmem:[%s12821_s14 + $0x90] sm:$0x1 pattern:$0x75316420] }
 0x123   : > { %v8139_v55 = vsel %vm1417_vm6, %v8138_v61, %v8137_v42  ;;  %v8149_v37 = vsel %vm1411_vm4, %v8148_v28, %v8147_v14  ;;  %v2758_v21 = vrot.slane %v11685_v48, %v12823_v11  ;;  %v2772_v59 = vrot.slane %v11686_v19, %v12823_v11  ;;  %v12216_v61 = vld.sshfl [vmem:[%s12821_s14 + $0x91] sm:$0x1 pattern:$0x75316420] }
 0x124   : > { %v8141_v46 = vsel %vm1420_vm7, %v8140_v23, %v8139_v55  ;;  %v8151_v34 = vsel %vm1414_vm5, %v8150_v62, %v8149_v37  ;;  %v2786_v26 = vrot.slane %v11687_v30, %v12823_v11  ;;  %v2800_v22 = vrot.slane %v11688_v57, %v12823_v11  ;;  %v12217_v23 = vld.sshfl [vmem:[%s12821_s14 + $0x92] sm:$0x1 pattern:$0x75316420] }
 0x125   : > { %v8153_v12 = vsel %vm1417_vm6, %v8152_v60, %v8151_v34  ;;  %v2814_v51 = vrot.slane %v11689_v20, %v12823_v11  ;;  %v2828_v7 = vrot.slane %v11690_v45, %v12823_v11  ;;  %v2884_v52 = vunpack.c.l.b16 %v2716_v16  ;;  %v12218_v19 = vld.sshfl [vmem:[%s12821_s14 + $0x93] sm:$0x1 pattern:$0x75316420] }
 0x126   : > { %v8155_v36 = vsel %vm1420_vm7, %v8154_v39, %v8153_v12  ;;  %v14408_v53 = vunpack.c.l.b16 %v2730_v41  ;;  %v14410_v10 = vunpack.c.l.b16 %v2744_v13  ;;  %v14412_v38 = vunpack.c.l.b16 %v2758_v21  ;;  %v12220_v30 = vld.sshfl [vmem:[%s12821_s14 + $0x95] sm:$0x1 pattern:$0x75316420] }
 0x127   : > { %v8186_v56 = vpack.c.b16 %v8155_v36, %v8141_v46  ;;  %v14414_v15 = vunpack.c.l.b16 %v2772_v59  ;;  %v14416_v27 = vunpack.c.l.b16 %v2786_v26  ;;  %v14418_v1 = vunpack.c.l.b16 %v2800_v22  ;;  %v12221_v62 = vld.sshfl [vmem:[%s12821_s14 + $0x96] sm:$0x1 pattern:$0x75316420] }
 0x128   : > { %v14420_v54 = vunpack.c.l.b16 %v2814_v51  ;;  %v2892_v8 = vunpack.c.l.b16 %v2828_v7  ;;  %v2977_v18 = vrot.slane %v14349_v63, 7  ;;  %v2979_v58 = vrot.slane %v14351_v32, 6  ;;  %v12222_v39 = vld.sshfl [vmem:[%s12821_s14 + $0x97] sm:$0x1 pattern:$0x75316420] }
 0x129   : > { %12621 = vmatprep.mubr.msk.bf16.mxu0 %vm1524_vm8, %v8186_v56  ;;  %v2981_v35 = vrot.slane %v14353_v40, 5  ;;  %v2983_v43 = vrot.slane %v14355_v44, 4  ;;  %v2985_v33 = vrot.slane %v14357_v9, 3  ;;  %v2987_v17 = vrot.slane %v14359_v4, 2 }
 0x12a   : > { %v2978_v63 = vsel %vm1402_vm1, %v2977_v18, %v14347_v2  ;;  %v2989_v50 = vrot.slane %v2884_v52, 1  ;;  %v2991_v32 = vrot.slane %v14410_v10, 7  ;;  %v2993_v48 = vrot.slane %v14412_v38, 6 }
 0x12b   : > { %v12219_v40 = vld.sshfl [vmem:[%s12821_s14 + $0x94] sm:$0x1 pattern:$0x75316420]  ;;  %v2980_v44 = vsel %vm1405_vm2, %v2979_v58, %v2978_v63  ;;  %v2995_v9 = vrot.slane %v14414_v15, 5  ;;  %v2997_v4 = vrot.slane %v14416_v27, 4  ;;  %v7797_v60 = vrot.slane %v12207_v24, %v12823_v11 }
 0x12c   : > { %v2999_v0 = vrot.slane %v14418_v1, 3  ;;  %v2982_v47 = vsel %vm1408_vm3, %v2981_v35, %v2980_v44  ;;  %v2992_v2 = vsel %vm1402_vm1, %v2991_v32, %v14408_v53  ;;  %v3001_v5 = vrot.slane %v14420_v54, 2  ;;  %v14470_v18 = vld.sshfl [vmem:[%s12821_s14 + $0x9] sm:$0x1 pattern:$0x75316420] }
 0x12d   : > { %v3003_v28 = vrot.slane %v2892_v8, 1  ;;  %v2984_v31 = vsel %vm1411_vm4, %v2983_v43, %v2982_v47  ;;  %v2994_v3 = vsel %vm1405_vm2, %v2993_v48, %v2992_v2  ;;  %v7909_v57 = vrot.slane %v12215_v49, %v12823_v11  ;;  %v11761_v43 = vld.sshfl [vmem:[%s12821_s14 + $0xa] sm:$0x1 pattern:$0x75316420] }
 0x12e   : > { %v2986_v29 = vsel %vm1414_vm5, %v2985_v33, %v2984_v31  ;;  %v2996_v6 = vsel %vm1408_vm3, %v2995_v9, %v2994_v3  ;;  %v7923_v20 = vrot.slane %v12216_v61, %v12823_v11  ;;  %v7937_v16 = vrot.slane %v12217_v23, %v12823_v11  ;;  %v11762_v33 = vld.sshfl [vmem:[%s12821_s14 + $0xb] sm:$0x1 pattern:$0x75316420] }
 0x12f   : > { %v2988_v42 = vsel %vm1417_vm6, %v2987_v17, %v2986_v29  ;;  %v2998_v14 = vsel %vm1411_vm4, %v2997_v4, %v2996_v6  ;;  %v7951_v45 = vrot.slane %v12218_v19, %v12823_v11  ;;  %v7965_v41 = vrot.slane %v12219_v40, %v12823_v11  ;;  %v11763_v63 = vld.sshfl [vmem:[%s12821_s14 + $0xc] sm:$0x1 pattern:$0x75316420] }
 0x130   : > { %v2990_v13 = vsel %vm1420_vm7, %v2989_v50, %v2988_v42  ;;  %v3000_v55 = vsel %vm1414_vm5, %v2999_v0, %v2998_v14  ;;  %v7979_v37 = vrot.slane %v12220_v30, %v12823_v11  ;;  %v7993_v21 = vrot.slane %v12221_v62, %v12823_v11  ;;  %v11764_v50 = vld.sshfl [vmem:[%s12821_s14 + $0xd] sm:$0x1 pattern:$0x75316420] }
 0x131   : > { %v3002_v59 = vsel %vm1417_vm6, %v3001_v5, %v3000_v55  ;;  %v8007_v46 = vrot.slane %v12222_v39, %v12823_v11  ;;  %v8056_v34 = vunpack.c.l.b16 %v7797_v60  ;;  %v8064_v26 = vunpack.c.l.b16 %v7909_v57  ;;  %v11765_v19 = vld.sshfl [vmem:[%s12821_s14 + $0xe] sm:$0x1 pattern:$0x75316420] }
 0x132   : > { %v3004_v22 = vsel %vm1420_vm7, %v3003_v28, %v3002_v59  ;;  %v8065_v12 = vunpack.c.l.b16 %v7923_v20  ;;  %v8066_v51 = vunpack.c.l.b16 %v7937_v16  ;;  %v8067_v7 = vunpack.c.l.b16 %v7951_v45  ;;  %v11767_v9 = vld.sshfl [vmem:[%s12821_s14 + $0x10] sm:$0x1 pattern:$0x75316420] }
 0x133   : > { %v3008_v52 = vpack.c.b16 %v3004_v22, %v2990_v13  ;;  %v8068_v36 = vunpack.c.l.b16 %v7965_v41  ;;  %v8069_v56 = vunpack.c.l.b16 %v7979_v37  ;;  %v8070_v8 = vunpack.c.l.b16 %v7993_v21  ;;  %v11769_v2 = vld.sshfl [vmem:[%s12821_s14 + $0x1c] sm:$0x1 pattern:$0x75316420] }
 0x134   : > { %v8071_v58 = vunpack.c.l.b16 %v8007_v46  ;;  %v8156_v24 = vrot.slane %v14408_v53, 7  ;;  %v8158_v49 = vrot.slane %v14410_v10, 6  ;;  %v8160_v35 = vrot.slane %v14412_v38, 5 }
 0x135   : > { %12582 = vmatmul.mubr.msk.bf16.gmra.mrb[4].mxu1 %vm1524_vm8, %v3008_v52  ;;  %v8162_v17 = vrot.slane %v14414_v15, 4  ;;  %v8164_v61 = vrot.slane %v14416_v27, 3  ;;  %v8166_v23 = vrot.slane %v14418_v1, 2  ;;  %v8168_v53 = vrot.slane %v14420_v54, 1 }
 0x136   : > { %v8157_v10 = vsel %vm1402_vm1, %v8156_v24, %v8056_v34  ;;  %v8170_v38 = vrot.slane %v8065_v12, 7  ;;  %v8172_v32 = vrot.slane %v8066_v51, 6  ;;  %v8174_v48 = vrot.slane %v8067_v7, 5 }
 0x137   : > { %v11766_v15 = vld.sshfl [vmem:[%s12821_s14 + $0xf] sm:$0x1 pattern:$0x75316420]  ;;  %v8159_v27 = vsel %vm1405_vm2, %v8158_v49, %v8157_v10  ;;  %v8176_v40 = vrot.slane %v8068_v36, 4  ;;  %v8178_v44 = vrot.slane %v8069_v56, 3  ;;  %v3241_v30 = vrot.slane %v14470_v18, %v12823_v11 }
 0x138   : > { %v8180_v1 = vrot.slane %v8070_v8, 2  ;;  %v11768_v54 = vld.sshfl [vmem:[%s12821_s14 + $0x1b] sm:$0x1 pattern:$0x75316420]  ;;  %v8161_v4 = vsel %vm1408_vm3, %v8160_v35, %v8159_v27  ;;  %v8171_v0 = vsel %vm1402_vm1, %v8170_v38, %v8064_v26  ;;  %v8182_v47 = vrot.slane %v8071_v58, 1 }
 0x139   : > { %v11770_v5 = vld.sshfl [vmem:[%s12821_s14 + $0x1d] sm:$0x1 pattern:$0x75316420]  ;;  %v8163_v31 = vsel %vm1411_vm4, %v8162_v17, %v8161_v4  ;;  %v8173_v3 = vsel %vm1405_vm2, %v8172_v32, %v8171_v0  ;;  %v3255_v60 = vrot.slane %v11761_v43, %v12823_v11  ;;  %v3269_v57 = vrot.slane %v11762_v33, %v12823_v11 }
 0x13a   : > { %v11771_v28 = vld.sshfl [vmem:[%s12821_s14 + $0x1e] sm:$0x1 pattern:$0x75316420]  ;;  %v8165_v29 = vsel %vm1414_vm5, %v8164_v61, %v8163_v31  ;;  %v8175_v6 = vsel %vm1408_vm3, %v8174_v48, %v8173_v3  ;;  %v3283_v20 = vrot.slane %v11763_v63, %v12823_v11  ;;  %v3297_v16 = vrot.slane %v11764_v50, %v12823_v11 }
 0x13b   : > { %v11772_v62 = vld.sshfl [vmem:[%s12821_s14 + $0x1f] sm:$0x1 pattern:$0x75316420]  ;;  %v8167_v42 = vsel %vm1417_vm6, %v8166_v23, %v8165_v29  ;;  %v8177_v14 = vsel %vm1411_vm4, %v8176_v40, %v8175_v6  ;;  %v3311_v41 = vrot.slane %v11765_v19, %v12823_v11  ;;  %v3325_v13 = vrot.slane %v11766_v15, %v12823_v11 }
 0x13c   : > { %v11773_v39 = vld.sshfl [vmem:[%s12821_s14 + $0x20] sm:$0x1 pattern:$0x75316420]  ;;  %v8169_v55 = vsel %vm1420_vm7, %v8168_v53, %v8167_v42  ;;  %v8179_v37 = vsel %vm1414_vm5, %v8178_v44, %v8177_v14  ;;  %v3339_v59 = vrot.slane %v11767_v9, %v12823_v11  ;;  %v3353_v46 = vrot.slane %v11768_v54, %v12823_v11 }
 0x13d   : > { %v11774_v45 = vld.sshfl [vmem:[%s12821_s14 + $0x21] sm:$0x1 pattern:$0x75316420]  ;;  %v8181_v34 = vsel %vm1417_vm6, %v8180_v1, %v8179_v37  ;;  %v3367_v26 = vrot.slane %v11769_v2, %v12823_v11  ;;  %v3381_v22 = vrot.slane %v11770_v5, %v12823_v11  ;;  %v3395_v12 = vrot.slane %v11771_v28, %v12823_v11 }
 0x13e   : > { %v11775_v21 = vld.sshfl [vmem:[%s12821_s14 + $0x22] sm:$0x1 pattern:$0x75316420]  ;;  %v8183_v51 = vsel %vm1420_vm7, %v8182_v47, %v8181_v34  ;;  %v3409_v7 = vrot.slane %v11772_v62, %v12823_v11  ;;  %v3423_v52 = vrot.slane %v11773_v39, %v12823_v11  ;;  %v3437_v36 = vrot.slane %v11774_v45, %v12823_v11 }
 0x13f   : > { %v8187_v56 = vpack.c.b16 %v8183_v51, %v8169_v55  ;;  %v3451_v8 = vrot.slane %v11775_v21, %v12823_v11  ;;  %v4124_v18 = vunpack.c.l.b16 %v3241_v30  ;;  %v4125_v58 = vunpack.c.l.b16 %v3255_v60  ;;  %v12292_v15 = vld.sshfl [vmem:[%s12821_s14 + $0x12] sm:$0x1 pattern:$0x75316420] }
 0x140   : > { %v4126_v24 = vunpack.c.l.b16 %v3269_v57  ;;  %v4127_v49 = vunpack.c.l.b16 %v3283_v20  ;;  %v4128_v35 = vunpack.c.l.b16 %v3297_v16  ;;  %v4129_v43 = vunpack.c.l.b16 %v3311_v41  ;;  %v12293_v27 = vld.sshfl [vmem:[%s12821_s14 + $0x13] sm:$0x1 pattern:$0x75316420] }
 0x141   : > { %12622 = vmatmul.mubr.msk.bf16.gmra.mrb[4].mxu0 %vm1524_vm8, %v8187_v56  ;;  %v4130_v33 = vunpack.c.l.b16 %v3325_v13  ;;  %v4131_v17 = vunpack.c.l.b16 %v3339_v59  ;;  %v4132_v61 = vunpack.c.l.b16 %v3353_v46  ;;  %v4133_v23 = vunpack.c.l.b16 %v3367_v26  ;;  %v12294_v54 = vld.sshfl [vmem:[%s12821_s14 + $0x14] sm:$0x1 pattern:$0x75316420] }
 0x142   : > { %v4134_v53 = vunpack.c.l.b16 %v3381_v22  ;;  %v4135_v63 = vunpack.c.l.b16 %v3395_v12  ;;  %v4136_v50 = vunpack.c.l.b16 %v3409_v7  ;;  %v4137_v10 = vunpack.c.l.b16 %v3423_v52  ;;  %v12295_v4 = vld.sshfl [vmem:[%s12821_s14 + $0x15] sm:$0x1 pattern:$0x75316420] }
 0x143   : > { %v4138_v38 = vunpack.c.l.b16 %v3437_v36  ;;  %v4139_v32 = vunpack.c.l.b16 %v3451_v8  ;;  %v4188_v48 = vrot.slane %v4125_v58, 7  ;;  %v4190_v19 = vrot.slane %v4126_v24, 6  ;;  %v12296_v28 = vld.sshfl [vmem:[%s12821_s14 + $0x16] sm:$0x1 pattern:$0x75316420] }
 0x144   : > { %v4192_v40 = vrot.slane %v4127_v49, 5  ;;  %v4194_v44 = vrot.slane %v4128_v35, 4  ;;  %v4196_v1 = vrot.slane %v4129_v43, 3  ;;  %v4198_v9 = vrot.slane %v4130_v33, 2 }
 0x145   : > { %v4189_v0 = vsel %vm1402_vm1, %v4188_v48, %v4124_v18  ;;  %v4200_v47 = vrot.slane %v4131_v17, 1  ;;  %v4202_v2 = vrot.slane %v4133_v23, 7  ;;  %v4204_v5 = vrot.slane %v4134_v53, 6 }
 0x146   : > { %v12297_v30 = vld.sshfl [vmem:[%s12821_s14 + $0x17] sm:$0x1 pattern:$0x75316420]  ;;  %v4191_v31 = vsel %vm1405_vm2, %v4190_v19, %v4189_v0  ;;  %v4206_v3 = vrot.slane %v4135_v63, 5  ;;  %v4208_v62 = vrot.slane %v4136_v50, 4  ;;  %v8419_v21 = vrot.slane %v12292_v15, %v12823_v11 }
 0x147   : > { %v4210_v60 = vrot.slane %v4137_v10, 3  ;;  %v12298_v57 = vld.sshfl [vmem:[%s12821_s14 + $0x18] sm:$0x1 pattern:$0x75316420]  ;;  %v4193_v6 = vsel %vm1408_vm3, %v4192_v40, %v4191_v31  ;;  %v4203_v39 = vsel %vm1402_vm1, %v4202_v2, %v4132_v61  ;;  %v4212_v20 = vrot.slane %v4138_v38, 2 }
 0x148   : > { %v12299_v29 = vld.sshfl [vmem:[%s12821_s14 + $0x19] sm:$0x1 pattern:$0x75316420]  ;;  %v4214_v16 = vrot.slane %v4139_v32, 1  ;;  %v4195_v41 = vsel %vm1411_vm4, %v4194_v44, %v4193_v6  ;;  %v4205_v13 = vsel %vm1405_vm2, %v4204_v5, %v4203_v39  ;;  %v8433_v59 = vrot.slane %v12293_v27, %v12823_v11 }
 0x149   : > { %v12300_v42 = vld.sshfl [vmem:[%s12821_s14 + $0x24] sm:$0x1 pattern:$0x75316420]  ;;  %v4197_v46 = vsel %vm1414_vm5, %v4196_v1, %v4195_v41  ;;  %v4207_v34 = vsel %vm1408_vm3, %v4206_v3, %v4205_v13  ;;  %v8447_v22 = vrot.slane %v12294_v54, %v12823_v11  ;;  %v8461_v12 = vrot.slane %v12295_v4, %v12823_v11 }
 0x14a   : > { %v12301_v14 = vld.sshfl [vmem:[%s12821_s14 + $0x25] sm:$0x1 pattern:$0x75316420]  ;;  %v4199_v51 = vsel %vm1417_vm6, %v4198_v9, %v4197_v46  ;;  %v4209_v7 = vsel %vm1411_vm4, %v4208_v62, %v4207_v34  ;;  %v8475_v36 = vrot.slane %v12296_v28, %v12823_v11  ;;  %v8489_v56 = vrot.slane %v12297_v30, %v12823_v11 }
 0x14b   : > { %v12302_v45 = vld.sshfl [vmem:[%s12821_s14 + $0x26] sm:$0x1 pattern:$0x75316420]  ;;  %v4201_v8 = vsel %vm1420_vm7, %v4200_v47, %v4199_v51  ;;  %v4211_v18 = vsel %vm1414_vm5, %v4210_v60, %v4209_v7  ;;  %v8503_v24 = vrot.slane %v12298_v57, %v12823_v11  ;;  %v8517_v49 = vrot.slane %v12299_v29, %v12823_v11 }
 0x14c   : > { %v12303_v55 = vld.sshfl [vmem:[%s12821_s14 + $0x27] sm:$0x1 pattern:$0x75316420]  ;;  %v4213_v35 = vsel %vm1417_vm6, %v4212_v20, %v4211_v18  ;;  %v8531_v43 = vrot.slane %v12300_v42, %v12823_v11  ;;  %v8545_v33 = vrot.slane %v12301_v14, %v12823_v11  ;;  %v8559_v17 = vrot.slane %v12302_v45, %v12823_v11 }
 0x14d   : > { %v12304_v37 = vld.sshfl [vmem:[%s12821_s14 + $0x28] sm:$0x1 pattern:$0x75316420]  ;;  %v4215_v61 = vsel %vm1420_vm7, %v4214_v16, %v4213_v35  ;;  %v8573_v23 = vrot.slane %v12303_v55, %v12823_v11  ;;  %v9302_v32 = vunpack.c.l.b16 %v8419_v21  ;;  %v9303_v48 = vunpack.c.l.b16 %v8433_v59 }
 0x14e   : > { %v12305_v26 = vld.sshfl [vmem:[%s12821_s14 + $0x29] sm:$0x1 pattern:$0x75316420]  ;;  %v8587_v53 = vrot.slane %v12304_v37, %v12823_v11  ;;  %v4300_v50 = vpack.c.b16 %v4215_v61, %v4201_v8  ;;  %v9304_v19 = vunpack.c.l.b16 %v8447_v22  ;;  %v9305_v15 = vunpack.c.l.b16 %v8461_v12 }
 0x14f   : > { %v12306_v52 = vld.sshfl [vmem:[%s12821_s14 + $0x2a] sm:$0x1 pattern:$0x75316420]  ;;  %v8601_v63 = vrot.slane %v12305_v26, %v12823_v11  ;;  %v9306_v27 = vunpack.c.l.b16 %v8475_v36  ;;  %v9307_v40 = vunpack.c.l.b16 %v8489_v56  ;;  %v9308_v44 = vunpack.c.l.b16 %v8503_v24 }
 0x150   : > { %v12307_v58 = vld.sshfl [vmem:[%s12821_s14 + $0x2b] sm:$0x1 pattern:$0x75316420]  ;;  %v8615_v10 = vrot.slane %v12306_v52, %v12823_v11  ;;  %12587 = vmatprep.mubr.msk.bf16.mxu1 %vm1524_vm8, %v4300_v50  ;;  %v9309_v1 = vunpack.c.l.b16 %v8517_v49  ;;  %v9310_v9 = vunpack.c.l.b16 %v8531_v43  ;;  %v9311_v54 = vunpack.c.l.b16 %v8545_v33 }
 0x151   : > { %v8629_v38 = vrot.slane %v12307_v58, %v12823_v11  ;;  %v9312_v4 = vunpack.c.l.b16 %v8559_v17  ;;  %v9313_v0 = vunpack.c.l.b16 %v8573_v23  ;;  %v9314_v47 = vunpack.c.l.b16 %v8587_v53  ;;  %v11776_v31 = vld.sshfl [vmem:[%s12821_s14 + $0x2d] sm:$0x1 pattern:$0x75316420] }
 0x152   : > { %v9315_v2 = vunpack.c.l.b16 %v8601_v63  ;;  %v9316_v5 = vunpack.c.l.b16 %v8615_v10  ;;  %v9366_v30 = vrot.slane %v9302_v32, 1  ;;  %v9368_v3 = vrot.slane %v9304_v19, 7  ;;  %v11777_v29 = vld.sshfl [vmem:[%s12821_s14 + $0x2e] sm:$0x1 pattern:$0x75316420] }
 0x153   : > { %v9317_v28 = vunpack.c.l.b16 %v8629_v38  ;;  %v9370_v62 = vrot.slane %v9305_v15, 6  ;;  %v9372_v60 = vrot.slane %v9306_v27, 5  ;;  %v9374_v57 = vrot.slane %v9307_v40, 4 }
 0x154   : > { %v11778_v6 = vld.sshfl [vmem:[%s12821_s14 + $0x2f] sm:$0x1 pattern:$0x75316420]  ;;  %v9367_v39 = vsel %vm1402_vm1, %v9303_v48, %v9366_v30  ;;  %v9376_v20 = vrot.slane %v9308_v44, 3  ;;  %v9378_v16 = vrot.slane %v9309_v1, 2  ;;  %v3465_v18 = vrot.slane %v11776_v31, %v12823_v11 }
 0x155   : > { %v9380_v42 = vrot.slane %v9310_v9, 1  ;;  %v11779_v14 = vld.sshfl [vmem:[%s12821_s14 + $0x30] sm:$0x1 pattern:$0x75316420]  ;;  %v9369_v41 = vsel %vm1405_vm2, %v9368_v3, %v9367_v39  ;;  %v9382_v13 = vrot.slane %v9312_v4, 7  ;;  %v3479_v35 = vrot.slane %v11777_v29, %v12823_v11 }
 0x156   : > { %v11780_v45 = vld.sshfl [vmem:[%s12821_s14 + $0x31] sm:$0x1 pattern:$0x75316420]  ;;  %v9384_v55 = vrot.slane %v9313_v0, 6  ;;  %v9386_v37 = vrot.slane %v9314_v47, 5  ;;  %v9371_v46 = vsel %vm1408_vm3, %v9370_v62, %v9369_v41  ;;  %v3493_v43 = vrot.slane %v11778_v6, %v12823_v11 }
 0x157   : > { %v11781_v21 = vld.sshfl [vmem:[%s12821_s14 + $0x32] sm:$0x1 pattern:$0x75316420]  ;;  %v9381_v34 = vsel %vm1402_vm1, %v9311_v54, %v9380_v42  ;;  %v9388_v26 = vrot.slane %v9315_v2, 4  ;;  %v9390_v22 = vrot.slane %v9316_v5, 3  ;;  %v9373_v52 = vsel %vm1411_vm4, %v9372_v60, %v9371_v46 }
 0x158   : > { %v11782_v59 = vld.sshfl [vmem:[%s12821_s14 + $0x33] sm:$0x1 pattern:$0x75316420]  ;;  %v9383_v36 = vsel %vm1405_vm2, %v9382_v13, %v9381_v34  ;;  %v9392_v56 = vrot.slane %v9317_v28, 2  ;;  %v9375_v58 = vsel %vm1414_vm5, %v9374_v57, %v9373_v52  ;;  %v3507_v23 = vrot.slane %v11779_v14, %v12823_v11 }
 0x159   : > { %v11783_v12 = vld.sshfl [vmem:[%s12821_s14 + $0x34] sm:$0x1 pattern:$0x75316420]  ;;  %v9385_v24 = vsel %vm1408_vm3, %v9384_v55, %v9383_v36  ;;  %v9377_v33 = vsel %vm1417_vm6, %v9376_v20, %v9375_v58  ;;  %v3521_v53 = vrot.slane %v11780_v45, %v12823_v11  ;;  %v3535_v38 = vrot.slane %v11781_v21, %v12823_v11 }
 0x15a   : > { %v11784_v51 = vld.sshfl [vmem:[%s12821_s14 + $0x3f] sm:$0x1 pattern:$0x75316420]  ;;  %v9387_v17 = vsel %vm1411_vm4, %v9386_v37, %v9385_v24  ;;  %v9379_v63 = vsel %vm1420_vm7, %v9378_v16, %v9377_v33  ;;  %v3549_v32 = vrot.slane %v11782_v59, %v12823_v11  ;;  %v3563_v15 = vrot.slane %v11783_v12, %v12823_v11 }
 0x15b   : > { %v11785_v7 = vld.sshfl [vmem:[%s12821_s14 + $0x40] sm:$0x1 pattern:$0x75316420]  ;;  %v9389_v50 = vsel %vm1414_vm5, %v9388_v26, %v9387_v17  ;;  %v3577_v27 = vrot.slane %v11784_v51, %v12823_v11  ;;  %v4140_v28 = vunpack.c.l.b16 %v3465_v18  ;;  %v4141_v30 = vunpack.c.l.b16 %v3479_v35 }
 0x15c   : > { %v11786_v8 = vld.sshfl [vmem:[%s12821_s14 + $0x41] sm:$0x1 pattern:$0x75316420]  ;;  %v9391_v48 = vsel %vm1417_vm6, %v9390_v22, %v9389_v50  ;;  %v3591_v40 = vrot.slane %v11785_v7, %v12823_v11  ;;  %v4142_v31 = vunpack.c.l.b16 %v3493_v43  ;;  %v4143_v3 = vunpack.c.l.b16 %v3507_v23 }
 0x15d   : > { %v11787_v49 = vld.sshfl [vmem:[%s12821_s14 + $0x42] sm:$0x1 pattern:$0x75316420]  ;;  %v9393_v44 = vsel %vm1420_vm7, %v9392_v56, %v9391_v48  ;;  %v3605_v9 = vrot.slane %v11786_v8, %v12823_v11  ;;  %v4144_v62 = vunpack.c.l.b16 %v3521_v53  ;;  %v4145_v60 = vunpack.c.l.b16 %v3535_v38 }
 0x15e   : > { %v11788_v61 = vld.sshfl [vmem:[%s12821_s14 + $0x43] sm:$0x1 pattern:$0x75316420]  ;;  %v3619_v54 = vrot.slane %v11787_v49, %v12823_v11  ;;  %v9478_v0 = vpack.c.b16 %v9393_v44, %v9379_v63  ;;  %v4146_v57 = vunpack.c.l.b16 %v3549_v32  ;;  %v4147_v29 = vunpack.c.l.b16 %v3563_v15 }
 0x15f   : > { %v11789_v10 = vld.sshfl [vmem:[%s12821_s14 + $0x44] sm:$0x1 pattern:$0x75316420]  ;;  %v3633_v4 = vrot.slane %v11788_v61, %v12823_v11  ;;  %v4148_v6 = vunpack.c.l.b16 %v3577_v27  ;;  %v4149_v39 = vunpack.c.l.b16 %v3591_v40  ;;  %v4150_v20 = vunpack.c.l.b16 %v3605_v9 }
 0x160   : > { %v11790_v19 = vld.sshfl [vmem:[%s12821_s14 + $0x45] sm:$0x1 pattern:$0x75316420]  ;;  %v3647_v47 = vrot.slane %v11789_v10, %v12823_v11  ;;  %12627 = vmatprep.mubr.msk.bf16.mxu0 %vm1524_vm8, %v9478_v0  ;;  %v4151_v16 = vunpack.c.l.b16 %v3619_v54  ;;  %v4216_v55 = vrot.slane %v4141_v30, 7  ;;  %v4218_v37 = vrot.slane %v4142_v31, 6 }
 0x161   : > { %v11791_v1 = vld.sshfl [vmem:[%s12821_s14 + $0x46] sm:$0x1 pattern:$0x75316420]  ;;  %v3661_v2 = vrot.slane %v11790_v19, %v12823_v11  ;;  %v4152_v42 = vunpack.c.l.b16 %v3633_v4  ;;  %v4220_v21 = vrot.slane %v4143_v3, 5  ;;  %v4222_v59 = vrot.slane %v4144_v62, 4 }
 0x162   : > { %v3675_v5 = vrot.slane %v11791_v1, %v12823_v11  ;;  %v4153_v14 = vunpack.c.l.b16 %v3647_v47  ;;  %v12308_v13 = vld.sshfl [vmem:[%s12821_s14 + $0x36] sm:$0x1 pattern:$0x75316420]  ;;  %v4224_v26 = vrot.slane %v4145_v60, 3  ;;  %v4226_v22 = vrot.slane %v4146_v57, 2 }
 0x163   : > { %v4154_v45 = vunpack.c.l.b16 %v3661_v2  ;;  %v12309_v46 = vld.sshfl [vmem:[%s12821_s14 + $0x37] sm:$0x1 pattern:$0x75316420]  ;;  %v4228_v12 = vrot.slane %v4147_v29, 1  ;;  %v4230_v51 = vrot.slane %v4149_v39, 7  ;;  %v4217_v36 = vsel %vm1402_vm1, %v4216_v55, %v4140_v28 }
 0x164   : > { %v4155_v41 = vunpack.c.l.b16 %v3675_v5  ;;  %v12310_v34 = vld.sshfl [vmem:[%s12821_s14 + $0x38] sm:$0x1 pattern:$0x75316420]  ;;  %v4232_v56 = vrot.slane %v4150_v20, 6  ;;  %v4234_v8 = vrot.slane %v4151_v16, 5  ;;  %v4219_v58 = vsel %vm1405_vm2, %v4218_v37, %v4217_v36 }
 0x165   : > { %v12311_v7 = vld.sshfl [vmem:[%s12821_s14 + $0x39] sm:$0x1 pattern:$0x75316420]  ;;  %v4236_v18 = vrot.slane %v4152_v42, 4  ;;  %v4231_v24 = vsel %vm1402_vm1, %v4230_v51, %v4148_v6  ;;  %v4238_v49 = vrot.slane %v4153_v14, 3  ;;  %v4221_v33 = vsel %vm1408_vm3, %v4220_v21, %v4219_v58 }
 0x166   : > { %v12312_v52 = vld.sshfl [vmem:[%s12821_s14 + $0x3a] sm:$0x1 pattern:$0x75316420]  ;;  %v4240_v35 = vrot.slane %v4154_v45, 2  ;;  %v4233_v17 = vsel %vm1405_vm2, %v4232_v56, %v4231_v24  ;;  %v4242_v61 = vrot.slane %v4155_v41, 1  ;;  %v8643_v53 = vrot.slane %v12308_v13, %v12823_v11 }
 0x167   : > { %v12313_v43 = vld.sshfl [vmem:[%s12821_s14 + $0x3b] sm:$0x1 pattern:$0x75316420]  ;;  %v4223_v63 = vsel %vm1411_vm4, %v4222_v59, %v4221_v33  ;;  %v4235_v50 = vsel %vm1408_vm3, %v4234_v8, %v4233_v17  ;;  %v8657_v38 = vrot.slane %v12309_v46, %v12823_v11  ;;  %v8671_v32 = vrot.slane %v12310_v34, %v12823_v11  ;;  %v12739_v51 = vld [vmem:[%s15382_s4] sm:$0xff]  }
 0x168   : > { %v12314_v23 = vld.sshfl [vmem:[%s12821_s14 + $0x3c] sm:$0x1 pattern:$0x75316420]  ;;  %v4225_v48 = vsel %vm1414_vm5, %v4224_v26, %v4223_v63  ;;  %v4237_v19 = vsel %vm1411_vm4, %v4236_v18, %v4235_v50  ;;  %v8685_v27 = vrot.slane %v12311_v7, %v12823_v11  ;;  %v8699_v40 = vrot.slane %v12312_v52, %v12823_v11 }
 0x169   : > { %v12315_v10 = vld.sshfl [vmem:[%s12821_s14 + $0x3d] sm:$0x1 pattern:$0x75316420]  ;;  %v4227_v44 = vsel %vm1417_vm6, %v4226_v22, %v4225_v48  ;;  %v4239_v1 = vsel %vm1414_vm5, %v4238_v49, %v4237_v19  ;;  %v8713_v54 = vrot.slane %v12313_v43, %v12823_v11  ;;  %v8727_v4 = vrot.slane %v12314_v23, %v12823_v11 }
 0x16a   : > { %v12316_v15 = vld.sshfl [vmem:[%s12821_s14 + $0x48] sm:$0x1 pattern:$0x75316420]  ;;  %v4229_v0 = vsel %vm1420_vm7, %v4228_v12, %v4227_v44  ;;  %v4241_v47 = vsel %vm1417_vm6, %v4240_v35, %v4239_v1  ;;  %v8741_v5 = vrot.slane %v12315_v10, %v12823_v11  ;;  %v9318_v60 = vunpack.c.l.b16 %v8643_v53 }
 0x16b   : > { %v12317_v9 = vld.sshfl [vmem:[%s12821_s14 + $0x49] sm:$0x1 pattern:$0x75316420]  ;;  %v8755_v28 = vrot.slane %v12316_v15, %v12823_v11  ;;  %v4243_v30 = vsel %vm1420_vm7, %v4242_v61, %v4241_v47  ;;  %v14660_v39 = vunpack.c.l.b16 %v8657_v38  ;;  %v14662_v20 = vunpack.c.l.b16 %v8671_v32 }
 0x16c   : > { %v12318_v2 = vld.sshfl [vmem:[%s12821_s14 + $0x4a] sm:$0x1 pattern:$0x75316420]  ;;  %v8769_v3 = vrot.slane %v12317_v9, %v12823_v11  ;;  %v4301_v57 = vpack.c.b16 %v4243_v30, %v4229_v0  ;;  %v14666_v14 = vunpack.c.l.b16 %v8685_v27  ;;  %v14668_v45 = vunpack.c.l.b16 %v8699_v40 }
 0x16d   : > { %v12319_v31 = vld.sshfl [vmem:[%s12821_s14 + $0x4b] sm:$0x1 pattern:$0x75316420]  ;;  %v8783_v62 = vrot.slane %v12318_v2, %v12823_v11  ;;  %v14670_v41 = vunpack.c.l.b16 %v8713_v54  ;;  %v14675_v37 = vunpack.c.l.b16 %v8727_v4  ;;  %v14677_v21 = vunpack.c.l.b16 %v8741_v5 }
 0x16e   : > { %v12320_v29 = vld.sshfl [vmem:[%s12821_s14 + $0x4c] sm:$0x1 pattern:$0x75316420]  ;;  %v8797_v6 = vrot.slane %v12319_v31, %v12823_v11  ;;  %12588 = vmatmul.mubr.msk.bf16.vlgmr.msra.gmra.mrb[0].mxu1 %vm1524_vm8, %v4301_v57  ;;  %v9326_v59 = vunpack.c.l.b16 %v8755_v28  ;;  %v14681_v26 = vunpack.c.l.b16 %v8769_v3  ;;  %v9394_v56 = vrot.slane %v9318_v60, 1 }
 0x16f   : > { %v12321_v16 = vld.sshfl [vmem:[%s12821_s14 + $0x4d] sm:$0x1 pattern:$0x75316420]  ;;  %v8811_v42 = vrot.slane %v12320_v29, %v12823_v11  ;;  %v14683_v22 = vunpack.c.l.b16 %v8783_v62  ;;  %12646 = vmatpush3.bf16.msra.mxu1 %v12739_v51  ;;  %v9396_v18 = vrot.slane %v14662_v20, 7  ;;  %v9398_v58 = vrot.slane %v14666_v14, 6 }
 0x170   : > { %v12322_v13 = vld.sshfl [vmem:[%s12821_s14 + $0x4e] sm:$0x1 pattern:$0x75316420]  ;;  %v8825_v55 = vrot.slane %v12321_v16, %v12823_v11  ;;  %v14685_v12 = vunpack.c.l.b16 %v8797_v6  ;;  %v9400_v24 = vrot.slane %v14668_v45, 5  ;;  %v9395_v43 = vsel %vm1402_vm1, %v14660_v39, %v9394_v56 }
 0x171   : > { %v12323_v46 = vld.sshfl [vmem:[%s12821_s14 + $0x4f] sm:$0x1 pattern:$0x75316420]  ;;  %v8839_v34 = vrot.slane %v12322_v13, %v12823_v11  ;;  %v14691_v52 = vunpack.c.l.b16 %v8811_v42  ;;  %v9402_v33 = vrot.slane %v14670_v41, 4  ;;  %v9404_v17 = vrot.slane %v14675_v37, 3 }
 0x172   : > { %v8853_v7 = vrot.slane %v12323_v46, %v12823_v11  ;;  %v14693_v36 = vunpack.c.l.b16 %v8825_v55  ;;  %v11792_v49 = vld.sshfl [vmem:[%s12821_s14 + $0x51] sm:$0x1 pattern:$0x75316420]  ;;  %v9397_v23 = vsel %vm1405_vm2, %v9396_v18, %v9395_v43  ;;  %v9406_v53 = vrot.slane %v14677_v21, 2 }
 0x173   : > { %v14695_v8 = vunpack.c.l.b16 %v8839_v34  ;;  %v11793_v61 = vld.sshfl [vmem:[%s12821_s14 + $0x52] sm:$0x1 pattern:$0x75316420]  ;;  %v9408_v63 = vrot.slane %v9326_v59, 1  ;;  %v9410_v50 = vrot.slane %v14683_v22, 7  ;;  %v9399_v10 = vsel %vm1408_vm3, %v9398_v58, %v9397_v23 }
 0x174   : > { %v14701_v35 = vunpack.c.l.b16 %v8853_v7  ;;  %v9412_v38 = vrot.slane %v14685_v12, 6  ;;  %v9414_v32 = vrot.slane %v14691_v52, 5  ;;  %v9416_v48 = vrot.slane %v14693_v36, 4 }
 0x175   : > { %v9401_v19 = vsel %vm1411_vm4, %v9400_v24, %v9399_v10  ;;  %v9409_v15 = vsel %vm1402_vm1, %v14681_v26, %v9408_v63  ;;  %v9418_v27 = vrot.slane %v14695_v8, 3  ;;  %v11794_v44 = vld.sshfl [vmem:[%s12821_s14 + $0x53] sm:$0x1 pattern:$0x75316420]  ;;  %v10790_v54 = vsel %vm1537_vm0, %v14297_v25, 0 }
 0x176   : > { %v9420_v40 = vrot.slane %v14701_v35, 2  ;;  %v9403_v1 = vsel %vm1414_vm5, %v9402_v33, %v9401_v19  ;;  %v9411_v9 = vsel %vm1405_vm2, %v9410_v50, %v9409_v15  ;;  %v11795_v4 = vld.sshfl [vmem:[%s12821_s14 + $0x54] sm:$0x1 pattern:$0x75316420]  ;;  %v3689_v0 = vrot.slane %v11792_v49, %v12823_v11 }
 0x177   : > { %v9405_v47 = vsel %vm1417_vm6, %v9404_v17, %v9403_v1  ;;  %v9413_v2 = vsel %vm1408_vm3, %v9412_v38, %v9411_v9  ;;  %v11796_v5 = vld.sshfl [vmem:[%s12821_s14 + $0x55] sm:$0x1 pattern:$0x75316420]  ;;  %v3703_v28 = vrot.slane %v11793_v61, %v12823_v11  ;;  %v3717_v30 = vrot.slane %v11794_v44, %v12823_v11  ;;  %v10919_v35 = vld [vmem:[%s15078_s11 + $0x2c] sm:$0x1] }
 0x178   : > { %v9407_v25 = vsel %vm1420_vm7, %v9406_v53, %v9405_v47  ;;  %v9415_v31 = vsel %vm1411_vm4, %v9414_v32, %v9413_v2  ;;  %v11797_v3 = vld.sshfl [vmem:[%s12821_s14 + $0x56] sm:$0x1 pattern:$0x75316420]  ;;  %v3731_v62 = vrot.slane %v11795_v4, %v12823_v11  ;;  %v3745_v60 = vrot.slane %v11796_v5, %v12823_v11 }
 0x179   : > { %v9417_v57 = vsel %vm1414_vm5, %v9416_v48, %v9415_v31  ;;  %v11798_v29 = vld.sshfl [vmem:[%s12821_s14 + $0x57] sm:$0x1 pattern:$0x75316420]  ;;  %v3759_v6 = vrot.slane %v11797_v3, %v12823_v11  ;;  %v4156_v16 = vunpack.c.l.b16 %v3689_v0  ;;  %v4157_v42 = vunpack.c.l.b16 %v3703_v28 }
 0x17a   : > { %v9419_v13 = vsel %vm1417_vm6, %v9418_v27, %v9417_v57  ;;  %v11799_v55 = vld.sshfl [vmem:[%s12821_s14 + $0x58] sm:$0x1 pattern:$0x75316420]  ;;  %v3773_v59 = vrot.slane %v11798_v29, %v12823_v11  ;;  %v4158_v46 = vunpack.c.l.b16 %v3717_v30  ;;  %v4159_v34 = vunpack.c.l.b16 %v3731_v62 }
 0x17b   : > { %v9421_v51 = vsel %vm1420_vm7, %v9420_v40, %v9419_v13  ;;  %v11800_v7 = vld.sshfl [vmem:[%s12821_s14 + $0x63] sm:$0x1 pattern:$0x75316420]  ;;  %v3787_v56 = vrot.slane %v11799_v55, %v12823_v11  ;;  %v4160_v49 = vunpack.c.l.b16 %v3745_v60  ;;  %v4161_v43 = vunpack.c.l.b16 %v3759_v6 }
 0x17c   : > { %v9479_v61 = vpack.c.b16 %v9421_v51, %v9407_v25  ;;  %v11801_v23 = vld.sshfl [vmem:[%s12821_s14 + $0x64] sm:$0x1 pattern:$0x75316420]  ;;  %v3801_v63 = vrot.slane %v11800_v7, %v12823_v11  ;;  %v4162_v10 = vunpack.c.l.b16 %v3773_v59  ;;  %v4244_v19 = vrot.slane %v4157_v42, 7 }
 0x17d   : > { %v11802_v15 = vld.sshfl [vmem:[%s12821_s14 + $0x65] sm:$0x1 pattern:$0x75316420]  ;;  %v3815_v44 = vrot.slane %v11801_v23, %v12823_v11  ;;  %v4163_v1 = vunpack.c.l.b16 %v3787_v56  ;;  %v4246_v9 = vrot.slane %v4158_v46, 6  ;;  %v4248_v4 = vrot.slane %v4159_v34, 5 }
 0x17e   : > { %12628 = vmatmul.mubr.msk.bf16.vlgmr.msra.gmra.mrb[0].mxu0 %vm1524_vm8, %v9479_v61  ;;  %v11803_v0 = vld.sshfl [vmem:[%s12821_s14 + $0x66] sm:$0x1 pattern:$0x75316420]  ;;  %v3829_v47 = vrot.slane %v11802_v15, %v12823_v11  ;;  %v4164_v2 = vunpack.c.l.b16 %v3801_v63  ;;  %v4245_v5 = vsel %vm1402_vm1, %v4244_v19, %v4156_v16  ;;  %v4250_v28 = vrot.slane %v4160_v49, 4 }
 0x17f   : > { %12636 = vmatpush3.bf16.msra.mxu0 %v10790_v54  ;;  %v11804_v30 = vld.sshfl [vmem:[%s12821_s14 + $0x67] sm:$0x1 pattern:$0x75316420]  ;;  %v3843_v25 = vrot.slane %v11803_v0, %v12823_v11  ;;  %v4165_v31 = vunpack.c.l.b16 %v3815_v44  ;;  %v4247_v3 = vsel %vm1405_vm2, %v4246_v9, %v4245_v5  ;;  %v4252_v62 = vrot.slane %v4161_v43, 3 }
 0x180   : > { %v11805_v60 = vld.sshfl [vmem:[%s12821_s14 + $0x68] sm:$0x1 pattern:$0x75316420]  ;;  %v3857_v57 = vrot.slane %v11804_v30, %v12823_v11  ;;  %v4166_v29 = vunpack.c.l.b16 %v3829_v47  ;;  %v4249_v6 = vsel %vm1408_vm3, %v4248_v4, %v4247_v3  ;;  %v4254_v42 = vrot.slane %v4162_v10, 2 }
 0x181   : > { %v11806_v13 = vld.sshfl [vmem:[%s12821_s14 + $0x69] sm:$0x1 pattern:$0x75316420]  ;;  %v3871_v16 = vrot.slane %v11805_v60, %v12823_v11  ;;  %v4167_v54 = vunpack.c.l.b16 %v3843_v25  ;;  %v4251_v55 = vsel %vm1411_vm4, %v4250_v28, %v4249_v6  ;;  %v4256_v59 = vrot.slane %v4163_v1, 1 }
 0x182   : > { %v11807_v46 = vld.sshfl [vmem:[%s12821_s14 + $0x6a] sm:$0x1 pattern:$0x75316420]  ;;  %v3885_v34 = vrot.slane %v11806_v13, %v12823_v11  ;;  %v4168_v51 = vunpack.c.l.b16 %v3857_v57  ;;  %v4253_v7 = vsel %vm1414_vm5, %v4252_v62, %v4251_v55  ;;  %v4258_v56 = vrot.slane %v4165_v31, 7 }
 0x183   : > { %v3899_v49 = vrot.slane %v11807_v46, %v12823_v11  ;;  %v4169_v43 = vunpack.c.l.b16 %v3871_v16  ;;  %v4255_v61 = vsel %vm1417_vm6, %v4254_v42, %v4253_v7  ;;  %v4260_v23 = vrot.slane %v4166_v29, 6  ;;  %v12324_v63 = vld.sshfl [vmem:[%s12821_s14 + $0x5a] sm:$0x1 pattern:$0x75316420] }
 0x184   : > { %v4170_v10 = vunpack.c.l.b16 %v3885_v34  ;;  %v4257_v19 = vsel %vm1420_vm7, %v4256_v59, %v4255_v61  ;;  %v4259_v15 = vsel %vm1402_vm1, %v4258_v56, %v4164_v2  ;;  %v4262_v44 = vrot.slane %v4167_v54, 5  ;;  %v12325_v1 = vld.sshfl [vmem:[%s12821_s14 + $0x5b] sm:$0x1 pattern:$0x75316420] }
 0x185   : > { %v4171_v9 = vunpack.c.l.b16 %v3899_v49  ;;  %v4261_v4 = vsel %vm1405_vm2, %v4260_v23, %v4259_v15  ;;  %v4264_v0 = vrot.slane %v4168_v51, 4  ;;  %v4266_v47 = vrot.slane %v4169_v43, 3  ;;  %v12326_v5 = vld.sshfl [vmem:[%s12821_s14 + $0x5c] sm:$0x1 pattern:$0x75316420] }
 0x186   : > { %v4263_v28 = vsel %vm1408_vm3, %v4262_v44, %v4261_v4  ;;  %v4268_v30 = vrot.slane %v4170_v10, 2  ;;  %v12327_v25 = vld.sshfl [vmem:[%s12821_s14 + $0x5d] sm:$0x1 pattern:$0x75316420]  ;;  %v8867_v31 = vrot.slane %v12324_v63, %v12823_v11  ;;  %v8881_v3 = vrot.slane %v12325_v1, %v12823_v11 }
 0x187   : > { %v4265_v2 = vsel %vm1411_vm4, %v4264_v0, %v4263_v28  ;;  %v4270_v62 = vrot.slane %v4171_v9, 1  ;;  %v12328_v60 = vld.sshfl [vmem:[%s12821_s14 + $0x5e] sm:$0x1 pattern:$0x75316420]  ;;  %v8895_v57 = vrot.slane %v12326_v5, %v12823_v11  ;;  %v8909_v29 = vrot.slane %v12327_v25, %v12823_v11 }
 0x188   : > { %v4267_v6 = vsel %vm1414_vm5, %v4266_v47, %v4265_v2  ;;  %v12329_v42 = vld.sshfl [vmem:[%s12821_s14 + $0x5f] sm:$0x1 pattern:$0x75316420]  ;;  %v8923_v13 = vrot.slane %v12328_v60, %v12823_v11  ;;  %v9334_v16 = vunpack.c.l.b16 %v8867_v31  ;;  %v9335_v54 = vunpack.c.l.b16 %v8881_v3 }
 0x189   : > { %v4269_v55 = vsel %vm1417_vm6, %v4268_v30, %v4267_v6  ;;  %v12330_v59 = vld.sshfl [vmem:[%s12821_s14 + $0x60] sm:$0x1 pattern:$0x75316420]  ;;  %v8937_v46 = vrot.slane %v12329_v42, %v12823_v11  ;;  %v9336_v34 = vunpack.c.l.b16 %v8895_v57  ;;  %v9337_v51 = vunpack.c.l.b16 %v8909_v29 }
 0x18a   : > { %v4271_v7 = vsel %vm1420_vm7, %v4270_v62, %v4269_v55  ;;  %v12331_v56 = vld.sshfl [vmem:[%s12821_s14 + $0x61] sm:$0x1 pattern:$0x75316420]  ;;  %v8951_v49 = vrot.slane %v12330_v59, %v12823_v11  ;;  %v9338_v43 = vunpack.c.l.b16 %v8923_v13  ;;  %v9422_v61 = vrot.slane %v9334_v16, 1 }
 0x18b   : > { %v4302_v23 = vpack.c.b16 %v4271_v7, %v4257_v19  ;;  %v12332_v63 = vld.sshfl [vmem:[%s12821_s14 + $0x6c] sm:$0x1 pattern:$0x75316420]  ;;  %v8965_v10 = vrot.slane %v12331_v56, %v12823_v11  ;;  %v9339_v15 = vunpack.c.l.b16 %v8937_v46  ;;  %v9424_v44 = vrot.slane %v9336_v34, 7 }
 0x18c   : > { %v12333_v1 = vld.sshfl [vmem:[%s12821_s14 + $0x6d] sm:$0x1 pattern:$0x75316420]  ;;  %v8979_v9 = vrot.slane %v12332_v63, %v12823_v11  ;;  %v9340_v4 = vunpack.c.l.b16 %v8951_v49  ;;  %v9423_v0 = vsel %vm1402_vm1, %v9335_v54, %v9422_v61  ;;  %v9426_v47 = vrot.slane %v9337_v51, 6 }
 0x18d   : > { %12591 = vmatprep.mubr.msk.bf16.mxu1 %vm1524_vm8, %v4302_v23  ;;  %v12334_v5 = vld.sshfl [vmem:[%s12821_s14 + $0x6e] sm:$0x1 pattern:$0x75316420]  ;;  %v8993_v19 = vrot.slane %v12333_v1, %v12823_v11  ;;  %v9341_v28 = vunpack.c.l.b16 %v8965_v10  ;;  %v9425_v30 = vsel %vm1405_vm2, %v9424_v44, %v9423_v0  ;;  %v9428_v25 = vrot.slane %v9338_v43, 5 }
 0x18e   : > { %v12335_v31 = vld.sshfl [vmem:[%s12821_s14 + $0x6f] sm:$0x1 pattern:$0x75316420]  ;;  %v9007_v3 = vrot.slane %v12334_v5, %v12823_v11  ;;  %v9342_v2 = vunpack.c.l.b16 %v8979_v9  ;;  %v9427_v62 = vsel %vm1408_vm3, %v9426_v47, %v9425_v30  ;;  %v9430_v60 = vrot.slane %v9339_v15, 4 }
 0x18f   : > { %v12336_v57 = vld.sshfl [vmem:[%s12821_s14 + $0x70] sm:$0x1 pattern:$0x75316420]  ;;  %v9021_v29 = vrot.slane %v12335_v31, %v12823_v11  ;;  %v9343_v6 = vunpack.c.l.b16 %v8993_v19  ;;  %v9429_v42 = vsel %vm1411_vm4, %v9428_v25, %v9427_v62  ;;  %v9432_v13 = vrot.slane %v9340_v4, 3 }
 0x190   : > { %v12337_v16 = vld.sshfl [vmem:[%s12821_s14 + $0x71] sm:$0x1 pattern:$0x75316420]  ;;  %v9035_v54 = vrot.slane %v12336_v57, %v12823_v11  ;;  %v9344_v55 = vunpack.c.l.b16 %v9007_v3  ;;  %v9431_v59 = vsel %vm1414_vm5, %v9430_v60, %v9429_v42  ;;  %v9434_v46 = vrot.slane %v9341_v28, 2 }
 0x191   : > { %v12338_v34 = vld.sshfl [vmem:[%s12821_s14 + $0x72] sm:$0x1 pattern:$0x75316420]  ;;  %v9049_v51 = vrot.slane %v12337_v16, %v12823_v11  ;;  %v9345_v7 = vunpack.c.l.b16 %v9021_v29  ;;  %v9433_v56 = vsel %vm1417_vm6, %v9432_v13, %v9431_v59  ;;  %v9436_v49 = vrot.slane %v9342_v2, 1 }
 0x192   : > { %v12339_v43 = vld.sshfl [vmem:[%s12821_s14 + $0x73] sm:$0x1 pattern:$0x75316420]  ;;  %v9063_v61 = vrot.slane %v12338_v34, %v12823_v11  ;;  %v9346_v23 = vunpack.c.l.b16 %v9035_v54  ;;  %v9435_v63 = vsel %vm1420_vm7, %v9434_v46, %v9433_v56  ;;  %v9438_v10 = vrot.slane %v9344_v55, 7 }
 0x193   : > { %v9077_v15 = vrot.slane %v12339_v43, %v12823_v11  ;;  %v9347_v44 = vunpack.c.l.b16 %v9049_v51  ;;  %v9437_v1 = vsel %vm1402_vm1, %v9343_v6, %v9436_v49  ;;  %v9440_v9 = vrot.slane %v9345_v7, 6  ;;  %v11808_v4 = vld.sshfl [vmem:[%s12821_s14 + $0x75] sm:$0x1 pattern:$0x75316420] }
 0x194   : > { %v9348_v0 = vunpack.c.l.b16 %v9063_v61  ;;  %v9439_v47 = vsel %vm1405_vm2, %v9438_v10, %v9437_v1  ;;  %v9442_v5 = vrot.slane %v9346_v23, 5  ;;  %v11809_v19 = vld.sshfl [vmem:[%s12821_s14 + $0x76] sm:$0x1 pattern:$0x75316420]  ;;  %v3913_v28 = vrot.slane %v11808_v4, %v12823_v11 }
 0x195   : > { %v9349_v30 = vunpack.c.l.b16 %v9077_v15  ;;  %v9441_v25 = vsel %vm1408_vm3, %v9440_v9, %v9439_v47  ;;  %v9444_v31 = vrot.slane %v9347_v44, 4  ;;  %v11810_v3 = vld.sshfl [vmem:[%s12821_s14 + $0x77] sm:$0x1 pattern:$0x75316420]  ;;  %v3927_v2 = vrot.slane %v11809_v19, %v12823_v11 }
 0x196   : > { %v9443_v62 = vsel %vm1411_vm4, %v9442_v5, %v9441_v25  ;;  %v9446_v60 = vrot.slane %v9348_v0, 3  ;;  %v11811_v57 = vld.sshfl [vmem:[%s12821_s14 + $0x78] sm:$0x1 pattern:$0x75316420]  ;;  %v3941_v29 = vrot.slane %v11810_v3, %v12823_v11  ;;  %v4172_v6 = vunpack.c.l.b16 %v3913_v28 }
 0x197   : > { %v9445_v42 = vsel %vm1414_vm5, %v9444_v31, %v9443_v62  ;;  %v9448_v13 = vrot.slane %v9349_v30, 2  ;;  %v11812_v16 = vld.sshfl [vmem:[%s12821_s14 + $0x79] sm:$0x1 pattern:$0x75316420]  ;;  %v3955_v54 = vrot.slane %v11811_v57, %v12823_v11  ;;  %v4173_v55 = vunpack.c.l.b16 %v3927_v2 }
 0x198   : > { %v9447_v59 = vsel %vm1417_vm6, %v9446_v60, %v9445_v42  ;;  %v11813_v46 = vld.sshfl [vmem:[%s12821_s14 + $0x7a] sm:$0x1 pattern:$0x75316420]  ;;  %v3969_v34 = vrot.slane %v11812_v16, %v12823_v11  ;;  %v4174_v51 = vunpack.c.l.b16 %v3941_v29  ;;  %v10690_v7 = vsel %vm1402_vm1, %v9396_v18, %v14660_v39 }
 0x199   : > { %v9449_v56 = vsel %vm1420_vm7, %v9448_v13, %v9447_v59  ;;  %v11814_v49 = vld.sshfl [vmem:[%s12821_s14 + $0x7b] sm:$0x1 pattern:$0x75316420]  ;;  %v3983_v43 = vrot.slane %v11813_v46, %v12823_v11  ;;  %v4175_v61 = vunpack.c.l.b16 %v3955_v54  ;;  %v4272_v23 = vrot.slane %v4173_v55, 7 }
 0x19a   : > { %v9480_v10 = vpack.c.b16 %v9449_v56, %v9435_v63  ;;  %v11815_v15 = vld.sshfl [vmem:[%s12821_s14 + $0x7c] sm:$0x1 pattern:$0x75316420]  ;;  %v3997_v44 = vrot.slane %v11814_v49, %v12823_v11  ;;  %v4176_v1 = vunpack.c.l.b16 %v3969_v34  ;;  %v4274_v9 = vrot.slane %v4174_v51, 6 }
 0x19b   : > { %v11816_v4 = vld.sshfl [vmem:[%s12821_s14 + $0x87] sm:$0x1 pattern:$0x75316420]  ;;  %v4011_v20 = vrot.slane %v11815_v15, %v12823_v11  ;;  %v4177_v39 = vunpack.c.l.b16 %v3983_v43  ;;  %v4273_v18 = vsel %vm1402_vm1, %v4272_v23, %v4172_v6  ;;  %v4276_v0 = vrot.slane %v4175_v61, 5 }
 0x19c   : > { %12631 = vmatprep.mubr.msk.bf16.mxu0 %vm1524_vm8, %v9480_v10  ;;  %v11817_v47 = vld.sshfl [vmem:[%s12821_s14 + $0x88] sm:$0x1 pattern:$0x75316420]  ;;  %v4025_v63 = vrot.slane %v11816_v4, %v12823_v11  ;;  %v4178_v5 = vunpack.c.l.b16 %v3997_v44  ;;  %v4275_v19 = vsel %vm1405_vm2, %v4274_v9, %v4273_v18  ;;  %v4278_v28 = vrot.slane %v4176_v1, 4 }
 0x19d   : > { %v11818_v30 = vld.sshfl [vmem:[%s12821_s14 + $0x89] sm:$0x1 pattern:$0x75316420]  ;;  %v4039_v25 = vrot.slane %v11817_v47, %v12823_v11  ;;  %v4179_v31 = vunpack.c.l.b16 %v4011_v20  ;;  %v4277_v3 = vsel %vm1408_vm3, %v4276_v0, %v4275_v19  ;;  %v4280_v2 = vrot.slane %v4177_v39, 3 }
 0x19e   : > { %v11819_v62 = vld.sshfl [vmem:[%s12821_s14 + $0x8a] sm:$0x1 pattern:$0x75316420]  ;;  %v4053_v60 = vrot.slane %v11818_v30, %v12823_v11  ;;  %v4180_v57 = vunpack.c.l.b16 %v4025_v63  ;;  %v4279_v29 = vsel %vm1411_vm4, %v4278_v28, %v4277_v3  ;;  %v4282_v6 = vrot.slane %v4178_v5, 2 }
 0x19f   : > { %v11820_v42 = vld.sshfl [vmem:[%s12821_s14 + $0x8b] sm:$0x1 pattern:$0x75316420]  ;;  %v4067_v13 = vrot.slane %v11819_v62, %v12823_v11  ;;  %v4181_v16 = vunpack.c.l.b16 %v4039_v25  ;;  %v4281_v54 = vsel %vm1414_vm5, %v4280_v2, %v4279_v29  ;;  %v4284_v55 = vrot.slane %v4179_v31, 1 }
 0x1a0   : > { %v11821_v59 = vld.sshfl [vmem:[%s12821_s14 + $0x8c] sm:$0x1 pattern:$0x75316420]  ;;  %v4081_v46 = vrot.slane %v11820_v42, %v12823_v11  ;;  %v4182_v34 = vunpack.c.l.b16 %v4053_v60  ;;  %v4283_v51 = vsel %vm1417_vm6, %v4282_v6, %v4281_v54  ;;  %v10692_v56 = vsel %vm1405_vm2, %v9398_v58, %v10690_v7 }
 0x1a1   : > { %v11822_v49 = vld.sshfl [vmem:[%s12821_s14 + $0x8d] sm:$0x1 pattern:$0x75316420]  ;;  %v4095_v43 = vrot.slane %v11821_v59, %v12823_v11  ;;  %v4183_v61 = vunpack.c.l.b16 %v4067_v13  ;;  %v4285_v23 = vsel %vm1420_vm7, %v4284_v55, %v4283_v51  ;;  %v4286_v10 = vrot.slane %v4181_v16, 7 }
 0x1a2   : > { %v11823_v15 = vld.sshfl [vmem:[%s12821_s14 + $0x8e] sm:$0x1 pattern:$0x75316420]  ;;  %v4109_v44 = vrot.slane %v11822_v49, %v12823_v11  ;;  %v4184_v1 = vunpack.c.l.b16 %v4081_v46  ;;  %v4288_v9 = vrot.slane %v4182_v34, 6  ;;  %v10694_v14 = vsel %vm1408_vm3, %v9400_v24, %v10692_v56 }
 0x1a3   : > { %v4123_v58 = vrot.slane %v11823_v15, %v12823_v11  ;;  %v4185_v7 = vunpack.c.l.b16 %v4095_v43  ;;  %v4287_v4 = vsel %vm1402_vm1, %v4286_v10, %v4180_v57  ;;  %v4290_v20 = vrot.slane %v4183_v61, 5  ;;  %v12340_v39 = vld.sshfl [vmem:[%s12821_s14 + $0x7e] sm:$0x1 pattern:$0x75316420] }
 0x1a4   : > { %v4186_v18 = vunpack.c.l.b16 %v4109_v44  ;;  %v4289_v0 = vsel %vm1405_vm2, %v4288_v9, %v4287_v4  ;;  %v4292_v47 = vrot.slane %v4184_v1, 4  ;;  %v12341_v63 = vld.sshfl [vmem:[%s12821_s14 + $0x7f] sm:$0x1 pattern:$0x75316420]  ;;  %v9091_v5 = vrot.slane %v12340_v39, %v12823_v11 }
 0x1a5   : > { %v4187_v19 = vunpack.c.l.b16 %v4123_v58  ;;  %v4291_v45 = vsel %vm1408_vm3, %v4290_v20, %v4289_v0  ;;  %v4294_v24 = vrot.slane %v4185_v7, 3  ;;  %v12342_v28 = vld.sshfl [vmem:[%s12821_s14 + $0x80] sm:$0x1 pattern:$0x75316420]  ;;  %v9105_v30 = vrot.slane %v12341_v63, %v12823_v11 }
 0x1a6   : > { %v4293_v25 = vsel %vm1411_vm4, %v4292_v47, %v4291_v45  ;;  %v4296_v31 = vrot.slane %v4186_v18, 2  ;;  %v12343_v3 = vld.sshfl [vmem:[%s12821_s14 + $0x81] sm:$0x1 pattern:$0x75316420]  ;;  %v9119_v2 = vrot.slane %v12342_v28, %v12823_v11  ;;  %v9350_v62 = vunpack.c.l.b16 %v9091_v5 }
 0x1a7   : > { %v4295_v60 = vsel %vm1414_vm5, %v4294_v24, %v4293_v25  ;;  %v4298_v57 = vrot.slane %v4187_v19, 1  ;;  %v12344_v29 = vld.sshfl [vmem:[%s12821_s14 + $0x82] sm:$0x1 pattern:$0x75316420]  ;;  %v9133_v6 = vrot.slane %v12343_v3, %v12823_v11  ;;  %v14911_v42 = vunpack.c.l.b16 %v9105_v30 }
 0x1a8   : > { %v4297_v13 = vsel %vm1417_vm6, %v4296_v31, %v4295_v60  ;;  %v12345_v16 = vld.sshfl [vmem:[%s12821_s14 + $0x83] sm:$0x1 pattern:$0x75316420]  ;;  %v9147_v54 = vrot.slane %v12344_v29, %v12823_v11  ;;  %v14916_v55 = vunpack.c.l.b16 %v9119_v2  ;;  %v9450_v59 = vrot.slane %v9350_v62, 1 }
 0x1a9   : > { %v4299_v46 = vsel %vm1420_vm7, %v4298_v57, %v4297_v13  ;;  %v12346_v34 = vld.sshfl [vmem:[%s12821_s14 + $0x84] sm:$0x1 pattern:$0x75316420]  ;;  %v9161_v51 = vrot.slane %v12345_v16, %v12823_v11  ;;  %v14921_v56 = vunpack.c.l.b16 %v9133_v6  ;;  %v10696_v49 = vsel %vm1411_vm4, %v9402_v33, %v10694_v14 }
 0x1aa   : > { %v4303_v43 = vpack.c.b16 %v4299_v46, %v4285_v23  ;;  %v12347_v61 = vld.sshfl [vmem:[%s12821_s14 + $0x85] sm:$0x1 pattern:$0x75316420]  ;;  %v9175_v10 = vrot.slane %v12346_v34, %v12823_v11  ;;  %v14928_v15 = vunpack.c.l.b16 %v9147_v54  ;;  %v9451_v44 = vsel %vm1402_vm1, %v14911_v42, %v9450_v59 }
 0x1ab   : > { %v12348_v1 = vld.sshfl [vmem:[%s12821_s14 + $0x90] sm:$0x1 pattern:$0x75316420]  ;;  %v9189_v9 = vrot.slane %v12347_v61, %v12823_v11  ;;  %v14934_v58 = vunpack.c.l.b16 %v9161_v51  ;;  %v9452_v41 = vrot.slane %v14916_v55, 7  ;;  %v9454_v33 = vrot.slane %v14921_v56, 6 }
 0x1ac   : > { %12592 = vmatmul.mubr.msk.bf16.gmra.mrb[4].mxu1 %vm1524_vm8, %v4303_v43  ;;  %v12349_v23 = vld.sshfl [vmem:[%s12821_s14 + $0x91] sm:$0x1 pattern:$0x75316420]  ;;  %v9203_v14 = vrot.slane %v12348_v1, %v12823_v11  ;;  %v14941_v7 = vunpack.c.l.b16 %v9175_v10  ;;  %v9456_v4 = vrot.slane %v14928_v15, 5  ;;  %v10698_v20 = vsel %vm1414_vm5, %v9404_v17, %v10696_v49 }
 0x1ad   : > { %v12350_v39 = vld.sshfl [vmem:[%s12821_s14 + $0x92] sm:$0x1 pattern:$0x75316420]  ;;  %v9217_v18 = vrot.slane %v12349_v23, %v12823_v11  ;;  %v14949_v0 = vunpack.c.l.b16 %v9189_v9  ;;  %v9453_v47 = vsel %vm1405_vm2, %v9452_v41, %v9451_v44  ;;  %v9458_v63 = vrot.slane %v14934_v58, 4 }
 0x1ae   : > { %v12351_v5 = vld.sshfl [vmem:[%s12821_s14 + $0x93] sm:$0x1 pattern:$0x75316420]  ;;  %v9231_v19 = vrot.slane %v12350_v39, %v12823_v11  ;;  %v9358_v45 = vunpack.c.l.b16 %v9203_v14  ;;  %v9455_v37 = vsel %vm1408_vm3, %v9454_v33, %v9453_v47  ;;  %v9460_v17 = vrot.slane %v14941_v7, 3 }
 0x1af   : > { %v12352_v24 = vld.sshfl [vmem:[%s12821_s14 + $0x94] sm:$0x1 pattern:$0x75316420]  ;;  %v9245_v28 = vrot.slane %v12351_v5, %v12823_v11  ;;  %v14963_v30 = vunpack.c.l.b16 %v9217_v18  ;;  %v9457_v25 = vsel %vm1411_vm4, %v9456_v4, %v9455_v37  ;;  %v9462_v31 = vrot.slane %v14949_v0, 2 }
 0x1b0   : > { %v12353_v3 = vld.sshfl [vmem:[%s12821_s14 + $0x95] sm:$0x1 pattern:$0x75316420]  ;;  %v9259_v2 = vrot.slane %v12352_v24, %v12823_v11  ;;  %v14971_v62 = vunpack.c.l.b16 %v9231_v19  ;;  %v9459_v60 = vsel %vm1414_vm5, %v9458_v63, %v9457_v25  ;;  %v9464_v57 = vrot.slane %v9358_v45, 1 }
 0x1b1   : > { %v12354_v29 = vld.sshfl [vmem:[%s12821_s14 + $0x96] sm:$0x1 pattern:$0x75316420]  ;;  %v9273_v6 = vrot.slane %v12353_v3, %v12823_v11  ;;  %v14978_v13 = vunpack.c.l.b16 %v9245_v28  ;;  %v9461_v16 = vsel %vm1417_vm6, %v9460_v17, %v9459_v60  ;;  %v14986_v54 = vsel %vm1417_vm6, %v9406_v53, %v10698_v20  ;;  %v10945_v0 = vld [vmem:[%s15078_s11 + $0xa0] sm:$0x1] }
 0x1b2   : > { %v12355_v59 = vld.sshfl [vmem:[%s12821_s14 + $0x97] sm:$0x1 pattern:$0x75316420]  ;;  %v9287_v46 = vrot.slane %v12354_v29, %v12823_v11  ;;  %v14990_v34 = vunpack.c.l.b16 %v9259_v2  ;;  %v9463_v51 = vsel %vm1420_vm7, %v9462_v31, %v9461_v16  ;;  %v9465_v49 = vsel %vm1402_vm1, %v14963_v30, %v9464_v57 }
 0x1b3   : > { %v9301_v43 = vrot.slane %v12355_v59, %v12823_v11  ;;  %v14998_v61 = vunpack.c.l.b16 %v9273_v6  ;;  %v9466_v21 = vrot.slane %v14971_v62, 7  ;;  %v9468_v53 = vrot.slane %v14978_v13, 6  ;;  %v12425_v10 = vld.sshfl [vmem:[%s12821_s14 + $0x13] sm:$0x1 pattern:$0x75316420] }
 0x1b4   : > { %v15003_v44 = vunpack.c.l.b16 %v9287_v46  ;;  %v9470_v1 = vrot.slane %v14990_v34, 5  ;;  %v12426_v9 = vld.sshfl [vmem:[%s12821_s14 + $0x14] sm:$0x1 pattern:$0x75316420]  ;;  %v9714_v23 = vrot.slane %v12425_v10, %v12823_v11  ;;  %v10704_v14 = vsel %vm1402_vm1, %v9410_v50, %v14681_v26 }
 0x1b5   : > { %v15012_v20 = vunpack.c.l.b16 %v9301_v43  ;;  %v9467_v39 = vsel %vm1405_vm2, %v9466_v21, %v9465_v49  ;;  %v9472_v18 = vrot.slane %v14998_v61, 4  ;;  %v12427_v47 = vld.sshfl [vmem:[%s12821_s14 + $0x15] sm:$0x1 pattern:$0x75316420]  ;;  %v9728_v5 = vrot.slane %v12426_v9, %v12823_v11 }
 0x1b6   : > { %v9469_v19 = vsel %vm1408_vm3, %v9468_v53, %v9467_v39  ;;  %v9474_v22 = vrot.slane %v15003_v44, 3  ;;  %v12428_v26 = vld.sshfl [vmem:[%s12821_s14 + $0x16] sm:$0x1 pattern:$0x75316420]  ;;  %v9742_v50 = vrot.slane %v12427_v47, %v12823_v11  ;;  %v10597_v45 = vunpack.c.l.b16 %v9714_v23 }
 0x1b7   : > { %v9471_v37 = vsel %vm1411_vm4, %v9470_v1, %v9469_v19  ;;  %v9476_v24 = vrot.slane %v15012_v20, 2  ;;  %v12429_v28 = vld.sshfl [vmem:[%s12821_s14 + $0x17] sm:$0x1 pattern:$0x75316420]  ;;  %v9756_v25 = vrot.slane %v12428_v26, %v12823_v11  ;;  %v10598_v3 = vunpack.c.l.b16 %v9728_v5 }
 0x1b8   : > { %v9473_v2 = vsel %vm1414_vm5, %v9472_v18, %v9471_v37  ;;  %v12430_v60 = vld.sshfl [vmem:[%s12821_s14 + $0x18] sm:$0x1 pattern:$0x75316420]  ;;  %v9770_v57 = vrot.slane %v12429_v28, %v12823_v11  ;;  %v10599_v29 = vunpack.c.l.b16 %v9742_v50  ;;  %v10706_v6 = vsel %vm1405_vm2, %v9412_v38, %v10704_v14  ;;  %v10944_v62 = vld [vmem:[%s15078_s11 + $0x8e] sm:$0x1] }
 0x1b9   : > { %v9475_v16 = vsel %vm1417_vm6, %v9474_v22, %v9473_v2  ;;  %v12431_v59 = vld.sshfl [vmem:[%s12821_s14 + $0x19] sm:$0x1 pattern:$0x75316420]  ;;  %v9784_v46 = vrot.slane %v12430_v60, %v12823_v11  ;;  %v10600_v49 = vunpack.c.l.b16 %v9756_v25  ;;  %v10661_v43 = vrot.slane %v10598_v3, 7 }
 0x1ba   : > { %v9477_v10 = vsel %vm1420_vm7, %v9476_v24, %v9475_v16  ;;  %v12432_v9 = vld.sshfl [vmem:[%s12821_s14 + $0x1a] sm:$0x1 pattern:$0x75316420]  ;;  %v9798_v12 = vrot.slane %v12431_v59, %v12823_v11  ;;  %v10601_v23 = vunpack.c.l.b16 %v9770_v57  ;;  %v10663_v38 = vrot.slane %v10599_v29, 6 }
 0x1bb   : > { %v9481_v14 = vpack.c.b16 %v9477_v10, %v9463_v51  ;;  %v12433_v39 = vld.sshfl [vmem:[%s12821_s14 + $0x25] sm:$0x1 pattern:$0x75316420]  ;;  %v9812_v47 = vrot.slane %v12432_v9, %v12823_v11  ;;  %v10602_v5 = vunpack.c.l.b16 %v9784_v46  ;;  %v10662_v19 = vsel %vm1402_vm1, %v10661_v43, %v10597_v45 }
 0x1bc   : > { %v12434_v26 = vld.sshfl [vmem:[%s12821_s14 + $0x26] sm:$0x1 pattern:$0x75316420]  ;;  %v9826_v50 = vrot.slane %v12433_v39, %v12823_v11  ;;  %v10603_v37 = vunpack.c.l.b16 %v9798_v12  ;;  %v10664_v28 = vsel %vm1405_vm2, %v10663_v38, %v10662_v19  ;;  %v10665_v25 = vrot.slane %v10600_v49, 5 }
 0x1bd   : > { %12632 = vmatmul.mubr.msk.bf16.gmra.mrb[4].mxu0 %vm1524_vm8, %v9481_v14  ;;  %v12435_v3 = vld.sshfl [vmem:[%s12821_s14 + $0x27] sm:$0x1 pattern:$0x75316420]  ;;  %v9840_v51 = vrot.slane %v12434_v26, %v12823_v11  ;;  %v10604_v2 = vunpack.c.l.b16 %v9812_v47  ;;  %v10667_v60 = vrot.slane %v10601_v23, 4  ;;  %v10669_v57 = vrot.slane %v10602_v5, 3 }
 0x1be   : > { %v12436_v29 = vld.sshfl [vmem:[%s12821_s14 + $0x28] sm:$0x1 pattern:$0x75316420]  ;;  %v9854_v45 = vrot.slane %v12435_v3, %v12823_v11  ;;  %v10605_v16 = vunpack.c.l.b16 %v9826_v50  ;;  %v10666_v59 = vsel %vm1408_vm3, %v10665_v25, %v10664_v28  ;;  %v10671_v46 = vrot.slane %v10603_v37, 2 }
 0x1bf   : > { %v12437_v43 = vld.sshfl [vmem:[%s12821_s14 + $0x29] sm:$0x1 pattern:$0x75316420]  ;;  %v9868_v49 = vrot.slane %v12436_v29, %v12823_v11  ;;  %v10606_v10 = vunpack.c.l.b16 %v9840_v51  ;;  %v10668_v9 = vsel %vm1411_vm4, %v10667_v60, %v10666_v59  ;;  %v10673_v12 = vrot.slane %v10604_v2, 1 }
 0x1c0   : > { %v12438_v38 = vld.sshfl [vmem:[%s12821_s14 + $0x2a] sm:$0x1 pattern:$0x75316420]  ;;  %v9882_v23 = vrot.slane %v12437_v43, %v12823_v11  ;;  %v10607_v14 = vunpack.c.l.b16 %v9854_v45  ;;  %v10670_v39 = vsel %vm1414_vm5, %v10669_v57, %v10668_v9  ;;  %v10708_v47 = vsel %vm1408_vm3, %v9414_v32, %v10706_v6 }
 0x1c1   : > { %v12439_v5 = vld.sshfl [vmem:[%s12821_s14 + $0x2b] sm:$0x1 pattern:$0x75316420]  ;;  %v9896_v19 = vrot.slane %v12438_v38, %v12823_v11  ;;  %v10608_v26 = vunpack.c.l.b16 %v9868_v49  ;;  %v10672_v50 = vsel %vm1417_vm6, %v10671_v46, %v10670_v39  ;;  %v10675_v37 = vrot.slane %v10606_v10, 7 }
 0x1c2   : > { %v12440_v28 = vld.sshfl [vmem:[%s12821_s14 + $0x2c] sm:$0x1 pattern:$0x75316420]  ;;  %v9910_v52 = vrot.slane %v12439_v5, %v12823_v11  ;;  %v10609_v32 = vunpack.c.l.b16 %v9882_v23  ;;  %v10674_v6 = vsel %vm1420_vm7, %v10673_v12, %v10672_v50  ;;  %v10677_v25 = vrot.slane %v10607_v14, 6 }
 0x1c3   : > { %v9924_v3 = vrot.slane %v12440_v28, %v12823_v11  ;;  %v10610_v51 = vunpack.c.l.b16 %v9896_v19  ;;  %v10676_v2 = vsel %vm1402_vm1, %v10675_v37, %v10605_v16  ;;  %v10679_v60 = vrot.slane %v10608_v26, 5  ;;  %v12448_v57 = vld.sshfl [vmem:[%s12821_s14 + $0x3e] sm:$0x1 pattern:$0x75316420] }
 0x1c4   : > { %v10611_v29 = vunpack.c.l.b16 %v9910_v52  ;;  %v10678_v45 = vsel %vm1405_vm2, %v10677_v25, %v10676_v2  ;;  %v10681_v59 = vrot.slane %v10609_v32, 4  ;;  %v12456_v46 = vld.sshfl [vmem:[%s12821_s14 + $0x50] sm:$0x1 pattern:$0x75316420]  ;;  %v10036_v43 = vrot.slane %v12448_v57, %v12823_v11 }
 0x1c5   : > { %v10906_v49 = vld [vmem:[%s15078_s11 + $0x2] sm:$0x1]  ;;  %v10907_v10 = vld [vmem:[%s15078_s11 + $0x4] sm:$0x1]  ;;  %v10612_v9 = vunpack.c.l.b16 %v9924_v3  ;;  %v10680_v12 = vsel %vm1408_vm3, %v10679_v60, %v10678_v45  ;;  %v10683_v38 = vrot.slane %v10610_v51, 3  ;;  %v10148_v16 = vrot.slane %v12456_v46, %v12823_v11 }
 0x1c6   : > { %v10905_v23 = vld [vmem:[%s15078_s11] sm:$0x1]  ;;  %v10908_v14 = vld [vmem:[%s15078_s11 + $0x6] sm:$0x1]  ;;  %v10682_v39 = vsel %vm1411_vm4, %v10681_v59, %v10680_v12  ;;  %v10685_v5 = vrot.slane %v10611_v29, 2  ;;  %v10620_v19 = vunpack.c.l.b16 %v10036_v43  ;;  %v10710_v26 = vsel %vm1411_vm4, %v9416_v48, %v10708_v47 }
 0x1c7   : > { %v10909_v50 = vld [vmem:[%s15078_s11 + $0x8] sm:$0x1]  ;;  %v10910_v37 = vld [vmem:[%s15078_s11 + $0xa] sm:$0x1]  ;;  %v10684_v28 = vsel %vm1414_vm5, %v10683_v38, %v10682_v39  ;;  %v10687_v52 = vrot.slane %v10612_v9, 1  ;;  %v10628_v32 = vunpack.c.l.b16 %v10148_v16  ;;  %v10712_v25 = vsel %vm1414_vm5, %v9418_v27, %v10710_v26 }
 0x1c8   : > { %v10911_v3 = vld [vmem:[%s15078_s11 + $0xc] sm:$0x1]  ;;  %v10912_v51 = vld [vmem:[%s15078_s11 + $0xe] sm:$0x1]  ;;  %v10686_v36 = vsel %vm1417_vm6, %v10685_v5, %v10684_v28  ;;  %v10701_v48 = vrot.slane %v10620_v19, 1  ;;  %v10714_v47 = vsel %vm1417_vm6, %v9420_v40, %v10712_v25  ;;  %v10969_v57 = vpack.c.bf16 %v10905_v23, %v10905_v23 }
 0x1c9   : > { %v10913_v2 = vld [vmem:[%s15078_s11 + $0x20] sm:$0x1]  ;;  %v10914_v60 = vld [vmem:[%s15078_s11 + $0x22] sm:$0x1]  ;;  %v10688_v8 = vsel %vm1420_vm7, %v10687_v52, %v10686_v36  ;;  %v10715_v29 = vrot.slane %v10628_v32, 1  ;;  %v10970_v59 = vpack.c.bf16 %v10906_v49, %v10906_v49  ;;  %v10971_v46 = vpack.c.bf16 %v10907_v10, %v10907_v10 }
 0x1ca   : > { %v10915_v27 = vld [vmem:[%s15078_s11 + $0x24] sm:$0x1]  ;;  %v10916_v45 = vld [vmem:[%s15078_s11 + $0x26] sm:$0x1]  ;;  %v10773_v43 = vpack.c.b16 %v10688_v8, %v10674_v6  ;;  %v10702_v9 = vsel %vm1420_vm7, %v10701_v48, %v14986_v54  ;;  %v10917_v12 = vld [vmem:[%s15078_s11 + $0x28] sm:$0x1]  ;;  %v10972_v16 = vpack.c.bf16 %v10908_v14, %v10908_v14  ;;  %v10973_v40 = vpack.c.bf16 %v10909_v50, %v10909_v50 }
 0x1cb   : > { %v10918_v38 = vld [vmem:[%s15078_s11 + $0x2a] sm:$0x1]  ;;  %v10716_v39 = vsel %vm1420_vm7, %v10715_v29, %v10714_v47  ;;  %v10920_v5 = vld [vmem:[%s15078_s11 + $0x2e] sm:$0x1]  ;;  %v10974_v23 = vpack.c.bf16 %v10910_v37, %v10910_v37  ;;  %v10975_v19 = vpack.c.bf16 %v10911_v3, %v10911_v3  ;;  %v10976_v26 = vpack.c.bf16 %v10912_v51, %v10912_v51 }
 0x1cc   : > { %12637 = vmatprep.mubr.msk.bf16.mxu0 %vm1524_vm8, %v10773_v43  ;;  %v10774_v28 = vpack.c.b16 %v10716_v39, %v10702_v9  ;;  %v10977_v49 = vpack.c.bf16 %v10913_v2, %v10913_v2  ;;  %v10978_v10 = vpack.c.bf16 %v10914_v60, %v10914_v60  ;;  %v10979_v6 = vpack.c.bf16 %v10915_v27, %v10915_v27 }
 0x1cd   : > { %v10980_v52 = vpack.c.bf16 %v10916_v45, %v10916_v45  ;;  %v10981_v32 = vpack.c.bf16 %v10917_v12, %v10917_v12  ;;  %v10982_v54 = vpack.c.bf16 %v10918_v38, %v10918_v38  ;;  %v10983_v25 = vpack.c.bf16 %v10919_v35, %v10919_v35 }
 0x1ce   : > { %12638 = vmatmul.mubr.msk.bf16.vlgmr.msra.gmra.mrb[0].mxu0 %vm1524_vm8, %v10774_v28  ;;  %v10984_v14 = vpack.c.bf16 %v10920_v5, %v10920_v5  ;;  %v11106_v50 = vunpack.c.l.b16 %v10969_v57  ;;  %v11107_v36 = vunpack.c.l.b16 %v10970_v59  ;;  %v11108_v48 = vunpack.c.l.b16 %v10971_v46  ;;  %v10921_v46 = vld [vmem:[%s15078_s11 + $0x40] sm:$0x1]  ;;  %v10922_v5 = vld [vmem:[%s15078_s11 + $0x42] sm:$0x1] }
 0x1cf   : > { %v11109_v47 = vunpack.c.l.b16 %v10972_v16  ;;  %v11110_v37 = vunpack.c.l.b16 %v10973_v40  ;;  %v11111_v3 = vunpack.c.l.b16 %v10974_v23  ;;  %v11112_v51 = vunpack.c.l.b16 %v10975_v19 }
 0x1d0   : > { %v11113_v8 = vunpack.c.l.b16 %v10976_v26  ;;  %v11114_v29 = vunpack.c.l.b16 %v10977_v49  ;;  %v11115_v2 = vunpack.c.l.b16 %v10978_v10  ;;  %v11116_v60 = vunpack.c.l.b16 %v10979_v6  ;;  %v10923_v49 = vld [vmem:[%s15078_s11 + $0x44] sm:$0x1] }
 0x1d1   : > { %v11117_v27 = vunpack.c.l.b16 %v10980_v52  ;;  %v11118_v45 = vunpack.c.l.b16 %v10981_v32  ;;  %v11119_v43 = vunpack.c.l.b16 %v10982_v54  ;;  %v11120_v9 = vunpack.c.l.b16 %v10983_v25  ;;  %v10924_v54 = vld [vmem:[%s15078_s11 + $0x46] sm:$0x1] }
 0x1d2   : > { %v11121_v12 = vunpack.c.l.b16 %v10984_v14  ;;  %v11170_v38 = vrot.slane %v11107_v36, 7  ;;  %v11172_v57 = vrot.slane %v11108_v48, 6  ;;  %v11174_v59 = vrot.slane %v11109_v47, 5  ;;  %v10925_v36 = vld [vmem:[%s15078_s11 + $0x48] sm:$0x1] }
 0x1d3   : > { %v11176_v35 = vrot.slane %v11110_v37, 4  ;;  %v11178_v16 = vrot.slane %v11111_v3, 3  ;;  %v11180_v40 = vrot.slane %v11112_v51, 2  ;;  %v11182_v39 = vrot.slane %v11113_v8, 1  ;;  %v10926_v48 = vld [vmem:[%s15078_s11 + $0x4a] sm:$0x1] }
 0x1d4   : > { %v11171_v23 = vsel %vm1402_vm1, %v11170_v38, %v11106_v50  ;;  %v11184_v19 = vrot.slane %v11115_v2, 7  ;;  %v11186_v26 = vrot.slane %v11116_v60, 6  ;;  %v11188_v28 = vrot.slane %v11117_v27, 5  ;;  %v10927_v3 = vld [vmem:[%s15078_s11 + $0x4c] sm:$0x1] }
 0x1d5   : > { %v11173_v10 = vsel %vm1405_vm2, %v11172_v57, %v11171_v23  ;;  %v11190_v6 = vrot.slane %v11118_v45, 4  ;;  %v11192_v52 = vrot.slane %v11119_v43, 3  ;;  %v11194_v32 = vrot.slane %v11120_v9, 2  ;;  %v10928_v51 = vld [vmem:[%s15078_s11 + $0x4e] sm:$0x1] }
 0x1d6   : > { %v11175_v25 = vsel %vm1408_vm3, %v11174_v59, %v11173_v10  ;;  %v11185_v14 = vsel %vm1402_vm1, %v11184_v19, %v11114_v29  ;;  %v11196_v50 = vrot.slane %v11121_v12, 1  ;;  %v10985_v8 = vpack.c.bf16 %v10921_v46, %v10921_v46  ;;  %v10929_v27 = vld [vmem:[%s15078_s11 + $0x60] sm:$0x1]  ;;  %v10930_v45 = vld [vmem:[%s15078_s11 + $0x62] sm:$0x1] }
 0x1d7   : > { %v11177_v47 = vsel %vm1411_vm4, %v11176_v35, %v11175_v25  ;;  %v11187_v37 = vsel %vm1405_vm2, %v11186_v26, %v11185_v14  ;;  %v10986_v2 = vpack.c.bf16 %v10922_v5, %v10922_v5  ;;  %v10931_v43 = vld [vmem:[%s15078_s11 + $0x64] sm:$0x1]  ;;  %v10987_v9 = vpack.c.bf16 %v10923_v49, %v10923_v49  ;;  %v10932_v59 = vld [vmem:[%s15078_s11 + $0x66] sm:$0x1]  ;;  %v10933_v35 = vld [vmem:[%s15078_s11 + $0x68] sm:$0x1] }
 0x1d8   : > { %v11179_v60 = vsel %vm1414_vm5, %v11178_v16, %v11177_v47  ;;  %v11189_v29 = vsel %vm1408_vm3, %v11188_v28, %v11187_v37  ;;  %v10988_v12 = vpack.c.bf16 %v10924_v54, %v10924_v54  ;;  %v10934_v23 = vld [vmem:[%s15078_s11 + $0x6a] sm:$0x1]  ;;  %v10989_v46 = vpack.c.bf16 %v10925_v36, %v10925_v36  ;;  %v10935_v26 = vld [vmem:[%s15078_s11 + $0x6c] sm:$0x1]  ;;  %v10936_v28 = vld [vmem:[%s15078_s11 + $0x6e] sm:$0x1] }
 0x1d9   : > { %v11181_v38 = vsel %vm1417_vm6, %v11180_v40, %v11179_v60  ;;  %v11191_v57 = vsel %vm1411_vm4, %v11190_v6, %v11189_v29  ;;  %v10990_v5 = vpack.c.bf16 %v10926_v48, %v10926_v48  ;;  %v10991_v10 = vpack.c.bf16 %v10927_v3, %v10927_v3 }
 0x1da   : > { %v11183_v16 = vsel %vm1420_vm7, %v11182_v39, %v11181_v38  ;;  %v11193_v19 = vsel %vm1414_vm5, %v11192_v52, %v11191_v57  ;;  %v10992_v25 = vpack.c.bf16 %v10928_v51, %v10928_v51  ;;  %v10993_v54 = vpack.c.bf16 %v10929_v27, %v10929_v27 }
 0x1db   : > { %v11195_v49 = vsel %vm1417_vm6, %v11194_v32, %v11193_v19  ;;  %v10994_v14 = vpack.c.bf16 %v10930_v45, %v10930_v45  ;;  %v10995_v40 = vpack.c.bf16 %v10931_v43, %v10931_v43  ;;  %v10996_v47 = vpack.c.bf16 %v10932_v59, %v10932_v59 }
 0x1dc   : > { %v11197_v6 = vsel %vm1420_vm7, %v11196_v50, %v11195_v49  ;;  %v10997_v37 = vpack.c.bf16 %v10933_v35, %v10933_v35  ;;  %v10998_v60 = vpack.c.bf16 %v10934_v23, %v10934_v23  ;;  %v10999_v48 = vpack.c.bf16 %v10935_v26, %v10935_v26  ;;  %v12458_v26 = vld.sshfl [vmem:[%s12821_s14 + $0x5c] sm:$0x1 pattern:$0x75316420] }
 0x1dd   : > { %v11282_v36 = vpack.c.b16 %v11197_v6, %v11183_v16  ;;  %v11000_v29 = vpack.c.bf16 %v10936_v28, %v10936_v28  ;;  %v11122_v39 = vunpack.c.l.b16 %v10985_v8  ;;  %v11123_v38 = vunpack.c.l.b16 %v10986_v2  ;;  %v12459_v28 = vld.sshfl [vmem:[%s12821_s14 + $0x5d] sm:$0x1 pattern:$0x75316420] }
 0x1de   : > { %v11124_v52 = vunpack.c.l.b16 %v10987_v9  ;;  %v11125_v57 = vunpack.c.l.b16 %v10988_v12  ;;  %v11126_v3 = vunpack.c.l.b16 %v10989_v46  ;;  %v11127_v32 = vunpack.c.l.b16 %v10990_v5  ;;  %v12457_v12 = vld.sshfl [vmem:[%s12821_s14 + $0x5b] sm:$0x1 pattern:$0x75316420] }
 0x1df   : > { %12647 = vmatprep.mubr.msk.bf16.mxu1 %vm11292_vm9, %v11282_v36  ;;  %v11128_v51 = vunpack.c.l.b16 %v10991_v10  ;;  %v11129_v27 = vunpack.c.l.b16 %v10992_v25  ;;  %v11130_v50 = vunpack.c.l.b16 %v10993_v54  ;;  %v11131_v45 = vunpack.c.l.b16 %v10994_v14  ;;  %v12460_v14 = vld.sshfl [vmem:[%s12821_s14 + $0x5e] sm:$0x1 pattern:$0x75316420] }
 0x1e0   : > { %v11132_v43 = vunpack.c.l.b16 %v10995_v40  ;;  %v11133_v59 = vunpack.c.l.b16 %v10996_v47  ;;  %v11134_v35 = vunpack.c.l.b16 %v10997_v37  ;;  %v11135_v23 = vunpack.c.l.b16 %v10998_v60  ;;  %v12461_v40 = vld.sshfl [vmem:[%s12821_s14 + $0x5f] sm:$0x1 pattern:$0x75316420] }
 0x1e1   : > { %v11136_v8 = vunpack.c.l.b16 %v10999_v48  ;;  %v11137_v2 = vunpack.c.l.b16 %v11000_v29  ;;  %v11198_v9 = vrot.slane %v11123_v38, 7  ;;  %v11200_v46 = vrot.slane %v11124_v52, 6  ;;  %v12462_v36 = vld.sshfl [vmem:[%s12821_s14 + $0x60] sm:$0x1 pattern:$0x75316420] }
 0x1e2   : > { %v11202_v16 = vrot.slane %v11125_v57, 5  ;;  %v11204_v5 = vrot.slane %v11126_v3, 4  ;;  %v11206_v19 = vrot.slane %v11127_v32, 3  ;;  %v11208_v25 = vrot.slane %v11128_v51, 2 }
 0x1e3   : > { %v11199_v10 = vsel %vm1402_vm1, %v11198_v9, %v11122_v39  ;;  %v11210_v49 = vrot.slane %v11129_v27, 1  ;;  %v11212_v54 = vrot.slane %v11131_v45, 7  ;;  %v11214_v47 = vrot.slane %v11132_v43, 6 }
 0x1e4   : > { %v11201_v6 = vsel %vm1405_vm2, %v11200_v46, %v11199_v10  ;;  %v11216_v37 = vrot.slane %v11133_v59, 5  ;;  %v11218_v60 = vrot.slane %v11134_v35, 4  ;;  %v12463_v48 = vld.sshfl [vmem:[%s12821_s14 + $0x61] sm:$0x1 pattern:$0x75316420]  ;;  %v10162_v9 = vrot.slane %v12457_v12, %v12823_v11 }
 0x1e5   : > { %v11203_v29 = vsel %vm1408_vm3, %v11202_v16, %v11201_v6  ;;  %v11213_v39 = vsel %vm1402_vm1, %v11212_v54, %v11130_v50  ;;  %v11220_v38 = vrot.slane %v11135_v23, 3  ;;  %v11222_v52 = vrot.slane %v11136_v8, 2  ;;  %v12464_v57 = vld.sshfl [vmem:[%s12821_s14 + $0x62] sm:$0x1 pattern:$0x75316420] }
 0x1e6   : > { %v12465_v3 = vld.sshfl [vmem:[%s12821_s14 + $0x6d] sm:$0x1 pattern:$0x75316420]  ;;  %v11205_v51 = vsel %vm1411_vm4, %v11204_v5, %v11203_v29  ;;  %v11215_v27 = vsel %vm1405_vm2, %v11214_v47, %v11213_v39  ;;  %v11224_v45 = vrot.slane %v11137_v2, 1  ;;  %v10176_v8 = vrot.slane %v12458_v26, %v12823_v11 }
 0x1e7   : > { %v12466_v32 = vld.sshfl [vmem:[%s12821_s14 + $0x6e] sm:$0x1 pattern:$0x75316420]  ;;  %v11207_v46 = vsel %vm1414_vm5, %v11206_v19, %v11205_v51  ;;  %v11217_v50 = vsel %vm1408_vm3, %v11216_v37, %v11215_v27  ;;  %v10190_v16 = vrot.slane %v12459_v28, %v12823_v11  ;;  %v10204_v54 = vrot.slane %v12460_v14, %v12823_v11 }
 0x1e8   : > { %v12467_v43 = vld.sshfl [vmem:[%s12821_s14 + $0x6f] sm:$0x1 pattern:$0x75316420]  ;;  %v11209_v5 = vsel %vm1417_vm6, %v11208_v25, %v11207_v46  ;;  %v11219_v10 = vsel %vm1411_vm4, %v11218_v60, %v11217_v50  ;;  %v10218_v6 = vrot.slane %v12461_v40, %v12823_v11  ;;  %v10232_v37 = vrot.slane %v12462_v36, %v12823_v11 }
 0x1e9   : > { %v12468_v59 = vld.sshfl [vmem:[%s12821_s14 + $0x70] sm:$0x1 pattern:$0x75316420]  ;;  %v11211_v12 = vsel %vm1420_vm7, %v11210_v49, %v11209_v5  ;;  %v11221_v19 = vsel %vm1414_vm5, %v11220_v38, %v11219_v10  ;;  %v10246_v26 = vrot.slane %v12463_v48, %v12823_v11  ;;  %v10260_v25 = vrot.slane %v12464_v57, %v12823_v11 }
 0x1ea   : > { %v12469_v35 = vld.sshfl [vmem:[%s12821_s14 + $0x71] sm:$0x1 pattern:$0x75316420]  ;;  %v11223_v28 = vsel %vm1417_vm6, %v11222_v52, %v11221_v19  ;;  %v10274_v60 = vrot.slane %v12465_v3, %v12823_v11  ;;  %v10288_v29 = vrot.slane %v12466_v32, %v12823_v11  ;;  %v10302_v40 = vrot.slane %v12467_v43, %v12823_v11 }
 0x1eb   : > { %v12470_v23 = vld.sshfl [vmem:[%s12821_s14 + $0x72] sm:$0x1 pattern:$0x75316420]  ;;  %v11225_v14 = vsel %vm1420_vm7, %v11224_v45, %v11223_v28  ;;  %v10316_v49 = vrot.slane %v12468_v59, %v12823_v11  ;;  %v10330_v39 = vrot.slane %v12469_v35, %v12823_v11  ;;  %v10629_v57 = vunpack.c.l.b16 %v10162_v9 }
 0x1ec   : > { %v12471_v2 = vld.sshfl [vmem:[%s12821_s14 + $0x73] sm:$0x1 pattern:$0x75316420]  ;;  %v11283_v38 = vpack.c.b16 %v11225_v14, %v11211_v12  ;;  %v10344_v36 = vrot.slane %v12470_v23, %v12823_v11  ;;  %v10630_v51 = vunpack.c.l.b16 %v10176_v8  ;;  %v10631_v3 = vunpack.c.l.b16 %v10190_v16 }
 0x1ed   : > { %v12472_v47 = vld.sshfl [vmem:[%s12821_s14 + $0x74] sm:$0x1 pattern:$0x75316420]  ;;  %v10358_v48 = vrot.slane %v12471_v2, %v12823_v11  ;;  %v10632_v32 = vunpack.c.l.b16 %v10204_v54  ;;  %v10633_v27 = vunpack.c.l.b16 %v10218_v6  ;;  %v10634_v45 = vunpack.c.l.b16 %v10232_v37 }
 0x1ee   : > { %v10372_v52 = vrot.slane %v12472_v47, %v12823_v11  ;;  %12648 = vmatmul.mubr.msk.bf16.vlgmr.msra.gmra.mrb[8].mxu1 %vm11292_vm9, %v11283_v38  ;;  %v10635_v43 = vunpack.c.l.b16 %v10246_v26  ;;  %v10636_v59 = vunpack.c.l.b16 %v10260_v25  ;;  %v10637_v35 = vunpack.c.l.b16 %v10274_v60  ;;  %v12480_v9 = vld.sshfl [vmem:[%s12821_s14 + $0x86] sm:$0x1 pattern:$0x75316420] }
 0x1ef   : > { %v10638_v46 = vunpack.c.l.b16 %v10288_v29  ;;  %v10639_v50 = vunpack.c.l.b16 %v10302_v40  ;;  %v10640_v23 = vunpack.c.l.b16 %v10316_v49  ;;  %v10641_v5 = vunpack.c.l.b16 %v10330_v39  ;;  %v12488_v47 = vld.sshfl [vmem:[%s12821_s14 + $0x98] sm:$0x1 pattern:$0x75316420]  ;;  %s12503_s14 = sshll.u32 %s15593_s25, 5 }
 0x1f0   : > { %v10642_v10 = vunpack.c.l.b16 %v10344_v36  ;;  %v10643_v2 = vunpack.c.l.b16 %v10358_v48  ;;  %v10644_v12 = vunpack.c.l.b16 %v10372_v52  ;;  %v10717_v8 = vrot.slane %v10630_v51, 7  ;;  %s15332_s17 = scalar_lea.vmem %s15384_s6, %s12503_s14 }
 0x1f1   : > { %v10719_v19 = vrot.slane %v10631_v3, 6  ;;  %v10721_v16 = vrot.slane %v10632_v32, 5  ;;  %v10723_v54 = vrot.slane %v10633_v27, 4  ;;  %v10725_v28 = vrot.slane %v10634_v45, 3 }
 0x1f2   : > { %v10727_v6 = vrot.slane %v10635_v43, 2  ;;  %v10729_v37 = vrot.slane %v10636_v59, 1  ;;  %v10731_v14 = vrot.slane %v10638_v46, 7  ;;  %v10718_v26 = vsel %vm1402_vm1, %v10717_v8, %v10629_v57 }
 0x1f3   : > { %v10733_v25 = vrot.slane %v10639_v50, 6  ;;  %v10735_v60 = vrot.slane %v10640_v23, 5  ;;  %v10737_v29 = vrot.slane %v10641_v5, 4  ;;  %v10720_v40 = vsel %vm1405_vm2, %v10719_v19, %v10718_v26  ;;  %v10938_v5 = vld [vmem:[%s15078_s11 + $0x82] sm:$0x1] }
 0x1f4   : > { %v10732_v49 = vsel %vm1402_vm1, %v10731_v14, %v10637_v35  ;;  %v10739_v39 = vrot.slane %v10642_v10, 3  ;;  %v10741_v38 = vrot.slane %v10643_v2, 2  ;;  %v10722_v36 = vsel %vm1408_vm3, %v10721_v16, %v10720_v40  ;;  %v10939_v10 = vld [vmem:[%s15078_s11 + $0x84] sm:$0x1]  ;;  %v10940_v2 = vld [vmem:[%s15078_s11 + $0x86] sm:$0x1] }
 0x1f5   : > { %v10734_v48 = vsel %vm1405_vm2, %v10733_v25, %v10732_v49  ;;  %v10743_v52 = vrot.slane %v10644_v12, 1  ;;  %v10484_v51 = vrot.slane %v12480_v9, %v12823_v11  ;;  %v10724_v3 = vsel %vm1411_vm4, %v10723_v54, %v10722_v36  ;;  %v10941_v12 = vld [vmem:[%s15078_s11 + $0x88] sm:$0x1]  ;;  %v10943_v19 = vld [vmem:[%s15078_s11 + $0x8c] sm:$0x1] }
 0x1f6   : > { %v10736_v57 = vsel %vm1408_vm3, %v10735_v60, %v10734_v48  ;;  %v10596_v32 = vrot.slane %v12488_v47, %v12823_v11  ;;  %v10746_v27 = vsel %vm1402_vm1, %v9452_v41, %v14911_v42  ;;  %v10726_v45 = vsel %vm1414_vm5, %v10725_v28, %v10724_v3  ;;  %v10937_v41 = vld [vmem:[%s15078_s11 + $0x80] sm:$0x1]  ;;  %v10946_v16 = vld [vmem:[%s15078_s11 + $0xa2] sm:$0x1]  ;;  %v10947_v54 = vld [vmem:[%s15078_s11 + $0xa4] sm:$0x1] }
 0x1f7   : > { %v10738_v43 = vsel %vm1411_vm4, %v10737_v29, %v10736_v57  ;;  %v10652_v59 = vunpack.c.l.b16 %v10484_v51  ;;  %v10748_v35 = vsel %vm1405_vm2, %v9454_v33, %v10746_v27  ;;  %v10728_v46 = vsel %vm1417_vm6, %v10727_v6, %v10726_v45  ;;  %v10949_v28 = vld [vmem:[%s15078_s11 + $0xa8] sm:$0x1]  ;;  %v10950_v6 = vld [vmem:[%s15078_s11 + $0xaa] sm:$0x1]  ;;  %v10951_v26 = vld [vmem:[%s15078_s11 + $0xac] sm:$0x1] }
 0x1f8   : > { %v10740_v11 = vsel %vm1414_vm5, %v10739_v39, %v10738_v43  ;;  %v10660_v55 = vunpack.c.l.b16 %v10596_v32  ;;  %v10750_v42 = vsel %vm1408_vm3, %v9456_v4, %v10748_v35  ;;  %v10730_v50 = vsel %vm1420_vm7, %v10729_v37, %v10728_v46  ;;  %v10952_v25 = vld [vmem:[%s15078_s11 + $0xae] sm:$0x1] }
 0x1f9   : > { %v10742_v56 = vsel %vm1417_vm6, %v10741_v38, %v10740_v11  ;;  %v10752_v33 = vsel %vm1411_vm4, %v9458_v63, %v10750_v42  ;;  %v10757_v23 = vrot.slane %v10652_v59, 1  ;;  %v10760_v58 = vsel %vm1402_vm1, %v9466_v21, %v14963_v30  ;;  %v10942_v63 = vld [vmem:[%s15078_s11 + $0x8a] sm:$0x1] }
 0x1fa   : > { %v10744_v15 = vsel %vm1420_vm7, %v10743_v52, %v10742_v56  ;;  %v10754_v4 = vsel %vm1414_vm5, %v9460_v17, %v10752_v33  ;;  %v10762_v7 = vsel %vm1405_vm2, %v9468_v53, %v10760_v58  ;;  %v10771_v17 = vrot.slane %v10660_v55, 1  ;;  %v10948_v53 = vld [vmem:[%s15078_s11 + $0xa6] sm:$0x1] }
 0x1fb   : > { %v10775_v9 = vpack.c.b16 %v10744_v15, %v10730_v50  ;;  %v10756_v8 = vsel %vm1417_vm6, %v9462_v31, %v10754_v4  ;;  %v10764_v21 = vsel %vm1408_vm3, %v9470_v1, %v10762_v7  ;;  %v11001_v31 = vpack.c.bf16 %v10937_v41, %v10937_v41  ;;  %v10953_v15 = vld [vmem:[%s15078_s11 + $0xc0] sm:$0x1] }
 0x1fc   : > { %v10758_v30 = vsel %vm1420_vm7, %v10757_v23, %v10756_v8  ;;  %v11002_v47 = vpack.c.bf16 %v10938_v5, %v10938_v5  ;;  %v10766_v13 = vsel %vm1411_vm4, %v9472_v18, %v10764_v21  ;;  %v11003_v37 = vpack.c.bf16 %v10939_v10, %v10939_v10 }
 0x1fd   : > { %12641 = vmatprep.mubr.msk.bf16.mxu0 %vm1524_vm8, %v10775_v9  ;;  %v11004_v34 = vpack.c.bf16 %v10940_v2, %v10940_v2  ;;  %v11005_v14 = vpack.c.bf16 %v10941_v12, %v10941_v12  ;;  %v10768_v1 = vsel %vm1414_vm5, %v9474_v22, %v10766_v13  ;;  %v11006_v60 = vpack.c.bf16 %v10942_v63, %v10942_v63  ;;  %v10954_v63 = vld [vmem:[%s15078_s11 + $0xc2] sm:$0x1] }
 0x1fe   : > { %v11007_v29 = vpack.c.bf16 %v10943_v19, %v10943_v19  ;;  %v11008_v40 = vpack.c.bf16 %v10944_v62, %v10944_v62  ;;  %v10770_v61 = vsel %vm1417_vm6, %v9476_v24, %v10768_v1  ;;  %v11009_v18 = vpack.c.bf16 %v10945_v0, %v10945_v0  ;;  %v10955_v19 = vld [vmem:[%s15078_s11 + $0xc4] sm:$0x1]  ;;  %v10961_v1 = vld [vmem:[%s15078_s11 + $0xe0] sm:$0x1] }
 0x1ff   : > { %v11010_v49 = vpack.c.bf16 %v10946_v16, %v10946_v16  ;;  %v11011_v39 = vpack.c.bf16 %v10947_v54, %v10947_v54  ;;  %v10772_v38 = vsel %vm1420_vm7, %v10771_v17, %v10770_v61  ;;  %v11012_v36 = vpack.c.bf16 %v10948_v53, %v10948_v53  ;;  %v10956_v16 = vld [vmem:[%s15078_s11 + $0xc6] sm:$0x1]  ;;  %v10957_v54 = vld [vmem:[%s15078_s11 + $0xc8] sm:$0x1]  ;;  %v10958_v53 = vld [vmem:[%s15078_s11 + $0xca] sm:$0x1] }
 0x200   : > { %v11013_v48 = vpack.c.bf16 %v10949_v28, %v10949_v28  ;;  %v11014_v52 = vpack.c.bf16 %v10950_v6, %v10950_v6  ;;  %v10776_v44 = vpack.c.b16 %v10772_v38, %v10758_v30  ;;  %v11015_v51 = vpack.c.bf16 %v10951_v26, %v10951_v26  ;;  %v10959_v28 = vld [vmem:[%s15078_s11 + $0xcc] sm:$0x1]  ;;  %v10962_v26 = vld [vmem:[%s15078_s11 + $0xe2] sm:$0x1]  ;;  %v10963_v61 = vld [vmem:[%s15078_s11 + $0xe4] sm:$0x1] }
 0x201   : > { %v11016_v22 = vpack.c.bf16 %v10952_v25, %v10952_v25  ;;  %v11139_v3 = vunpack.c.l.b16 %v11002_v47  ;;  %v11140_v57 = vunpack.c.l.b16 %v11003_v37  ;;  %v11141_v32 = vunpack.c.l.b16 %v11004_v34 }
 0x202   : > { %v11142_v27 = vunpack.c.l.b16 %v11005_v14  ;;  %v11143_v45 = vunpack.c.l.b16 %v11006_v60  ;;  %12642 = vmatmul.mubr.msk.bf16.gmra.mrb[4].mxu0 %vm1524_vm8, %v10776_v44  ;;  %v11138_v20 = vunpack.c.l.b16 %v11001_v31  ;;  %v11144_v24 = vunpack.c.l.b16 %v11007_v29  ;;  %v10960_v14 = vld [vmem:[%s15078_s11 + $0xce] sm:$0x1]  ;;  %v10967_v44 = vld [vmem:[%s15078_s11 + $0xec] sm:$0x1] }
 0x203   : > { %v11145_v43 = vunpack.c.l.b16 %v11008_v40  ;;  %v11147_v59 = vunpack.c.l.b16 %v11010_v49  ;;  %v11146_v35 = vunpack.c.l.b16 %v11009_v18  ;;  %v11148_v46 = vunpack.c.l.b16 %v11011_v39  ;;  %v10964_v18 = vld [vmem:[%s15078_s11 + $0xe6] sm:$0x1]  ;;  %v10965_v49 = vld [vmem:[%s15078_s11 + $0xe8] sm:$0x1] }
 0x204   : > { %v11149_v11 = vunpack.c.l.b16 %v11012_v36  ;;  %v11150_v55 = vunpack.c.l.b16 %v11013_v48  ;;  %v11151_v42 = vunpack.c.l.b16 %v11014_v52  ;;  %v11152_v41 = vunpack.c.l.b16 %v11015_v51  ;;  %v10966_v52 = vld [vmem:[%s15078_s11 + $0xea] sm:$0x1]  ;;  %v10968_v51 = vld [vmem:[%s15078_s11 + $0xee] sm:$0x1] }
 0x205   : > { %v11226_v50 = vrot.slane %v11139_v3, 7  ;;  %v11228_v56 = vrot.slane %v11140_v57, 6  ;;  %v11153_v33 = vunpack.c.l.b16 %v11016_v22  ;;  %v11230_v23 = vrot.slane %v11141_v32, 5 }
 0x206   : > { %v11232_v5 = vrot.slane %v11142_v27, 4  ;;  %v11234_v10 = vrot.slane %v11143_v45, 3  ;;  %v11236_v58 = vrot.slane %v11144_v24, 2  ;;  %v11240_v2 = vrot.slane %v11147_v59, 7 }
 0x207   : > { %v11227_v4 = vsel %vm1402_vm1, %v11226_v50, %v11138_v20  ;;  %v11242_v12 = vrot.slane %v11148_v46, 6  ;;  %v11238_v8 = vrot.slane %v11145_v43, 1  ;;  %v11244_v7 = vrot.slane %v11149_v11, 5 }
 0x208   : > { %v11229_v9 = vsel %vm1405_vm2, %v11228_v56, %v11227_v4  ;;  %v11246_v17 = vrot.slane %v11150_v55, 4  ;;  %v11241_v30 = vsel %vm1402_vm1, %v11240_v2, %v11146_v35  ;;  %v11248_v21 = vrot.slane %v11151_v42, 3 }
 0x209   : > { %v11231_v62 = vsel %vm1408_vm3, %v11230_v23, %v11229_v9  ;;  %v11250_v0 = vrot.slane %v11152_v41, 2  ;;  %v11243_v47 = vsel %vm1405_vm2, %v11242_v12, %v11241_v30  ;;  %v11252_v13 = vrot.slane %v11153_v33, 1 }
 0x20a   : > { %v11233_v31 = vsel %vm1411_vm4, %v11232_v5, %v11231_v62  ;;  %v11017_v6 = vpack.c.bf16 %v10953_v15, %v10953_v15  ;;  %v11245_v34 = vsel %vm1408_vm3, %v11244_v7, %v11243_v47  ;;  %v11018_v25 = vpack.c.bf16 %v10954_v63, %v10954_v63 }
 0x20b   : > { %v11235_v37 = vsel %vm1414_vm5, %v11234_v10, %v11233_v31  ;;  %v11019_v60 = vpack.c.bf16 %v10955_v19, %v10955_v19  ;;  %v11247_v40 = vsel %vm1411_vm4, %v11246_v17, %v11245_v34  ;;  %v11020_v39 = vpack.c.bf16 %v10956_v16, %v10956_v16 }
 0x20c   : > { %v11237_v29 = vsel %vm1417_vm6, %v11236_v58, %v11235_v37  ;;  %v11021_v38 = vpack.c.bf16 %v10957_v54, %v10957_v54  ;;  %v11249_v48 = vsel %vm1414_vm5, %v11248_v21, %v11247_v40  ;;  %v11022_v22 = vpack.c.bf16 %v10958_v53, %v10958_v53 }
 0x20d   : > { %v11239_v36 = vsel %vm1420_vm7, %v11238_v8, %v11237_v29  ;;  %v11023_v3 = vpack.c.bf16 %v10959_v28, %v10959_v28  ;;  %v11251_v57 = vsel %vm1417_vm6, %v11250_v0, %v11249_v48  ;;  %v11024_v32 = vpack.c.bf16 %v10960_v14, %v10960_v14 }
 0x20e   : > { %v11025_v27 = vpack.c.bf16 %v10961_v1, %v10961_v1  ;;  %v11026_v45 = vpack.c.bf16 %v10962_v26, %v10962_v26  ;;  %v11253_v20 = vsel %vm1420_vm7, %v11252_v13, %v11251_v57  ;;  %v11027_v24 = vpack.c.bf16 %v10963_v61, %v10963_v61 }
 0x20f   : > { %v11028_v43 = vpack.c.bf16 %v10964_v18, %v10964_v18  ;;  %v11029_v59 = vpack.c.bf16 %v10965_v49, %v10965_v49  ;;  %v11284_v35 = vpack.c.b16 %v11253_v20, %v11239_v36  ;;  %v11030_v46 = vpack.c.bf16 %v10966_v52, %v10966_v52 }
 0x210   : > { %v11031_v11 = vpack.c.bf16 %v10967_v44, %v10967_v44  ;;  %v11032_v55 = vpack.c.bf16 %v10968_v51, %v10968_v51  ;;  %v11155_v42 = vunpack.c.l.b16 %v11018_v25  ;;  %v11156_v41 = vunpack.c.l.b16 %v11019_v60 }
 0x211   : > { %v11157_v50 = vunpack.c.l.b16 %v11020_v39  ;;  %v11158_v56 = vunpack.c.l.b16 %v11021_v38  ;;  %12651 = vmatprep.mubr.msk.bf16.mxu1 %vm11292_vm9, %v11284_v35  ;;  %v11154_v33 = vunpack.c.l.b16 %v11017_v6  ;;  %v11159_v23 = vunpack.c.l.b16 %v11022_v22 }
 0x212   : > { %v11160_v5 = vunpack.c.l.b16 %v11023_v3  ;;  %v11161_v10 = vunpack.c.l.b16 %v11024_v32  ;;  %v11163_v15 = vunpack.c.l.b16 %v11026_v45  ;;  %v11164_v4 = vunpack.c.l.b16 %v11027_v24 }
 0x213   : > { %v11165_v58 = vunpack.c.l.b16 %v11028_v43  ;;  %v11166_v2 = vunpack.c.l.b16 %v11029_v59  ;;  %v11162_v12 = vunpack.c.l.b16 %v11025_v27  ;;  %v11167_v63 = vunpack.c.l.b16 %v11030_v46  ;;  %v12493_v27 = vld [vmem:[%s15380_s2] ss:$0 sm:$0xff] }
 0x214   : > { %v11168_v9 = vunpack.c.l.b16 %v11031_v11  ;;  %v11254_v8 = vrot.slane %v11155_v42, 7  ;;  %v11169_v7 = vunpack.c.l.b16 %v11032_v55  ;;  %v11256_v17 = vrot.slane %v11156_v41, 6 }
 0x215   : > { %v11258_v19 = vrot.slane %v11157_v50, 5  ;;  %v11260_v62 = vrot.slane %v11158_v56, 4  ;;  %v11262_v21 = vrot.slane %v11159_v23, 3  ;;  %v11264_v0 = vrot.slane %v11160_v5, 2 }
 0x216   : > { %v11255_v30 = vsel %vm1402_vm1, %v11254_v8, %v11154_v33  ;;  %v11268_v16 = vrot.slane %v11163_v15, 7  ;;  %v11270_v31 = vrot.slane %v11164_v4, 6  ;;  %v11272_v47 = vrot.slane %v11165_v58, 5  ;;  %v12494_v58 = vld [vmem:[%s15383_s5] ss:$0 sm:$0xff] }
 0x217   : > { %v11257_v54 = vsel %vm1405_vm2, %v11256_v17, %v11255_v30  ;;  %v11274_v13 = vrot.slane %v11166_v2, 4  ;;  %v11266_v28 = vrot.slane %v11161_v10, 1  ;;  %v11276_v37 = vrot.slane %v11167_v63, 3 }
 0x218   : > { %v11259_v53 = vsel %vm1408_vm3, %v11258_v19, %v11257_v54  ;;  %v11269_v6 = vsel %vm1402_vm1, %v11268_v16, %v11162_v12  ;;  %v11278_v1 = vrot.slane %v11168_v9, 2  ;;  %v11280_v60 = vrot.slane %v11169_v7, 1 }
 0x219   : > { %v11261_v34 = vsel %vm1411_vm4, %v11260_v62, %v11259_v53  ;;  %v11271_v14 = vsel %vm1405_vm2, %v11270_v31, %v11269_v6 }
 0x21a   : > { %v11263_v26 = vsel %vm1414_vm5, %v11262_v21, %v11261_v34  ;;  %v11273_v25 = vsel %vm1408_vm3, %v11272_v47, %v11271_v14 }
 0x21b   : > { %v11265_v29 = vsel %vm1417_vm6, %v11264_v0, %v11263_v26  ;;  %v11275_v40 = vsel %vm1411_vm4, %v11274_v13, %v11273_v25 }
 0x21c   : > { %v11267_v61 = vsel %vm1420_vm7, %v11266_v28, %v11265_v29  ;;  %v11277_v18 = vsel %vm1414_vm5, %v11276_v37, %v11275_v40 }
 0x21d   : > { %v11279_v49 = vsel %vm1417_vm6, %v11278_v1, %v11277_v18 }
 0x21e   : > { %v11281_v39 = vsel %vm1420_vm7, %v11280_v60, %v11279_v49 }
 0x21f   : > { %v11285_v38 = vpack.c.b16 %v11281_v39, %v11267_v61 }
 0x221   : > { %12652 = vmatmul.mubr.msk.bf16.gmra.mrb[12].mxu1 %vm11292_vm9, %v11285_v38 }
 0x241   : > { %v12589_v36 = vpop.f32.mrb[0].mxu1 }
 0x242   : > { %v4353_v48 = vpop.f32.mrb[1].mxu1 }
 0x243   : > { %v12590_v52 = vpop.f32.mrb[2].mxu1 }
 0x244   : > { %v4356_v44 = vpop.f32.mrb[3].mxu1 }
 0x27f   : > { %v12593_v51 = vpop.f32.mrb[4].mxu1 }
 0x280   : > { %v4369_v22 = vpop.f32.mrb[5].mxu1 }
 0x281   : > { %v12594_v3 = vpop.f32.mrb[6].mxu1 }
 0x282   : > { %v4372_v57 = vpop.f32.mrb[7].mxu1 }
 0x2a1   : > { %v12639_v32 = vpop.f32.mrb[0].mxu0 }
 0x2a2   : > { %v12655_v45 = vadd.f32 %v12639_v32, %v12589_v36  ;;  %v10826_v20 = vpop.f32.mrb[1].mxu0 }
 0x2a3   : > { %v12656_v24 = vadd.f32 %v10826_v20, %v4353_v48  ;;  %v12640_v43 = vpop.f32.mrb[2].mxu0 }
 0x2a4   : > { %v10874_v59 = vadd.f32 %v12655_v45, %v12493_v27  ;;  %v12657_v35 = vadd.f32 %v12640_v43, %v12590_v52  ;;  %v10829_v46 = vpop.f32.mrb[3].mxu0 }
 0x2a5   : > { %v10872_v11 = vadd.f32 %v12656_v24, %v12493_v27  ;;  %v12658_v55 = vadd.f32 %v10829_v46, %v4356_v44 }
 0x2a6   : > { %v10882_v42 = vmax.f32 %v10874_v59, 0.0  ;;  %v10875_v41 = vadd.f32 %v12657_v35, %v12493_v27 }
 0x2a7   : > { %v10880_v50 = vmax.f32 %v10872_v11, 0.0  ;;  %v10873_v56 = vadd.f32 %v12658_v55, %v12493_v27 }
 0x2a8   : > { %v10890_v33 = vpack.c.bf16 %v10882_v42, %v10882_v42  ;;  %v10883_v23 = vmax.f32 %v10875_v41, 0.0 }
 0x2a9   : > { %v10888_v5 = vpack.c.bf16 %v10880_v50, %v10880_v50  ;;  %v10881_v10 = vmax.f32 %v10873_v56, 0.0 }
 0x2aa   : > { %10899 = vst.msk [vmem:[%s15332_s17 + $0x8] sm:$0xf] %vm10896_vm10, %v10890_v33  ;;  %v10891_v15 = vpack.c.bf16 %v10883_v23, %v10883_v23 }
 0x2ab   : > { %10897 = vst.msk [vmem:[%s15332_s17] sm:$0xf] %vm10896_vm10, %v10888_v5  ;;  %v10889_v4 = vpack.c.bf16 %v10881_v10, %v10881_v10 }
 0x2ac   : > { %10900 = vst.msk [vmem:[%s15332_s17 + $0xc] sm:$0xf] %vm10896_vm10, %v10891_v15 }
 0x2ad   : > { %10898 = vst.msk [vmem:[%s15332_s17 + $0x4] sm:$0xf] %vm10896_vm10, %v10889_v4 }
 0x2c1   : > { %v12649_v2 = vpop.f32.mrb[8].mxu1 }
 0x2c2   : > { %v11348_v12 = vadd.f32 %v12649_v2, %v12494_v58  ;;  %v11339_v63 = vpop.f32.mrb[9].mxu1 }
 0x2c3   : > { %v11340_v9 = vadd.f32 %v12494_v58, %v11339_v63  ;;  %v12650_v8 = vpop.f32.mrb[10].mxu1 }
 0x2c4   : > { %11372 = vst.msk [vmem:[%s15349_s23 + $0x10] sm:$0xff] %vm11292_vm9, %v11348_v12  ;;  %v11351_v7 = vadd.f32 %v12650_v8, %v12494_v58  ;;  %v11342_v17 = vpop.f32.mrb[11].mxu1 }
 0x2c5   : > { %11370 = vst.msk [vmem:[%s15349_s23] sm:$0xff] %vm11292_vm9, %v11340_v9  ;;  %v11343_v19 = vadd.f32 %v12494_v58, %v11342_v17 }
 0x2c6   : > { %11373 = vst.msk [vmem:[%s15349_s23 + $0x18] sm:$0xff] %vm11292_vm9, %v11351_v7 }
 0x2c7   : > { %11371 = vst.msk [vmem:[%s15349_s23 + $0x8] sm:$0xff] %vm11292_vm9, %v11343_v19 }
 0x2d5   : > { %v12643_v62 = vpop.f32.mrb[4].mxu0 }
 0x2d6   : > { %v12659_v30 = vadd.f32 %v12643_v62, %v12593_v51  ;;  %v10842_v21 = vpop.f32.mrb[5].mxu0 }
 0x2d7   : > { %v12660_v0 = vadd.f32 %v10842_v21, %v4369_v22  ;;  %v12644_v16 = vpop.f32.mrb[6].mxu0 }
 0x2d8   : > { %v10878_v54 = vadd.f32 %v12659_v30, %v12493_v27  ;;  %v12661_v31 = vadd.f32 %v12644_v16, %v12594_v3  ;;  %v10845_v47 = vpop.f32.mrb[7].mxu0 }
 0x2d9   : > { %v10876_v13 = vadd.f32 %v12660_v0, %v12493_v27  ;;  %v12662_v53 = vadd.f32 %v10845_v47, %v4372_v57 }
 0x2da   : > { %v10886_v28 = vmax.f32 %v10878_v54, 0.0  ;;  %v10879_v6 = vadd.f32 %v12661_v31, %v12493_v27 }
 0x2db   : > { %v10884_v37 = vmax.f32 %v10876_v13, 0.0  ;;  %v10877_v34 = vadd.f32 %v12662_v53, %v12493_v27 }
 0x2dc   : > { %v10894_v14 = vpack.c.bf16 %v10886_v28, %v10886_v28  ;;  %v10887_v1 = vmax.f32 %v10879_v6, 0.0 }
 0x2dd   : > { %v10892_v26 = vpack.c.bf16 %v10884_v37, %v10884_v37  ;;  %v10885_v25 = vmax.f32 %v10877_v34, 0.0 }
 0x2de   : > { %10903 = vst.msk [vmem:[%s15332_s17 + $0x18] sm:$0xf] %vm10896_vm10, %v10894_v14  ;;  %v10895_v60 = vpack.c.bf16 %v10887_v1, %v10887_v1 }
 0x2df   : > { %10901 = vst.msk [vmem:[%s15332_s17 + $0x10] sm:$0xf] %vm10896_vm10, %v10892_v26  ;;  %v10893_v29 = vpack.c.bf16 %v10885_v25, %v10885_v25 }
 0x2e0   : > { %10904 = vst.msk [vmem:[%s15332_s17 + $0x1c] sm:$0xf] %vm10896_vm10, %v10895_v60 }
 0x2e1   : > { %10902 = vst.msk [vmem:[%s15332_s17 + $0x14] sm:$0xf] %vm10896_vm10, %v10893_v29 }
 0x2f4   : > { %v12653_v40 = vpop.f32.mrb[12].mxu1 }
 0x2f5   : > { %v11364_v61 = vadd.f32 %v12653_v40, %v12494_v58  ;;  %v11355_v18 = vpop.f32.mrb[13].mxu1 }
 0x2f6   : > { %v11356_v49 = vadd.f32 %v12494_v58, %v11355_v18  ;;  %v12654_v39 = vpop.f32.mrb[14].mxu1 }
 0x2f7   : > { %11376 = vst.msk [vmem:[%s15349_s23 + $0x30] sm:$0xff] %vm11292_vm9, %v11364_v61  ;;  %v11367_v38 = vadd.f32 %v12654_v39, %v12494_v58  ;;  %v11358_v36 = vpop.f32.mrb[15].mxu1 }
 0x2f8   : > { %11374 = vst.msk [vmem:[%s15349_s23 + $0x20] sm:$0xff] %vm11292_vm9, %v11356_v49  ;;  %v11359_v48 = vadd.f32 %v12494_v58, %v11358_v36 }
 0x2f9   : > { %11377 = vst.msk [vmem:[%s15349_s23 + $0x38] sm:$0xff] %vm11292_vm9, %v11367_v38 }
 0x2fa   : > { %11375 = vst.msk [vmem:[%s15349_s23 + $0x28] sm:$0xff] %vm11292_vm9, %v11359_v48 }
 0x2fb PF: > { %s18_s24 = sadd.s32 1, %s12746_s24  }
 0x2fc   : > { %p15_p4 = scmp.ge.s32.totalorder %s18_s24, 4  }
 0x2fe   :  { %17 = sbr.rel (!%p15_p4) target bundleno = 1 (0x1), region = 102 }

</bundles_post_ra>
